<compile_context>
chip_gen: v7x
topology: tpu7x:2x2x1
jax: 0.10.0
libtpu: 0.0.40
codegen_flags: <defaults>
</compile_context>

<pallas_src>
import jax
import jax.numpy as jnp
import numpy as np
from jax import lax
from jax.experimental import pallas as pl
from jax.experimental.pallas import tpu as pltpu


def _round_up(a: int, m: int) -> int:
    return (a + m - 1) // m * m


def _tpu_vmem_capacity_bytes(default: int = 64 << 20) -> int:
    """VMEM capacity of the local TPU; conservative (v7x-level) default."""
    try:
        info = pltpu.get_tpu_info()
        cap = getattr(info, "vmem_capacity_bytes", None)
        if cap:
            return int(cap)
    except Exception:
        pass
    return default


# ---------------------------------------------------------------------------
# Fused kernel: relu(x @ W1^T + b1) @ W2^T + b2 -> logits, per-tile masked NLL
# ---------------------------------------------------------------------------
def probe_fused_kernel(x_ref, lab_ref, w1_ref, b1_ref, w2_ref, b2_ref,
                       logits_ref, nll_part_ref):
    x = x_ref[...]                                              # (TN, Ep) bf16

    # fc1: weights were pre-transposed to (in, out) -> plain x @ W feeds the MXU
    # with K on the sublane axis (no per-tile transpose of the resident weight).
    h = jnp.dot(x, w1_ref[...], preferred_element_type=jnp.float32)  # (TN, Ep)
    h = jnp.maximum(h + b1_ref[...], 0.0)                       # f32 bias + ReLU

    # fc2
    logits = jnp.dot(h.astype(jnp.bfloat16), w2_ref[...],
                     preferred_element_type=jnp.float32)        # (TN, Vp) f32
    logits = logits + b2_ref[...]                               # padded cols -> -1e30
    logits_ref[...] = logits.astype(logits_ref.dtype)

    # --- fused CrossEntropy(ignore_index=-1): per-tile partial sum ----------
    labels = lab_ref[...]                                       # (TN, 1) int32
    m = jnp.max(logits, axis=-1, keepdims=True)                 # (TN, 1)
    shifted = logits - m
    sum_exp = jnp.sum(jnp.exp(shifted), axis=-1, keepdims=True)  # padded cols -> 0
    col = lax.broadcasted_iota(jnp.int32, logits.shape, 1)
    # masked select + reduce (no float one-hot matmul), reusing `shifted`
    lab_shifted = jnp.sum(jnp.where(col == labels, shifted, 0.0),
                          axis=-1, keepdims=True)               # logits[label] - m
    nll = jnp.log(sum_exp) - lab_shifted                        # lse - logits[label]
    valid = (labels != -1).astype(jnp.float32)                  # (TN, 1)
    part = jnp.sum(nll * valid, axis=(0, 1), keepdims=True)     # (1, 1) scalar
    # Lane-dense scalar broadcast: one unmasked (8,128) store per tile instead
    # of tile_n lane-sparse masked stores competing with the logits writeback.
    nll_part_ref[...] = jnp.broadcast_to(part, (8, 128))


def probe_head_with_loss(x, labels, w1, b1, w2, b2, *, tile_n=None,
                         logits_dtype=jnp.float32):
    """x: (N, E) f32 hidden states, labels: (N,) int32 (-1 == ignore).

    w1: (E, E), b1: (E,), w2: (V, E), b2: (V,)  — PyTorch nn.Linear layout.
    Returns (logits (N, V), scalar mean NLL over labels != -1).
    NOTE: if every label is -1 the loss is 0/0 (NaN), matching torch semantics.
    """
    N, E = x.shape
    V = w2.shape[0]
    E_pad = _round_up(E, 128)
    V_pad = _round_up(V, 128)
    out_isz = jnp.dtype(logits_dtype).itemsize

    vmem_cap = _tpu_vmem_capacity_bytes()
    vmem_limit = max(32 << 20, min(int(0.6 * vmem_cap), 96 << 20))

    if tile_n is None:
        # Mem-bound kernel: pick the biggest 256-aligned row tile whose
        # double-buffered streaming operands (+ resident weights + scratch
        # margin) fit the VMEM budget.  2048 on v5e/v6e (128 MiB), 1024 on v7x.
        big = 2048 if vmem_cap >= (100 << 20) else 1024
        stream_bytes_per_row = 2 * (E_pad * 2) + 2 * (V_pad * out_isz) + 2 * 4
        resident = 2 * ((E_pad * E_pad + E_pad * V_pad) * 2 + (E_pad + V_pad) * 4)
        budget = int(0.8 * vmem_limit) - resident - (2 << 20)
        cap_rows = max(256, budget // max(stream_bytes_per_row, 1) // 256 * 256)
        tile_n = min(big, cap_rows, _round_up(N, 256))
    tile_n = _round_up(max(tile_n, 16), 16)      # bf16 (16,128) min-tile safety
    N_pad = _round_up(N, tile_n)
    grid = N_pad // tile_n

    # Pad to lane-dense shapes; pre-transpose weights to (in, out); bf16 matmul
    # inputs, f32 biases.
    x_p = jnp.pad(x.astype(jnp.bfloat16), ((0, N_pad - N), (0, E_pad - E)))
    lab_p = jnp.pad(labels.astype(jnp.int32), (0, N_pad - N),
                    constant_values=-1).reshape(N_pad, 1)
    w1t_p = jnp.pad(w1.astype(jnp.bfloat16).T, ((0, E_pad - E), (0, E_pad - E)))
    b1_p = jnp.pad(b1.astype(jnp.float32), (0, E_pad - E)).reshape(1, E_pad)
    w2t_p = jnp.pad(w2.astype(jnp.bfloat16).T, ((0, E_pad - E), (0, V_pad - V)))
    # Padded logit columns get bias -1e30 -> exp underflows to 0 in the softmax.
    b2_p = jnp.pad(b2.astype(jnp.float32), (0, V_pad - V),
                   constant_values=-1e30).reshape(1, V_pad)

    cost = pl.CostEstimate(
        flops=2 * N_pad * E_pad * E_pad + 2 * N_pad * E_pad * V_pad,
        transcendentals=N_pad * V_pad + N_pad,
        bytes_accessed=(x_p.size * 2 + w1t_p.size * 2 + w2t_p.size * 2
                        + b1_p.size * 4 + b2_p.size * 4 + lab_p.size * 4
                        + N_pad * V_pad * out_isz + grid * 8 * 128 * 4),
    )

    def run(single_buffer_weights):
        if single_buffer_weights:
            # Grid-invariant operands: keep ONE resident copy (default is 2).
            def wspec(shape):
                return pl.BlockSpec(shape, lambda i: (0, 0),
                                    pipeline_mode=pl.Buffered(1))
        else:
            def wspec(shape):
                return pl.BlockSpec(shape, lambda i: (0, 0))

        grid_spec = pltpu.PrefetchScalarGridSpec(
            num_scalar_prefetch=0,
            grid=(grid,),
            in_specs=[
                pl.BlockSpec((tile_n, E_pad), lambda i: (i, 0)),   # x tile (streamed)
                pl.BlockSpec((tile_n, 1), lambda i: (i, 0)),       # labels tile
                wspec((E_pad, E_pad)),                             # W1^T resident
                wspec((1, E_pad)),                                 # b1 resident
                wspec((E_pad, V_pad)),                             # W2^T resident
                wspec((1, V_pad)),                                 # b2 resident
            ],
            out_specs=[
                pl.BlockSpec((tile_n, V_pad), lambda i: (i, 0)),   # logits tile
                pl.BlockSpec((8, 128), lambda i: (i, 0)),          # per-tile NLL sum
            ],
        )
        return pl.pallas_call(
            probe_fused_kernel,
            out_shape=(
                jax.ShapeDtypeStruct((N_pad, V_pad), logits_dtype),
                jax.ShapeDtypeStruct((grid * 8, 128), jnp.float32),
            ),
            grid_spec=grid_spec,
            compiler_params=pltpu.CompilerParams(
                # Single row-grid axis, distinct output blocks per index ->
                # megacore-shardable on v7x; no-op on single-TC v5e/v6e.
                dimension_semantics=("parallel",),
                vmem_limit_bytes=vmem_limit,
            ),
            cost_estimate=cost,
        )(x_p, lab_p, w1t_p, b1_p, w2t_p, b2_p)

    try:
        logits_p, nll_parts = run(True)
    except Exception:
        # Fallback if this JAX build rejects pipeline_mode=pl.Buffered(1).
        logits_p, nll_parts = run(False)

    nll_sum = jnp.sum(nll_parts.reshape(grid, 8, 128)[:, 0, 0])
    valid_count = jnp.sum(labels != -1).astype(jnp.float32)
    loss = nll_sum / valid_count        # NaN when every label == -1 (torch parity)
    return logits_p[:N, :V], loss


# ---------------------------------------------------------------------------
# ProbeModel forward (plain-JAX glue around the fused kernel)
# ---------------------------------------------------------------------------
def probe_model_forward(input_ids, pos_ids, params):
    # TODO(synk): replace with the real GPT-2 forward; model_outputs[-2] stand-in.
    syn_hid_states = params["wte"][input_ids]                   # (B, T, E) f32
    B, T, E = syn_hid_states.shape
    V = params["w2"].shape[0]

    # Shift labels instead of slicing logits: the last position of each
    # sequence gets -1 (ignore_index), so CE over all B*T rows equals CE over
    # the torch-style shifted (logits[:-1], labels[1:]) pairs.
    shift_labels_full = jnp.concatenate(
        [pos_ids[:, 1:], jnp.full((B, 1), -1, pos_ids.dtype)], axis=1)

    logits, loss = probe_head_with_loss(
        syn_hid_states.reshape(B * T, E),
        shift_labels_full.reshape(B * T),
        params["w1"], params["b1"], params["w2"], params["b2"])

    pos_logits = logits.reshape(B, T, V)
    shift_pos_logits = pos_logits[:, :-1, :]
    return loss, shift_pos_logits


# ---------------------------------------------------------------------------
# Pure-JAX reference (same bf16-input / f32-accumulate math) for verification
# ---------------------------------------------------------------------------
def reference_forward(input_ids, pos_ids, params):
    h = params["wte"][input_ids]
    h1 = jnp.dot(h.astype(jnp.bfloat16), params["w1"].astype(jnp.bfloat16).T,
                 preferred_element_type=jnp.float32) + params["b1"]
    h1 = jnp.maximum(h1, 0.0)
    logits = jnp.dot(h1.astype(jnp.bfloat16), params["w2"].astype(jnp.bfloat16).T,
                     preferred_element_type=jnp.float32) + params["b2"]
    shift_logits = logits[:, :-1, :]
    shift_labels = pos_ids[:, 1:]
    fl = shift_logits.reshape(-1, shift_logits.shape[-1])
    ll = shift_labels.reshape(-1)
    logp = jax.nn.log_softmax(fl, axis=-1)
    safe = jnp.where(ll == -1, 0, ll)
    nll = -jnp.take_along_axis(logp, safe[:, None], axis=-1)[:, 0]
    valid = (ll != -1).astype(jnp.float32)
    loss = jnp.sum(nll * valid) / jnp.sum(valid)
    return loss, shift_logits


if __name__ == "__main__":
    # Small config consistent with the module:
    #   n_embd = 32, pos_vocab_size = 16, token vocab = 24, batch = 2, seq = 8
    B, T, E, V_POS, V_TOK = 2, 8, 32, 16, 24

    key = jax.random.PRNGKey(0)
    k_wte, k_w1, k_b1, k_w2, k_b2, k_ids, k_pos = jax.random.split(key, 7)

    params = {
        "wte": jax.random.normal(k_wte, (V_TOK, E), jnp.float32),
        "w1": jax.random.normal(k_w1, (E, E), jnp.float32) * 0.2,      # nn.Linear(E, E)
        "b1": jax.random.normal(k_b1, (E,), jnp.float32) * 0.1,
        "w2": jax.random.normal(k_w2, (V_POS, E), jnp.float32) * 0.2,  # nn.Linear(E, V_POS)
        "b2": jax.random.normal(k_b2, (V_POS,), jnp.float32) * 0.1,
    }

    input_ids = jax.random.randint(k_ids, (B, T), 0, V_TOK, jnp.int32)
    pos_ids = jax.random.randint(k_pos, (B, T), 0, V_POS, jnp.int32)
    # Sprinkle a few ignore_index (-1) labels.
    pos_ids = pos_ids.at[0, 3].set(-1).at[1, 6].set(-1)

    loss, shift_logits = probe_model_forward(input_ids, pos_ids, params)
    jax.block_until_ready((loss, shift_logits))

    ref_loss, ref_logits = reference_forward(input_ids, pos_ids, params)
    assert np.allclose(np.asarray(shift_logits), np.asarray(ref_logits),
                       atol=5e-4, rtol=5e-4), "logits mismatch"
    assert np.allclose(np.asarray(loss), np.asarray(ref_loss),
                       atol=5e-4, rtol=5e-4), "loss mismatch"

    print("KERNEL_OK")
</pallas_src>

<mosaic_0001>
module attributes {stable_mosaic.version = 11 : i64} {
  func.func @probe_fused_kernel(%arg0: i32, %arg1: memref<256x128xbf16, #tpu.memory_space<vmem>>, %arg2: memref<256x1xi32, #tpu.memory_space<vmem>>, %arg3: memref<128x128xbf16, #tpu.memory_space<vmem>>, %arg4: memref<1x128xf32, #tpu.memory_space<vmem>>, %arg5: memref<128x128xbf16, #tpu.memory_space<vmem>>, %arg6: memref<1x128xf32, #tpu.memory_space<vmem>>, %arg7: memref<256x128xf32, #tpu.memory_space<vmem>>, %arg8: memref<8x128xf32, #tpu.memory_space<vmem>>) attributes {dimension_semantics = [#tpu.dimension_semantics<parallel>], iteration_bounds = array<i64: 1>, scalar_prefetch = 0 : i64, scratch_operands = 0 : i64, tpu.core_type = #tpu.core_type<tc>, window_params = [{transform_indices = @transform_0, window_bounds = array<i64: 256, 128>}, {transform_indices = @transform_1, window_bounds = array<i64: 256, 1>}, {pipeline_mode = #tpu.pipeline_mode<synchronous>, transform_indices = @transform_2, window_bounds = array<i64: 128, 128>}, {pipeline_mode = #tpu.pipeline_mode<synchronous>, transform_indices = @transform_3, window_bounds = array<i64: 1, 128>}, {pipeline_mode = #tpu.pipeline_mode<synchronous>, transform_indices = @transform_4, window_bounds = array<i64: 128, 128>}, {pipeline_mode = #tpu.pipeline_mode<synchronous>, transform_indices = @transform_5, window_bounds = array<i64: 1, 128>}, {transform_indices = @transform_6, window_bounds = array<i64: 256, 128>}, {transform_indices = @transform_7, window_bounds = array<i64: 8, 128>}]} {
    %c0 = arith.constant 0 : index
    %c0_0 = arith.constant 0 : index
    %0 = vector.load %arg1[%c0, %c0_0] : memref<256x128xbf16, #tpu.memory_space<vmem>>, vector<256x128xbf16>
    %c0_1 = arith.constant 0 : index
    %c0_2 = arith.constant 0 : index
    %1 = vector.load %arg3[%c0_1, %c0_2] : memref<128x128xbf16, #tpu.memory_space<vmem>>, vector<128x128xbf16>
    %cst = arith.constant dense<0.000000e+00> : vector<256x128xf32>
    %2 = tpu.matmul %0, %1, %cst {dimension_numbers = #tpu.dot_dimension_numbers<[1], [0], [0], [1], [0, 0, 1, 1], [], []>} : vector<256x128xbf16>, vector<128x128xbf16>, vector<256x128xf32> -> vector<256x128xf32>
    %c0_3 = arith.constant 0 : index
    %c0_4 = arith.constant 0 : index
    %3 = vector.load %arg4[%c0_3, %c0_4] : memref<1x128xf32, #tpu.memory_space<vmem>>, vector<1x128xf32>
    %4 = vector.broadcast %3 : vector<1x128xf32> to vector<256x128xf32>
    %5 = arith.addf %2, %4 : vector<256x128xf32>
    %cst_5 = arith.constant 0.000000e+00 : f32
    %6 = vector.broadcast %cst_5 : f32 to vector<256x128xf32>
    %7 = arith.maximumf %5, %6 : vector<256x128xf32>
    %8 = arith.truncf %7 : vector<256x128xf32> to vector<256x128xbf16>
    %c0_6 = arith.constant 0 : index
    %c0_7 = arith.constant 0 : index
    %9 = vector.load %arg5[%c0_6, %c0_7] : memref<128x128xbf16, #tpu.memory_space<vmem>>, vector<128x128xbf16>
    %cst_8 = arith.constant dense<0.000000e+00> : vector<256x128xf32>
    %10 = tpu.matmul %8, %9, %cst_8 {dimension_numbers = #tpu.dot_dimension_numbers<[1], [0], [0], [1], [0, 0, 1, 1], [], []>} : vector<256x128xbf16>, vector<128x128xbf16>, vector<256x128xf32> -> vector<256x128xf32>
    %c0_9 = arith.constant 0 : index
    %c0_10 = arith.constant 0 : index
    %11 = vector.load %arg6[%c0_9, %c0_10] : memref<1x128xf32, #tpu.memory_space<vmem>>, vector<1x128xf32>
    %12 = vector.broadcast %11 : vector<1x128xf32> to vector<256x128xf32>
    %13 = arith.addf %10, %12 : vector<256x128xf32>
    %c0_11 = arith.constant 0 : index
    %c0_12 = arith.constant 0 : index
    %14 = vector.load %arg7[%c0_11, %c0_12] : memref<256x128xf32, #tpu.memory_space<vmem>>, vector<256x128xf32>
    tpu.vector_store %arg7[%c0_11, %c0_12], %13 {strides = array<i32>} : memref<256x128xf32, #tpu.memory_space<vmem>>, vector<256x128xf32>,
    %c0_13 = arith.constant 0 : index
    %c0_14 = arith.constant 0 : index
    %15 = vector.load %arg2[%c0_13, %c0_14] : memref<256x1xi32, #tpu.memory_space<vmem>>, vector<256x1xi32>
    %cst_15 = arith.constant dense<0xFF800000> : vector<256xf32>
    %16 = vector.multi_reduction <maximumf>, %13, %cst_15 [1] : vector<256x128xf32> to vector<256xf32>
    %17 = vector.shape_cast %16 : vector<256xf32> to vector<256x1xf32>
    %18 = vector.broadcast %17 : vector<256x1xf32> to vector<256x128xf32>
    %19 = arith.subf %13, %18 : vector<256x128xf32>
    %20 = math.exp %19 : vector<256x128xf32>
    %cst_16 = arith.constant dense<0.000000e+00> : vector<256xf32>
    %21 = vector.multi_reduction <add>, %20, %cst_16 [1] : vector<256x128xf32> to vector<256xf32>
    %22 = vector.shape_cast %21 : vector<256xf32> to vector<256x1xf32>
    %23 = tpu.iota {dimensions = array<i32: 1>} : vector<256x128xi32>
    %24 = vector.broadcast %15 : vector<256x1xi32> to vector<256x128xi32>
    %25 = arith.cmpi eq, %23, %24 : vector<256x128xi32>
    %cst_17 = arith.constant 0.000000e+00 : f32
    %26 = vector.broadcast %cst_17 : f32 to vector<256x128xf32>
    %27 = arith.select %25, %19, %26 : vector<256x128xi1>, vector<256x128xf32>
    %cst_18 = arith.constant dense<0.000000e+00> : vector<256xf32>
    %28 = vector.multi_reduction <add>, %27, %cst_18 [1] : vector<256x128xf32> to vector<256xf32>
    %29 = vector.shape_cast %28 : vector<256xf32> to vector<256x1xf32>
    %30 = math.log %22 : vector<256x1xf32>
    %31 = arith.subf %30, %29 : vector<256x1xf32>
    %c-1_i32 = arith.constant -1 : i32
    %32 = vector.broadcast %c-1_i32 : i32 to vector<256x1xi32>
    %33 = arith.cmpi ne, %15, %32 : vector<256x1xi32>
    %34 = arith.extui %33 : vector<256x1xi1> to vector<256x1xi32>
    %35 = arith.sitofp %34 : vector<256x1xi32> to vector<256x1xf32>
    %36 = arith.mulf %31, %35 : vector<256x1xf32>
    %37 = vector.shape_cast %36 : vector<256x1xf32> to vector<1x256x1xf32>
    %cst_19 = arith.constant dense<0.000000e+00> : vector<1xf32>
    %38 = vector.multi_reduction <add>, %37, %cst_19 [1, 2] : vector<1x256x1xf32> to vector<1xf32>
    %39 = vector.shape_cast %38 : vector<1xf32> to vector<1x1x1xf32>
    %40 = vector.extract %39[0, 0, 0] : f32 from vector<1x1x1xf32>
    %41 = vector.broadcast %40 : f32 to vector<1x1xf32>
    %42 = vector.shape_cast %41 : vector<1x1xf32> to vector<1x1xf32>
    %43 = vector.broadcast %42 : vector<1x1xf32> to vector<8x128xf32>
    %c0_20 = arith.constant 0 : index
    %c0_21 = arith.constant 0 : index
    %44 = vector.load %arg8[%c0_20, %c0_21] : memref<8x128xf32, #tpu.memory_space<vmem>>, vector<8x128xf32>
    tpu.vector_store %arg8[%c0_20, %c0_21], %43 {strides = array<i32>} : memref<8x128xf32, #tpu.memory_space<vmem>>, vector<8x128xf32>,
    return
  }
  func.func @transform_0(%arg0: i32) -> (i32, i32) {
    %c0_i32 = arith.constant 0 : i32
    %c0_i32_0 = arith.constant 0 : i32
    return %arg0, %c0_i32 : i32, i32
  }
  func.func @transform_1(%arg0: i32) -> (i32, i32) {
    %c0_i32 = arith.constant 0 : i32
    %c0_i32_0 = arith.constant 0 : i32
    return %arg0, %c0_i32 : i32, i32
  }
  func.func @transform_2(%arg0: i32) -> (i32, i32) {
    %c0_i32 = arith.constant 0 : i32
    %c0_i32_0 = arith.constant 0 : i32
    %c0_i32_1 = arith.constant 0 : i32
    return %c0_i32, %c0_i32_0 : i32, i32
  }
  func.func @transform_3(%arg0: i32) -> (i32, i32) {
    %c0_i32 = arith.constant 0 : i32
    %c0_i32_0 = arith.constant 0 : i32
    %c0_i32_1 = arith.constant 0 : i32
    return %c0_i32, %c0_i32_0 : i32, i32
  }
  func.func @transform_4(%arg0: i32) -> (i32, i32) {
    %c0_i32 = arith.constant 0 : i32
    %c0_i32_0 = arith.constant 0 : i32
    %c0_i32_1 = arith.constant 0 : i32
    return %c0_i32, %c0_i32_0 : i32, i32
  }
  func.func @transform_5(%arg0: i32) -> (i32, i32) {
    %c0_i32 = arith.constant 0 : i32
    %c0_i32_0 = arith.constant 0 : i32
    %c0_i32_1 = arith.constant 0 : i32
    return %c0_i32, %c0_i32_0 : i32, i32
  }
  func.func @transform_6(%arg0: i32) -> (i32, i32) {
    %c0_i32 = arith.constant 0 : i32
    %c0_i32_0 = arith.constant 0 : i32
    return %arg0, %c0_i32 : i32, i32
  }
  func.func @transform_7(%arg0: i32) -> (i32, i32) {
    %c0_i32 = arith.constant 0 : i32
    %c0_i32_0 = arith.constant 0 : i32
    return %arg0, %c0_i32 : i32, i32
  }
}

module attributes {stable_mosaic.version = 11 : i64} {
  func.func @probe_fused_kernel(%arg0: i32, %arg1: memref<256x128xbf16, #tpu.memory_space<vmem>>, %arg2: memref<256x1xi32, #tpu.memory_space<vmem>>, %arg3: memref<128x128xbf16, #tpu.memory_space<vmem>>, %arg4: memref<1x128xf32, #tpu.memory_space<vmem>>, %arg5: memref<128x128xbf16, #tpu.memory_space<vmem>>, %arg6: memref<1x128xf32, #tpu.memory_space<vmem>>, %arg7: memref<256x128xf32, #tpu.memory_space<vmem>>, %arg8: memref<8x128xf32, #tpu.memory_space<vmem>>) attributes {dimension_semantics = [#tpu.dimension_semantics<parallel>], iteration_bounds = array<i64: 1>, scalar_prefetch = 0 : i64, scratch_operands = 0 : i64, tpu.core_type = #tpu.core_type<tc>, window_params = [{transform_indices = @transform_0, window_bounds = array<i64: 256, 128>}, {transform_indices = @transform_1, window_bounds = array<i64: 256, 1>}, {pipeline_mode = #tpu.pipeline_mode<synchronous>, transform_indices = @transform_2, window_bounds = array<i64: 128, 128>}, {pipeline_mode = #tpu.pipeline_mode<synchronous>, transform_indices = @transform_3, window_bounds = array<i64: 1, 128>}, {pipeline_mode = #tpu.pipeline_mode<synchronous>, transform_indices = @transform_4, window_bounds = array<i64: 128, 128>}, {pipeline_mode = #tpu.pipeline_mode<synchronous>, transform_indices = @transform_5, window_bounds = array<i64: 1, 128>}, {transform_indices = @transform_6, window_bounds = array<i64: 256, 128>}, {transform_indices = @transform_7, window_bounds = array<i64: 8, 128>}]} {
    %c0 = arith.constant 0 : index
    %c0_0 = arith.constant 0 : index
    %0 = vector.load %arg1[%c0, %c0_0] : memref<256x128xbf16, #tpu.memory_space<vmem>>, vector<256x128xbf16>
    %c0_1 = arith.constant 0 : index
    %c0_2 = arith.constant 0 : index
    %1 = vector.load %arg3[%c0_1, %c0_2] : memref<128x128xbf16, #tpu.memory_space<vmem>>, vector<128x128xbf16>
    %cst = arith.constant dense<0.000000e+00> : vector<256x128xf32>
    %2 = tpu.matmul %0, %1, %cst {dimension_numbers = #tpu.dot_dimension_numbers<[1], [0], [0], [1], [0, 0, 1, 1], [], []>} : vector<256x128xbf16>, vector<128x128xbf16>, vector<256x128xf32> -> vector<256x128xf32>
    %c0_3 = arith.constant 0 : index
    %c0_4 = arith.constant 0 : index
    %3 = vector.load %arg4[%c0_3, %c0_4] : memref<1x128xf32, #tpu.memory_space<vmem>>, vector<1x128xf32>
    %4 = vector.broadcast %3 : vector<1x128xf32> to vector<256x128xf32>
    %5 = arith.addf %2, %4 : vector<256x128xf32>
    %cst_5 = arith.constant 0.000000e+00 : f32
    %6 = vector.broadcast %cst_5 : f32 to vector<256x128xf32>
    %7 = arith.maximumf %5, %6 : vector<256x128xf32>
    %8 = arith.truncf %7 : vector<256x128xf32> to vector<256x128xbf16>
    %c0_6 = arith.constant 0 : index
    %c0_7 = arith.constant 0 : index
    %9 = vector.load %arg5[%c0_6, %c0_7] : memref<128x128xbf16, #tpu.memory_space<vmem>>, vector<128x128xbf16>
    %cst_8 = arith.constant dense<0.000000e+00> : vector<256x128xf32>
    %10 = tpu.matmul %8, %9, %cst_8 {dimension_numbers = #tpu.dot_dimension_numbers<[1], [0], [0], [1], [0, 0, 1, 1], [], []>} : vector<256x128xbf16>, vector<128x128xbf16>, vector<256x128xf32> -> vector<256x128xf32>
    %c0_9 = arith.constant 0 : index
    %c0_10 = arith.constant 0 : index
    %11 = vector.load %arg6[%c0_9, %c0_10] : memref<1x128xf32, #tpu.memory_space<vmem>>, vector<1x128xf32>
    %12 = vector.broadcast %11 : vector<1x128xf32> to vector<256x128xf32>
    %13 = arith.addf %10, %12 : vector<256x128xf32>
    %c0_11 = arith.constant 0 : index
    %c0_12 = arith.constant 0 : index
    %14 = vector.load %arg7[%c0_11, %c0_12] : memref<256x128xf32, #tpu.memory_space<vmem>>, vector<256x128xf32>
    tpu.vector_store %arg7[%c0_11, %c0_12], %13 {strides = array<i32>} : memref<256x128xf32, #tpu.memory_space<vmem>>, vector<256x128xf32>,
    %c0_13 = arith.constant 0 : index
    %c0_14 = arith.constant 0 : index
    %15 = vector.load %arg2[%c0_13, %c0_14] : memref<256x1xi32, #tpu.memory_space<vmem>>, vector<256x1xi32>
    %cst_15 = arith.constant dense<0xFF800000> : vector<256xf32>
    %16 = vector.multi_reduction <maximumf>, %13, %cst_15 [1] : vector<256x128xf32> to vector<256xf32>
    %17 = vector.shape_cast %16 : vector<256xf32> to vector<256x1xf32>
    %18 = vector.broadcast %17 : vector<256x1xf32> to vector<256x128xf32>
    %19 = arith.subf %13, %18 : vector<256x128xf32>
    %20 = math.exp %19 : vector<256x128xf32>
    %cst_16 = arith.constant dense<0.000000e+00> : vector<256xf32>
    %21 = vector.multi_reduction <add>, %20, %cst_16 [1] : vector<256x128xf32> to vector<256xf32>
    %22 = vector.shape_cast %21 : vector<256xf32> to vector<256x1xf32>
    %23 = tpu.iota {dimensions = array<i32: 1>} : vector<256x128xi32>
    %24 = vector.broadcast %15 : vector<256x1xi32> to vector<256x128xi32>
    %25 = arith.cmpi eq, %23, %24 : vector<256x128xi32>
    %cst_17 = arith.constant 0.000000e+00 : f32
    %26 = vector.broadcast %cst_17 : f32 to vector<256x128xf32>
    %27 = arith.select %25, %19, %26 : vector<256x128xi1>, vector<256x128xf32>
    %cst_18 = arith.constant dense<0.000000e+00> : vector<256xf32>
    %28 = vector.multi_reduction <add>, %27, %cst_18 [1] : vector<256x128xf32> to vector<256xf32>
    %29 = vector.shape_cast %28 : vector<256xf32> to vector<256x1xf32>
    %30 = math.log %22 : vector<256x1xf32>
    %31 = arith.subf %30, %29 : vector<256x1xf32>
    %c-1_i32 = arith.constant -1 : i32
    %32 = vector.broadcast %c-1_i32 : i32 to vector<256x1xi32>
    %33 = arith.cmpi ne, %15, %32 : vector<256x1xi32>
    %34 = arith.extui %33 : vector<256x1xi1> to vector<256x1xi32>
    %35 = arith.sitofp %34 : vector<256x1xi32> to vector<256x1xf32>
    %36 = arith.mulf %31, %35 : vector<256x1xf32>
    %37 = vector.shape_cast %36 : vector<256x1xf32> to vector<1x256x1xf32>
    %cst_19 = arith.constant dense<0.000000e+00> : vector<1xf32>
    %38 = vector.multi_reduction <add>, %37, %cst_19 [1, 2] : vector<1x256x1xf32> to vector<1xf32>
    %39 = vector.shape_cast %38 : vector<1xf32> to vector<1x1x1xf32>
    %40 = vector.extract %39[0, 0, 0] : f32 from vector<1x1x1xf32>
    %41 = vector.broadcast %40 : f32 to vector<1x1xf32>
    %42 = vector.shape_cast %41 : vector<1x1xf32> to vector<1x1xf32>
    %43 = vector.broadcast %42 : vector<1x1xf32> to vector<8x128xf32>
    %c0_20 = arith.constant 0 : index
    %c0_21 = arith.constant 0 : index
    %44 = vector.load %arg8[%c0_20, %c0_21] : memref<8x128xf32, #tpu.memory_space<vmem>>, vector<8x128xf32>
    tpu.vector_store %arg8[%c0_20, %c0_21], %43 {strides = array<i32>} : memref<8x128xf32, #tpu.memory_space<vmem>>, vector<8x128xf32>,
    return
  }
  func.func @transform_0(%arg0: i32) -> (i32, i32) {
    %c0_i32 = arith.constant 0 : i32
    %c0_i32_0 = arith.constant 0 : i32
    return %arg0, %c0_i32 : i32, i32
  }
  func.func @transform_1(%arg0: i32) -> (i32, i32) {
    %c0_i32 = arith.constant 0 : i32
    %c0_i32_0 = arith.constant 0 : i32
    return %arg0, %c0_i32 : i32, i32
  }
  func.func @transform_2(%arg0: i32) -> (i32, i32) {
    %c0_i32 = arith.constant 0 : i32
    %c0_i32_0 = arith.constant 0 : i32
    %c0_i32_1 = arith.constant 0 : i32
    return %c0_i32, %c0_i32_0 : i32, i32
  }
  func.func @transform_3(%arg0: i32) -> (i32, i32) {
    %c0_i32 = arith.constant 0 : i32
    %c0_i32_0 = arith.constant 0 : i32
    %c0_i32_1 = arith.constant 0 : i32
    return %c0_i32, %c0_i32_0 : i32, i32
  }
  func.func @transform_4(%arg0: i32) -> (i32, i32) {
    %c0_i32 = arith.constant 0 : i32
    %c0_i32_0 = arith.constant 0 : i32
    %c0_i32_1 = arith.constant 0 : i32
    return %c0_i32, %c0_i32_0 : i32, i32
  }
  func.func @transform_5(%arg0: i32) -> (i32, i32) {
    %c0_i32 = arith.constant 0 : i32
    %c0_i32_0 = arith.constant 0 : i32
    %c0_i32_1 = arith.constant 0 : i32
    return %c0_i32, %c0_i32_0 : i32, i32
  }
  func.func @transform_6(%arg0: i32) -> (i32, i32) {
    %c0_i32 = arith.constant 0 : i32
    %c0_i32_0 = arith.constant 0 : i32
    return %arg0, %c0_i32 : i32, i32
  }
  func.func @transform_7(%arg0: i32) -> (i32, i32) {
    %c0_i32 = arith.constant 0 : i32
    %c0_i32_0 = arith.constant 0 : i32
    return %arg0, %c0_i32 : i32, i32
  }
}

</mosaic_0001>

<bundles_post_ra>
// kernel: tpu_custom_call.1
= control target key start
LH: loop header
LB: loop body
LE: loop exit
PB: predicated region body
PF: predicated region fallthrough
CT: control target
= control target key end

     0   :  { %13 = vsyncpa [#allocation3], 0  ;;  %s2809_s0 = inlined_call_operand.vmem [shape: bf16[256,128], index: 0, kind: input, shape index: {}]   ;;  %s2810_s1 = inlined_call_operand.vmem [shape: s32[256,1], index: 1, kind: input, shape index: {}]   ;;  %s2811_s2 = inlined_call_operand.vmem [shape: bf16[128,128], index: 2, kind: input, shape index: {}]   ;;  %s2812_s3 = inlined_call_operand.vmem [shape: f32[1,128], index: 3, kind: input, shape index: {}]   ;;  %s2813_s4 = inlined_call_operand.vmem [shape: bf16[128,128], index: 4, kind: input, shape index: {}]   ;;  %s2814_s5 = inlined_call_operand.vmem [shape: f32[1,128], index: 5, kind: input, shape index: {}]   ;;  %s2815_s6 = inlined_call_operand.hbm [shape: f32[256,128], index: 6, kind: output, shape index: {0}]   ;;  %s2816_s7 = inlined_call_operand.hbm [shape: f32[8,128], index: 7, kind: output, shape index: {1}]  }
   0x1   :  { %v1731_v0 = vld [vmem:[%s2811_s2] sm:$0xff]   ;;  %v1732_v1 = vld [vmem:[%s2811_s2 + $0x8] sm:$0xff]   ;;  %v1733_v2 = vld [vmem:[%s2811_s2 + $0x10] sm:$0xff]  }
   0x2   :  { %1625 = vmatprep.subr.bf16.mxu0 %v1731_v0  ;;  %v1734_v3 = vld [vmem:[%s2811_s2 + $0x18] sm:$0xff]   ;;  %v1739_v4 = vld [vmem:[%s2809_s0] sm:$0xff]   ;;  %v1736_v6 = vld [vmem:[%s2811_s2 + $0x28] sm:$0xff]  }
   0x3   :  { %1626 = vmatpush3.bf16.msra.mxu0 %v1731_v0  ;;  %1641 = vmatprep.mubr.bf16.mxu0 %v1739_v4  ;;  %v1735_v5 = vld [vmem:[%s2811_s2 + $0x20] sm:$0xff]   ;;  %v1737_v7 = vld [vmem:[%s2811_s2 + $0x30] sm:$0xff]   ;;  %v1738_v8 = vld [vmem:[%s2811_s2 + $0x38] sm:$0xff]  }
   0x4   :  { %1627 = vmatprep.subr.bf16.mxu0 %v1732_v1  ;;  %v1755_v9 = vld [vmem:[%s2813_s4] sm:$0xff]   ;;  %v1756_v10 = vld [vmem:[%s2813_s4 + $0x8] sm:$0xff]   ;;  %v1757_v11 = vld [vmem:[%s2813_s4 + $0x10] sm:$0xff]  }
   0x5   :  { %1673 = vmatprep.subr.bf16.mxu1 %v1755_v9  ;;  %v1740_v12 = vld [vmem:[%s2809_s0 + $0x8] sm:$0xff]   ;;  %v1741_v13 = vld [vmem:[%s2809_s0 + $0x10] sm:$0xff]  }
   0x6   :  { %1674 = vmatpush3.bf16.msra.mxu1 %v1755_v9 }
   0x7   :  { %1628 = vmatpush3.bf16.msra.mxu0 %v1732_v1  ;;  %1675 = vmatprep.subr.bf16.mxu1 %v1756_v10 }
   0x8   :  { %1629 = vmatprep.subr.bf16.mxu0 %v1733_v2 }
   0xa   :  { %1676 = vmatpush3.bf16.msra.mxu1 %v1756_v10 }
   0xb   :  { %1630 = vmatpush3.bf16.msra.mxu0 %v1733_v2 }
   0xc   :  { %1631 = vmatprep.subr.bf16.mxu0 %v1734_v3 }
   0xf   :  { %1632 = vmatpush3.bf16.msra.mxu0 %v1734_v3 }
  0x10   :  { %1633 = vmatprep.subr.bf16.mxu0 %v1735_v5 }
  0x13   :  { %1634 = vmatpush3.bf16.msra.mxu0 %v1735_v5 }
  0x14   :  { %1635 = vmatprep.subr.bf16.mxu0 %v1736_v6 }
  0x17   :  { %1636 = vmatpush3.bf16.msra.mxu0 %v1736_v6 }
  0x18   :  { %1637 = vmatprep.subr.bf16.mxu0 %v1737_v7 }
  0x1b   :  { %1638 = vmatpush3.bf16.msra.mxu0 %v1737_v7 }
  0x1c   :  { %1639 = vmatprep.subr.bf16.mxu0 %v1738_v8 }
  0x1f   :  { %1640 = vmatpush3.bf16.msra.mxu0 %v1738_v8 }
  0x20   :  { %14 = vsyncpa [#allocation5], 0  ;;  %1677 = vmatprep.subr.bf16.mxu1 %v1757_v11  ;;  %v1758_v14 = vld [vmem:[%s2813_s4 + $0x18] sm:$0xff]   ;;  %v1759_v15 = vld [vmem:[%s2813_s4 + $0x20] sm:$0xff]   ;;  %v1971_v32 = vmov 0  }
  0x21   :  { %1678 = vmatpush3.bf16.msra.mxu1 %v1757_v11  ;;  %v1742_v16 = vld [vmem:[%s2809_s0 + $0x18] sm:$0xff]   ;;  %v1743_v17 = vld [vmem:[%s2809_s0 + $0x20] sm:$0xff]   ;;  %v1760_v18 = vld [vmem:[%s2813_s4 + $0x28] sm:$0xff]   ;;  %1730 = vset.pattern.permute.xlu1 %v1971_v32 }
  0x22   :  { %1642 = vmatmul.mubr.bf16.vlgmr.msra.gmra.mrb[0].mxu0 %v1740_v12  ;;  %1679 = vmatprep.subr.bf16.mxu1 %v1758_v14  ;;  %v1744_v19 = vld [vmem:[%s2809_s0 + $0x28] sm:$0xff]   ;;  %v1745_v20 = vld [vmem:[%s2809_s0 + $0x30] sm:$0xff]   ;;  %v1746_v21 = vld [vmem:[%s2809_s0 + $0x38] sm:$0xff]  }
  0x23   :  { %1645 = vmatprep.mubr.bf16.mxu0 %v1741_v13  ;;  %v1747_v22 = vld [vmem:[%s2809_s0 + $0x40] sm:$0xff]   ;;  %v1748_v23 = vld [vmem:[%s2809_s0 + $0x48] sm:$0xff]   ;;  %v1749_v24 = vld [vmem:[%s2809_s0 + $0x50] sm:$0xff]   ;;  %1729 = vset.pattern.permute.xlu0 %v1971_v32 }
  0x24   :  { %v1750_v25 = vld [vmem:[%s2809_s0 + $0x58] sm:$0xff]   ;;  %v1751_v26 = vld [vmem:[%s2809_s0 + $0x60] sm:$0xff]   ;;  %v1752_v27 = vld [vmem:[%s2809_s0 + $0x68] sm:$0xff]  }
  0x25   :  { %1680 = vmatpush3.bf16.msra.mxu1 %v1758_v14  ;;  %v1753_v28 = vld [vmem:[%s2809_s0 + $0x70] sm:$0xff]   ;;  %v1754_v29 = vld [vmem:[%s2809_s0 + $0x78] sm:$0xff]   ;;  %v701_v33 = vld [vmem:[%s2810_s1 + $0x8] sm:$0xff] }
  0x26   :  { %1681 = vmatprep.subr.bf16.mxu1 %v1759_v15  ;;  %v1761_v30 = vld [vmem:[%s2813_s4 + $0x30] sm:$0xff]   ;;  %v1762_v31 = vld [vmem:[%s2813_s4 + $0x38] sm:$0xff]   ;;  %962 = vperm.xlu1 %1730, %v701_v33   ;;  %v705_v35 = vld [vmem:[%s2810_s1 + $0x28] sm:$0xff] }
  0x27   :  { %v703_v34 = vld [vmem:[%s2810_s1 + $0x18] sm:$0xff]  ;;  %v709_v37 = vld [vmem:[%s2810_s1 + $0x48] sm:$0xff]  ;;  %v700_v40 = vld [vmem:[%s2810_s1] sm:$0xff] }
  0x28   :  { %v707_v36 = vld [vmem:[%s2810_s1 + $0x38] sm:$0xff]  ;;  %v713_v39 = vld [vmem:[%s2810_s1 + $0x68] sm:$0xff]  ;;  %959 = vperm.xlu0 %1729, %v700_v40   ;;  %v702_v42 = vld [vmem:[%s2810_s1 + $0x10] sm:$0xff] }
  0x29   :  { %1682 = vmatpush3.bf16.msra.mxu1 %v1759_v15  ;;  %v711_v38 = vld [vmem:[%s2810_s1 + $0x58] sm:$0xff]  ;;  %v716_v43 = vld [vmem:[%s2810_s1 + $0x80] sm:$0xff]  ;;  %v717_v45 = vld [vmem:[%s2810_s1 + $0x88] sm:$0xff] }
  0x2a   :  { %1646 = vmatmul.mubr.bf16.gmra.mrb[4].mxu0 %v1742_v16  ;;  %1683 = vmatprep.subr.bf16.mxu1 %v1760_v18  ;;  %v715_v41 = vld [vmem:[%s2810_s1 + $0x78] sm:$0xff]  ;;  %v704_v44 = vld [vmem:[%s2810_s1 + $0x20] sm:$0xff]  ;;  %v706_v46 = vld [vmem:[%s2810_s1 + $0x30] sm:$0xff] }
  0x2b   :  { %1649 = vmatprep.mubr.bf16.mxu0 %v1743_v17  ;;  %968 = vperm.xlu1 %1730, %v703_v34   ;;  %v718_v47 = vld [vmem:[%s2810_s1 + $0x90] sm:$0xff]  ;;  %v708_v48 = vld [vmem:[%s2810_s1 + $0x40] sm:$0xff]  ;;  %v721_v51 = vld [vmem:[%s2810_s1 + $0xa8] sm:$0xff] }
  0x2c   :  { %965 = vperm.xlu0 %1729, %v702_v42   ;;  %v720_v49 = vld [vmem:[%s2810_s1 + $0xa0] sm:$0xff]  ;;  %v710_v50 = vld [vmem:[%s2810_s1 + $0x50] sm:$0xff]  ;;  %v723_v55 = vld [vmem:[%s2810_s1 + $0xb8] sm:$0xff] }
  0x2d   :  { %1684 = vmatpush3.bf16.msra.mxu1 %v1760_v18  ;;  %v712_v52 = vld [vmem:[%s2810_s1 + $0x60] sm:$0xff]  ;;  %v722_v53 = vld [vmem:[%s2810_s1 + $0xb0] sm:$0xff]  ;;  %v719_v56 = vld [vmem:[%s2810_s1 + $0x98] sm:$0xff] }
  0x2e   :  { %1685 = vmatprep.subr.bf16.mxu1 %v1761_v30  ;;  %v714_v54 = vld [vmem:[%s2810_s1 + $0x70] sm:$0xff]  ;;  %v724_v57 = vld [vmem:[%s2810_s1 + $0xc0] sm:$0xff]  ;;  %v725_v58 = vld [vmem:[%s2810_s1 + $0xc8] sm:$0xff] }
  0x2f   :  { %974 = vperm.xlu1 %1730, %v705_v35   ;;  %v726_v59 = vld [vmem:[%s2810_s1 + $0xd0] sm:$0xff]  ;;  %v727_v60 = vld [vmem:[%s2810_s1 + $0xd8] sm:$0xff]  ;;  %v729_v61 = vld [vmem:[%s2810_s1 + $0xe8] sm:$0xff] }
  0x30   :  { %971 = vperm.xlu0 %1729, %v704_v44   ;;  %v728_v62 = vld [vmem:[%s2810_s1 + $0xe0] sm:$0xff]  ;;  %v730_v63 = vld [vmem:[%s2810_s1 + $0xf0] sm:$0xff]  ;;  %v731_v0 = vld [vmem:[%s2810_s1 + $0xf8] sm:$0xff] }
  0x31   :  { %1686 = vmatpush3.bf16.msra.mxu1 %v1761_v30  ;;  %v2212_v1 = vld [vmem:[%s2812_s3] ss:$0 sm:$0xff] }
  0x32   :  { %1650 = vmatmul.mubr.bf16.gmra.mrb[8].mxu0 %v1744_v19  ;;  %1687 = vmatprep.subr.bf16.mxu1 %v1762_v31 }
  0x33   :  { %1653 = vmatprep.mubr.bf16.mxu0 %v1745_v20  ;;  %980 = vperm.xlu1 %1730, %v707_v36  }
  0x34   :  { %977 = vperm.xlu0 %1729, %v706_v46  }
  0x35   :  { %1688 = vmatpush3.bf16.msra.mxu1 %v1762_v31 }
  0x37   :  { %986 = vperm.xlu1 %1730, %v709_v37  }
  0x38   :  { %983 = vperm.xlu0 %1729, %v708_v48  }
  0x3a   :  { %1654 = vmatmul.mubr.bf16.gmra.mrb[12].mxu0 %v1746_v21 }
  0x3b   :  { %1657 = vmatprep.mubr.bf16.mxu0 %v1747_v22  ;;  %992 = vperm.xlu1 %1730, %v711_v38  }
  0x3c   :  { %989 = vperm.xlu0 %1729, %v710_v50  }
  0x3f   :  { %998 = vperm.xlu1 %1730, %v713_v39  }
  0x40   :  { %995 = vperm.xlu0 %1729, %v712_v52  }
  0x42   :  { %1658 = vmatmul.mubr.bf16.gmra.mrb[16].mxu0 %v1748_v23 }
  0x43   :  { %1661 = vmatprep.mubr.bf16.mxu0 %v1749_v24  ;;  %1004 = vperm.xlu1 %1730, %v715_v41  }
  0x44   :  { %1001 = vperm.xlu0 %1729, %v714_v54  }
  0x47   :  { %1007 = vperm.xlu1 %1730, %v716_v43  }
  0x48   :  { %1016 = vperm.xlu0 %1729, %v719_v56  }
  0x4a   :  { %1662 = vmatmul.mubr.bf16.gmra.mrb[20].mxu0 %v1750_v25 }
  0x4b   :  { %1665 = vmatprep.mubr.bf16.mxu0 %v1751_v26  ;;  %1010 = vperm.xlu1 %1730, %v717_v45  }
  0x4c   :  { %1034 = vperm.xlu0 %1729, %v725_v58  }
  0x4f   :  { %1013 = vperm.xlu1 %1730, %v718_v47  }
  0x50   :  { %1040 = vperm.xlu0 %1729, %v727_v60  }
  0x52   :  { %1666 = vmatmul.mubr.bf16.gmra.mrb[24].mxu0 %v1752_v27 }
  0x53   :  { %1669 = vmatprep.mubr.bf16.mxu0 %v1753_v28  ;;  %1019 = vperm.xlu1 %1730, %v720_v49  }
  0x54   :  { %1043 = vperm.xlu0 %1729, %v728_v62  }
  0x57   :  { %1022 = vperm.xlu1 %1730, %v721_v51  }
  0x58   :  { %1052 = vperm.xlu0 %1729, %v731_v0  }
  0x5a   :  { %1670 = vmatmul.mubr.bf16.gmra.mrb[28].mxu0 %v1754_v29 }
  0x5b   :  { %1025 = vperm.xlu1 %1730, %v722_v53  }
  0x5f   :  { %1028 = vperm.xlu1 %1730, %v723_v55  }
  0x63   :  { %1031 = vperm.xlu1 %1730, %v724_v57  }
  0x67   :  { %1037 = vperm.xlu1 %1730, %v726_v59  }
  0x6b   :  { %1046 = vperm.xlu1 %1730, %v729_v61  }
  0x6f   :  { %1049 = vperm.xlu1 %1730, %v730_v63  }
  0xf5   :  { %v1643_v2 = vpop.f32.mrb[0].mxu0 }
  0xf6   :  { %v270_v3 = vadd.f32 %v1643_v2, %v2212_v1  ;;  %v261_v4 = vpop.f32.mrb[1].mxu0 }
  0xf7   :  { %v262_v5 = vadd.f32 %v2212_v1, %v261_v4  ;;  %v1644_v6 = vpop.f32.mrb[2].mxu0 }
  0xf8   :  { %v273_v7 = vadd.f32 %v1644_v6, %v2212_v1  ;;  %v264_v8 = vpop.f32.mrb[3].mxu0  ;;  %v390_v10 = vmax.f32 %v270_v3, 0.0 }
  0xf9   :  { %v265_v9 = vadd.f32 %v2212_v1, %v264_v8  ;;  %v388_v12 = vmax.f32 %v262_v5, 0.0 }
  0xfa   :  { %v391_v11 = vmax.f32 %v273_v7, 0.0 }
  0xfb   :  { %v389_v13 = vmax.f32 %v265_v9, 0.0 }
  0xfc   :  { %v421_v14 = vpack.c.bf16 %v391_v11, %v390_v10 }
  0xfd   :  { %v1647_v15 = vpop.f32.mrb[4].mxu0  ;;  %v420_v16 = vpack.c.bf16 %v389_v13, %v388_v12 }
  0xfe   :  { %v286_v17 = vadd.f32 %v1647_v15, %v2212_v1  ;;  %v277_v18 = vpop.f32.mrb[5].mxu0 }
  0xff   :  { %v278_v19 = vadd.f32 %v2212_v1, %v277_v18  ;;  %v1648_v20 = vpop.f32.mrb[6].mxu0  ;;  %1689 = vmatprep.mubr.bf16.mxu1 %v420_v16 }
 0x100   :  { %v394_v21 = vmax.f32 %v286_v17, 0.0  ;;  %v289_v22 = vadd.f32 %v1648_v20, %v2212_v1  ;;  %v280_v23 = vpop.f32.mrb[7].mxu0  ;;  %1690 = vmatmul.mubr.bf16.vlgmr.msra.gmra.mrb[0].mxu1 %v421_v14 }
 0x101   :  { %v281_v24 = vadd.f32 %v2212_v1, %v280_v23  ;;  %v392_v26 = vmax.f32 %v278_v19, 0.0 }
 0x102   :  { %v395_v25 = vmax.f32 %v289_v22, 0.0 }
 0x103   :  { %v393_v27 = vmax.f32 %v281_v24, 0.0 }
 0x104   :  { %v423_v28 = vpack.c.bf16 %v395_v25, %v394_v21 }
 0x105   :  { %v422_v29 = vpack.c.bf16 %v393_v27, %v392_v26  ;;  %v1651_v30 = vpop.f32.mrb[8].mxu0 }
 0x106   :  { %v302_v31 = vadd.f32 %v1651_v30, %v2212_v1  ;;  %v293_v32 = vpop.f32.mrb[9].mxu0 }
 0x107   :  { %v294_v33 = vadd.f32 %v2212_v1, %v293_v32  ;;  %v1652_v34 = vpop.f32.mrb[10].mxu0  ;;  %1693 = vmatprep.mubr.bf16.mxu1 %v422_v29 }
 0x108   :  { %v398_v35 = vmax.f32 %v302_v31, 0.0  ;;  %v305_v36 = vadd.f32 %v1652_v34, %v2212_v1  ;;  %v296_v37 = vpop.f32.mrb[11].mxu0  ;;  %1694 = vmatmul.mubr.bf16.gmra.mrb[4].mxu1 %v423_v28 }
 0x109   :  { %v396_v38 = vmax.f32 %v294_v33, 0.0  ;;  %v297_v39 = vadd.f32 %v2212_v1, %v296_v37 }
 0x10a   :  { %v399_v40 = vmax.f32 %v305_v36, 0.0 }
 0x10b   :  { %v397_v41 = vmax.f32 %v297_v39, 0.0 }
 0x10c   :  { %v425_v42 = vpack.c.bf16 %v399_v40, %v398_v35 }
 0x10d   :  { %v424_v43 = vpack.c.bf16 %v397_v41, %v396_v38  ;;  %v1655_v44 = vpop.f32.mrb[12].mxu0 }
 0x10e   :  { %v318_v45 = vadd.f32 %v1655_v44, %v2212_v1  ;;  %v309_v46 = vpop.f32.mrb[13].mxu0 }
 0x10f   :  { %v310_v47 = vadd.f32 %v2212_v1, %v309_v46  ;;  %v1656_v48 = vpop.f32.mrb[14].mxu0  ;;  %1697 = vmatprep.mubr.bf16.mxu1 %v424_v43 }
 0x110   :  { %v402_v49 = vmax.f32 %v318_v45, 0.0  ;;  %v321_v50 = vadd.f32 %v1656_v48, %v2212_v1  ;;  %v312_v51 = vpop.f32.mrb[15].mxu0  ;;  %1698 = vmatmul.mubr.bf16.gmra.mrb[8].mxu1 %v425_v42 }
 0x111   :  { %v400_v52 = vmax.f32 %v310_v47, 0.0  ;;  %v313_v53 = vadd.f32 %v2212_v1, %v312_v51  ;;  %v2246_v51 = vpop.permute.xlu0 %959 }
 0x112   :  { %v403_v54 = vmax.f32 %v321_v50, 0.0 }
 0x113   :  { %v401_v55 = vmax.f32 %v313_v53, 0.0 }
 0x114   :  { %v427_v56 = vpack.c.bf16 %v403_v54, %v402_v49 }
 0x115   :  { %v426_v57 = vpack.c.bf16 %v401_v55, %v400_v52  ;;  %v1659_v58 = vpop.f32.mrb[16].mxu0  ;;  %v2248_v52 = vpop.permute.xlu0 %965 }
 0x116   :  { %v334_v59 = vadd.f32 %v1659_v58, %v2212_v1  ;;  %v325_v60 = vpop.f32.mrb[17].mxu0 }
 0x117   :  { %v326_v61 = vadd.f32 %v2212_v1, %v325_v60  ;;  %v1660_v62 = vpop.f32.mrb[18].mxu0  ;;  %1701 = vmatprep.mubr.bf16.mxu1 %v426_v57 }
 0x118   :  { %v406_v63 = vmax.f32 %v334_v59, 0.0  ;;  %v337_v0 = vadd.f32 %v1660_v62, %v2212_v1  ;;  %v328_v2 = vpop.f32.mrb[19].mxu0  ;;  %1702 = vmatmul.mubr.bf16.gmra.mrb[12].mxu1 %v427_v56 }
 0x119   :  { %v404_v3 = vmax.f32 %v326_v61, 0.0  ;;  %v329_v4 = vadd.f32 %v2212_v1, %v328_v2  ;;  %v2250_v53 = vpop.permute.xlu0 %971 }
 0x11a   :  { %v407_v5 = vmax.f32 %v337_v0, 0.0  ;;  %v2283_v0 = vld [vmem:[%s2814_s5] ss:$0 sm:$0xff] }
 0x11b   :  { %v405_v6 = vmax.f32 %v329_v4, 0.0 }
 0x11c   :  { %v429_v7 = vpack.c.bf16 %v407_v5, %v406_v63 }
 0x11d   :  { %v428_v8 = vpack.c.bf16 %v405_v6, %v404_v3  ;;  %v1663_v9 = vpop.f32.mrb[20].mxu0  ;;  %v2252_v54 = vpop.permute.xlu0 %977 }
 0x11e   :  { %v350_v10 = vadd.f32 %v1663_v9, %v2212_v1  ;;  %v341_v11 = vpop.f32.mrb[21].mxu0 }
 0x11f   :  { %v342_v12 = vadd.f32 %v2212_v1, %v341_v11  ;;  %v1664_v13 = vpop.f32.mrb[22].mxu0  ;;  %1705 = vmatprep.mubr.bf16.mxu1 %v428_v8 }
 0x120   :  { %v410_v14 = vmax.f32 %v350_v10, 0.0  ;;  %v353_v15 = vadd.f32 %v1664_v13, %v2212_v1  ;;  %v344_v16 = vpop.f32.mrb[23].mxu0  ;;  %1706 = vmatmul.mubr.bf16.gmra.mrb[16].mxu1 %v429_v7 }
 0x121   :  { %v408_v17 = vmax.f32 %v342_v12, 0.0  ;;  %v345_v18 = vadd.f32 %v2212_v1, %v344_v16  ;;  %v2254_v55 = vpop.permute.xlu0 %983 }
 0x122   :  { %v411_v19 = vmax.f32 %v353_v15, 0.0 }
 0x123   :  { %v409_v20 = vmax.f32 %v345_v18, 0.0 }
 0x124   :  { %v431_v21 = vpack.c.bf16 %v411_v19, %v410_v14 }
 0x125   :  { %v430_v22 = vpack.c.bf16 %v409_v20, %v408_v17  ;;  %v1667_v23 = vpop.f32.mrb[24].mxu0  ;;  %v2256_v56 = vpop.permute.xlu0 %989 }
 0x126   :  { %v366_v24 = vadd.f32 %v1667_v23, %v2212_v1  ;;  %v357_v25 = vpop.f32.mrb[25].mxu0 }
 0x127   :  { %v358_v26 = vadd.f32 %v2212_v1, %v357_v25  ;;  %v1668_v27 = vpop.f32.mrb[26].mxu0  ;;  %1709 = vmatprep.mubr.bf16.mxu1 %v430_v22 }
 0x128   :  { %v414_v28 = vmax.f32 %v366_v24, 0.0  ;;  %v369_v29 = vadd.f32 %v1668_v27, %v2212_v1  ;;  %v360_v30 = vpop.f32.mrb[27].mxu0  ;;  %1710 = vmatmul.mubr.bf16.gmra.mrb[20].mxu1 %v431_v21 }
 0x129   :  { %v412_v31 = vmax.f32 %v358_v26, 0.0  ;;  %v361_v32 = vadd.f32 %v2212_v1, %v360_v30  ;;  %v2258_v57 = vpop.permute.xlu0 %995 }
 0x12a   :  { %v415_v33 = vmax.f32 %v369_v29, 0.0 }
 0x12b   :  { %v413_v34 = vmax.f32 %v361_v32, 0.0 }
 0x12c   :  { %v433_v35 = vpack.c.bf16 %v415_v33, %v414_v28 }
 0x12d   :  { %v432_v36 = vpack.c.bf16 %v413_v34, %v412_v31  ;;  %v1671_v37 = vpop.f32.mrb[28].mxu0  ;;  %v2260_v58 = vpop.permute.xlu0 %1001 }
 0x12e   :  { %v382_v38 = vadd.f32 %v1671_v37, %v2212_v1  ;;  %v373_v39 = vpop.f32.mrb[29].mxu0  ;;  %v2363_v34 = vpop.permute.xlu1 %962 }
 0x12f   :  { %v374_v40 = vadd.f32 %v2212_v1, %v373_v39  ;;  %v1672_v41 = vpop.f32.mrb[30].mxu0  ;;  %1713 = vmatprep.mubr.bf16.mxu1 %v432_v36 }
 0x130   :  { %v418_v42 = vmax.f32 %v382_v38, 0.0  ;;  %v385_v43 = vadd.f32 %v1672_v41, %v2212_v1  ;;  %v376_v44 = vpop.f32.mrb[31].mxu0  ;;  %1714 = vmatmul.mubr.bf16.gmra.mrb[24].mxu1 %v433_v35 }
 0x131   :  { %v416_v45 = vmax.f32 %v374_v40, 0.0  ;;  %v377_v46 = vadd.f32 %v2212_v1, %v376_v44  ;;  %v956_v1 = vlaneseq  ;;  %v2264_v60 = vpop.permute.xlu0 %1016 }
 0x132   :  { %v419_v47 = vmax.f32 %v385_v43, 0.0  ;;  %v2384_v43 = vpop.permute.xlu1 %968 }
 0x133   :  { %v417_v48 = vmax.f32 %v377_v46, 0.0  ;;  %v2262_v59 = vand.u32 127, %v956_v1 }
 0x134   :  { %v435_v49 = vpack.c.bf16 %v419_v47, %v418_v42 }
 0x135   :  { %v434_v50 = vpack.c.bf16 %v417_v48, %v416_v45  ;;  %vm1073_vm0 = vcmp.eq.s32.totalorder %v2262_v59, %v2264_v60  ;;  %v2268_v61 = vpop.permute.xlu0 %1034  ;;  %vm1056_vm4 = vcmp.eq.s32.totalorder %v2262_v59, %v2248_v52  ;;  %vm1054_vm5 = vcmp.eq.s32.totalorder %v2262_v59, %v2246_v51 }
 0x136   :  { %2824 = vst [vmem:[#allocation8_spill] sm:$0xff] %v2268_v61  ;;  %vm1079_vm1 = vcmp.eq.s32.totalorder %v2262_v59, %v2268_v61  ;;  %v2399_v1 = vpop.permute.xlu1 %974  ;;  %vm1057_vm6 = vcmp.eq.s32.totalorder %v2262_v59, %v2384_v43  ;;  %vm1055_vm7 = vcmp.eq.s32.totalorder %v2262_v59, %v2363_v34  ;;  %vm1060_vm8 = vcmp.eq.s32.totalorder %v2262_v59, %v2252_v54 }
 0x137   :  { %1717 = vmatprep.mubr.bf16.mxu1 %v434_v50  ;;  %vm1058_vm10 = vcmp.eq.s32.totalorder %v2262_v59, %v2250_v53  ;;  %vm1059_vm11 = vcmp.eq.s32.totalorder %v2262_v59, %v2399_v1  ;;  %vm1064_vm12 = vcmp.eq.s32.totalorder %v2262_v59, %v2256_v56  ;;  %vm1062_vm13 = vcmp.eq.s32.totalorder %v2262_v59, %v2254_v55 }
 0x138   :  { %1718 = vmatmul.mubr.bf16.gmra.mrb[28].mxu1 %v435_v49 }
 0x139   :  { %v2272_v62 = vpop.permute.xlu0 %1040 }
 0x13a   :  { %2825 = vst [vmem:[#allocation9_spill] sm:$0xff] %v2272_v62  ;;  %vm1081_vm2 = vcmp.eq.s32.totalorder %v2262_v59, %v2272_v62 }
 0x13d   :  { %v2276_v63 = vpop.permute.xlu0 %1043 }
 0x13e   :  { %2826 = vst [vmem:[#allocation10_spill] sm:$0xff] %v2276_v63  ;;  %vm1082_vm3 = vcmp.eq.s32.totalorder %v2262_v59, %v2276_v63 }
 0x141   :  { %v2483_v63 = vpop.permute.xlu0 %1052 }
 0x142   :  { %2834 = vst [vmem:[#allocation18_spill] sm:$0xff] %v2483_v63 }
 0x1d3   :  { %v1691_v2 = vpop.f32.mrb[0].mxu1 }
 0x1d4   :  { %v2286_v3 = vadd.f32 %v1691_v2, %v2283_v0  ;;  %v541_v4 = vpop.f32.mrb[1].mxu1 }
 0x1d5   :  { %v2289_v5 = vadd.f32 %v2283_v0, %v541_v4  ;;  %v1692_v6 = vpop.f32.mrb[2].mxu1 }
 0x1d6   :  { %670 = vst [vmem:[#allocation2 + $0x10] sm:$0xff] %v2286_v3  ;;  %v2293_v7 = vadd.f32 %v1692_v6, %v2283_v0  ;;  %736 = vmax.xlane.f32.xlu1 %v2286_v3  ;;  %v544_v8 = vpop.f32.mrb[3].mxu1 }
 0x1d7   :  { %668 = vst [vmem:[#allocation2] sm:$0xff] %v2289_v5  ;;  %v2298_v9 = vadd.f32 %v2283_v0, %v544_v8  ;;  %732 = vmax.xlane.f32.xlu0 %v2289_v5 }
 0x1d8   :  { %671 = vst [vmem:[#allocation2 + $0x18] sm:$0xff] %v2293_v7 }
 0x1d9   :  { %669 = vst [vmem:[#allocation2 + $0x8] sm:$0xff] %v2298_v9 }
 0x1da   :  { %738 = vmax.xlane.f32.xlu1 %v2293_v7 }
 0x1db   :  { %v1695_v10 = vpop.f32.mrb[4].mxu1  ;;  %734 = vmax.xlane.f32.xlu0 %v2298_v9 }
 0x1dc   :  { %v2306_v11 = vadd.f32 %v1695_v10, %v2283_v0  ;;  %v557_v12 = vpop.f32.mrb[5].mxu1  ;;  %v2414_v10 = vpop.permute.xlu1 %980 }
 0x1dd   :  { %v2309_v13 = vadd.f32 %v2283_v0, %v557_v12  ;;  %v1696_v14 = vpop.f32.mrb[6].mxu1  ;;  %vm1061_vm9 = vcmp.eq.s32.totalorder %v2262_v59, %v2414_v10 }
 0x1de   :  { %674 = vst [vmem:[#allocation2 + $0x30] sm:$0xff] %v2306_v11  ;;  %v2313_v15 = vadd.f32 %v1696_v14, %v2283_v0  ;;  %v560_v16 = vpop.f32.mrb[7].mxu1 }
 0x1df   :  { %672 = vst [vmem:[#allocation2 + $0x20] sm:$0xff] %v2309_v13  ;;  %v2317_v17 = vadd.f32 %v2283_v0, %v560_v16  ;;  %744 = vmax.xlane.f32.xlu0 %v2306_v11 }
 0x1e0   :  { %675 = vst [vmem:[#allocation2 + $0x38] sm:$0xff] %v2313_v15  ;;  %746 = vmax.xlane.f32.xlu1 %v2313_v15 }
 0x1e1   :  { %673 = vst [vmem:[#allocation2 + $0x28] sm:$0xff] %v2317_v17 }
 0x1e3   :  { %v1699_v18 = vpop.f32.mrb[8].mxu1  ;;  %740 = vmax.xlane.f32.xlu0 %v2309_v13 }
 0x1e4   :  { %v2325_v19 = vadd.f32 %v1699_v18, %v2283_v0  ;;  %v573_v20 = vpop.f32.mrb[9].mxu1  ;;  %742 = vmax.xlane.f32.xlu1 %v2317_v17 }
 0x1e5   :  { %v2329_v21 = vadd.f32 %v2283_v0, %v573_v20  ;;  %v1700_v22 = vpop.f32.mrb[10].mxu1 }
 0x1e6   :  { %678 = vst [vmem:[#allocation2 + $0x50] sm:$0xff] %v2325_v19  ;;  %v2333_v23 = vadd.f32 %v1700_v22, %v2283_v0  ;;  %v576_v24 = vpop.f32.mrb[11].mxu1  ;;  %v2431_v22 = vpop.permute.xlu1 %986 }
 0x1e7   :  { %676 = vst [vmem:[#allocation2 + $0x40] sm:$0xff] %v2329_v21  ;;  %752 = vmax.xlane.f32.xlu0 %v2325_v19  ;;  %v2338_v25 = vadd.f32 %v2283_v0, %v576_v24  ;;  %vm1063_vm15 = vcmp.eq.s32.totalorder %v2262_v59, %v2431_v22 }
 0x1e8   :  { %679 = vst [vmem:[#allocation2 + $0x58] sm:$0xff] %v2333_v23  ;;  %754 = vmax.xlane.f32.xlu1 %v2333_v23 }
 0x1e9   :  { %677 = vst [vmem:[#allocation2 + $0x48] sm:$0xff] %v2338_v25 }
 0x1eb   :  { %v1703_v26 = vpop.f32.mrb[12].mxu1  ;;  %748 = vmax.xlane.f32.xlu0 %v2329_v21 }
 0x1ec   :  { %v2345_v27 = vadd.f32 %v1703_v26, %v2283_v0  ;;  %v589_v28 = vpop.f32.mrb[13].mxu1  ;;  %750 = vmax.xlane.f32.xlu1 %v2338_v25 }
 0x1ed   :  { %v2349_v29 = vadd.f32 %v2283_v0, %v589_v28  ;;  %v1704_v30 = vpop.f32.mrb[14].mxu1 }
 0x1ee   :  { %682 = vst [vmem:[#allocation2 + $0x70] sm:$0xff] %v2345_v27  ;;  %v2353_v31 = vadd.f32 %v1704_v30, %v2283_v0  ;;  %v592_v32 = vpop.f32.mrb[15].mxu1 }
 0x1ef   :  { %680 = vst [vmem:[#allocation2 + $0x60] sm:$0xff] %v2349_v29  ;;  %760 = vmax.xlane.f32.xlu0 %v2345_v27  ;;  %v2358_v33 = vadd.f32 %v2283_v0, %v592_v32 }
 0x1f0   :  { %683 = vst [vmem:[#allocation2 + $0x78] sm:$0xff] %v2353_v31  ;;  %762 = vmax.xlane.f32.xlu1 %v2353_v31 }
 0x1f1   :  { %681 = vst [vmem:[#allocation2 + $0x68] sm:$0xff] %v2358_v33 }
 0x1f3   :  { %v1707_v35 = vpop.f32.mrb[16].mxu1  ;;  %756 = vmax.xlane.f32.xlu0 %v2349_v29 }
 0x1f4   :  { %v2367_v36 = vadd.f32 %v1707_v35, %v2283_v0  ;;  %v605_v37 = vpop.f32.mrb[17].mxu1  ;;  %758 = vmax.xlane.f32.xlu1 %v2358_v33 }
 0x1f5   :  { %v2371_v38 = vadd.f32 %v2283_v0, %v605_v37  ;;  %v1708_v39 = vpop.f32.mrb[18].mxu1 }
 0x1f6   :  { %686 = vst [vmem:[#allocation2 + $0x90] sm:$0xff] %v2367_v36  ;;  %v2375_v40 = vadd.f32 %v1708_v39, %v2283_v0  ;;  %v608_v41 = vpop.f32.mrb[19].mxu1 }
 0x1f7   :  { %684 = vst [vmem:[#allocation2 + $0x80] sm:$0xff] %v2371_v38  ;;  %764 = vmax.xlane.f32.xlu0 %v2371_v38  ;;  %v2380_v42 = vadd.f32 %v2283_v0, %v608_v41  ;;  %v2452_v41 = vpop.permute.xlu1 %992 }
 0x1f8   :  { %687 = vst [vmem:[#allocation2 + $0x98] sm:$0xff] %v2375_v40  ;;  %768 = vmax.xlane.f32.xlu1 %v2367_v36  ;;  %vm1065_vm14 = vcmp.eq.s32.totalorder %v2262_v59, %v2452_v41 }
 0x1f9   :  { %685 = vst [vmem:[#allocation2 + $0x88] sm:$0xff] %v2380_v42 }
 0x1fb   :  { %v1711_v44 = vpop.f32.mrb[20].mxu1  ;;  %770 = vmax.xlane.f32.xlu0 %v2375_v40 }
 0x1fc   :  { %v2389_v45 = vadd.f32 %v1711_v44, %v2283_v0  ;;  %v621_v46 = vpop.f32.mrb[21].mxu1  ;;  %766 = vmax.xlane.f32.xlu1 %v2380_v42  ;;  %v2457_v44 = vpop.permute.xlu1 %998 }
 0x1fd   :  { %v2393_v47 = vadd.f32 %v2283_v0, %v621_v46  ;;  %v1712_v48 = vpop.f32.mrb[22].mxu1 }
 0x1fe   :  { %690 = vst [vmem:[#allocation2 + $0xb0] sm:$0xff] %v2389_v45  ;;  %v2397_v49 = vadd.f32 %v1712_v48, %v2283_v0  ;;  %v624_v50 = vpop.f32.mrb[23].mxu1 }
 0x1ff   :  { %688 = vst [vmem:[#allocation2 + $0xa0] sm:$0xff] %v2393_v47  ;;  %v2403_v2 = vadd.f32 %v2283_v0, %v624_v50 }
 0x200   :  { %691 = vst [vmem:[#allocation2 + $0xb8] sm:$0xff] %v2397_v49  ;;  %776 = vmax.xlane.f32.xlu1 %v2389_v45  ;;  %778 = vmax.xlane.f32.xlu0 %v2397_v49  ;;  %v2459_v46 = vpop.permute.xlu1 %1004 }
 0x201   :  { %689 = vst [vmem:[#allocation2 + $0xa8] sm:$0xff] %v2403_v2 }
 0x203   :  { %v1715_v4 = vpop.f32.mrb[24].mxu1 }
 0x204   :  { %v2410_v6 = vadd.f32 %v1715_v4, %v2283_v0  ;;  %v637_v8 = vpop.f32.mrb[25].mxu1  ;;  %772 = vmax.xlane.f32.xlu1 %v2393_v47  ;;  %774 = vmax.xlane.f32.xlu0 %v2403_v2 }
 0x205   :  { %v2417_v12 = vadd.f32 %v2283_v0, %v637_v8  ;;  %v1716_v14 = vpop.f32.mrb[26].mxu1 }
 0x206   :  { %694 = vst [vmem:[#allocation2 + $0xd0] sm:$0xff] %v2410_v6  ;;  %v2421_v16 = vadd.f32 %v1716_v14, %v2283_v0  ;;  %v640_v18 = vpop.f32.mrb[27].mxu1 }
 0x207   :  { %692 = vst [vmem:[#allocation2 + $0xc0] sm:$0xff] %v2417_v12  ;;  %v2425_v20 = vadd.f32 %v2283_v0, %v640_v18 }
 0x208   :  { %695 = vst [vmem:[#allocation2 + $0xd8] sm:$0xff] %v2421_v16  ;;  %784 = vmax.xlane.f32.xlu1 %v2410_v6  ;;  %786 = vmax.xlane.f32.xlu0 %v2421_v16 }
 0x209   :  { %693 = vst [vmem:[#allocation2 + $0xc8] sm:$0xff] %v2425_v20 }
 0x20b   :  { %v1719_v24 = vpop.f32.mrb[28].mxu1 }
 0x20c   :  { %v2434_v26 = vadd.f32 %v1719_v24, %v2283_v0  ;;  %v653_v28 = vpop.f32.mrb[29].mxu1  ;;  %780 = vmax.xlane.f32.xlu1 %v2417_v12  ;;  %782 = vmax.xlane.f32.xlu0 %v2425_v20 }
 0x20d   :  { %v2439_v30 = vadd.f32 %v2283_v0, %v653_v28  ;;  %v1720_v32 = vpop.f32.mrb[30].mxu1 }
 0x20e   :  { %2827 = vst [vmem:[#allocation11_spill] sm:$0xff] %v2434_v26  ;;  %698 = vst [vmem:[#allocation2 + $0xf0] sm:$0xff] %v2434_v26  ;;  %v2443_v35 = vadd.f32 %v1720_v32, %v2283_v0  ;;  %v656_v37 = vpop.f32.mrb[31].mxu1 }
 0x20f   :  { %2828 = vst [vmem:[#allocation12_spill] sm:$0xff] %v2439_v30  ;;  %696 = vst [vmem:[#allocation2 + $0xe0] sm:$0xff] %v2439_v30  ;;  %v2447_v39 = vadd.f32 %v2283_v0, %v656_v37  ;;  %v2461_v0 = vpop.permute.xlu1 %1007 }
 0x210   :  { %2829 = vst [vmem:[#allocation13_spill] sm:$0xff] %v2443_v35  ;;  %699 = vst [vmem:[#allocation2 + $0xf8] sm:$0xff] %v2443_v35  ;;  %792 = vmax.xlane.f32.xlu1 %v2434_v26  ;;  %794 = vmax.xlane.f32.xlu0 %v2443_v35 }
 0x211   :  { %2830 = vst [vmem:[#allocation14_spill] sm:$0xff] %v2447_v39  ;;  %697 = vst [vmem:[#allocation2 + $0xe8] sm:$0xff] %v2447_v39 }
 0x213   :  { %v2463_v48 = vpop.permute.xlu1 %1010 }
 0x214   :  { %788 = vmax.xlane.f32.xlu1 %v2439_v30  ;;  %790 = vmax.xlane.f32.xlu0 %v2447_v39 }
 0x217   :  { %v2465_v50 = vpop.permute.xlu1 %1013 }
 0x21b   :  { %v2467_v4 = vpop.permute.xlu1 %1019 }
 0x21f   :  { %v2469_v8 = vpop.permute.xlu1 %1022 }
 0x223   :  { %v2471_v14 = vpop.permute.xlu1 %1025 }
 0x227   :  { %v2473_v18 = vpop.permute.xlu1 %1028 }
 0x22b   :  { %v2475_v24 = vpop.permute.xlu1 %1031 }
 0x22f   :  { %v2477_v28 = vpop.permute.xlu1 %1037 }
 0x230   :  { %2831 = vst [vmem:[#allocation15_spill] sm:$0xff] %v2477_v28 }
 0x233   :  { %v2479_v32 = vpop.permute.xlu1 %1046 }
 0x234   :  { %2832 = vst [vmem:[#allocation16_spill] sm:$0xff] %v2479_v32 }
 0x237   :  { %v2481_v37 = vpop.permute.xlu1 %1049 }
 0x238   :  { %2833 = vst [vmem:[#allocation17_spill] sm:$0xff] %v2481_v37 }
 0x263   :  { %v737_v30 = vpop.xlane.xlu1 %736 }
 0x264   :  { %v798_v35 = vsub.f32 %v2286_v3, %v737_v30  ;;  %v733_v26 = vpop.xlane.xlu0 %732 }
 0x265   :  { %v796_v62 = vsub.f32 %v2289_v5, %v733_v26 }
 0x266   :  { %v1088_v39 = vsel %vm1056_vm4, %v798_v35, 0.0  ;;  %v832_v61 = vmul.f32 1.442695, %v798_v35  ;;  %vm1068_vm4 = vcmp.eq.s32.totalorder %v2262_v59, %v2260_v58 }
 0x267   :  { %v739_v28 = vpop.xlane.xlu1 %738  ;;  %1122 = vadd.xlane.f32.xlu1 %v1088_v39  ;;  %v1086_v32 = vsel %vm1054_vm5, %v796_v62, 0.0  ;;  %v828_v52 = vmul.f32 1.442695, %v796_v62  ;;  %vm1066_vm5 = vcmp.eq.s32.totalorder %v2262_v59, %v2258_v57 }
 0x268   :  { %v799_v37 = vsub.f32 %v2293_v7, %v739_v28  ;;  %1118 = vadd.xlane.f32.xlu0 %v1086_v32  ;;  %v735_v63 = vpop.xlane.xlu0 %734  ;;  %1763 = vpow2.f32 %v832_v61 }
 0x269   :  { %v797_v3 = vsub.f32 %v2298_v9, %v735_v63  ;;  %1765 = vpow2.f32 %v828_v52 }
 0x26a   :  { %v1089_v5 = vsel %vm1057_vm6, %v799_v37, 0.0  ;;  %v834_v30 = vmul.f32 1.442695, %v799_v37  ;;  %vm1069_vm6 = vcmp.eq.s32.totalorder %v2262_v59, %v2459_v46 }
 0x26b   :  { %1124 = vadd.xlane.f32.xlu1 %v1089_v5  ;;  %v1087_v7 = vsel %vm1055_vm7, %v797_v3, 0.0  ;;  %v830_v9 = vmul.f32 1.442695, %v797_v3  ;;  %vm1067_vm7 = vcmp.eq.s32.totalorder %v2262_v59, %v2457_v44 }
 0x26c   :  { %v745_v26 = vpop.xlane.xlu0 %744  ;;  %1767 = vpow2.f32 %v834_v30 }
 0x26d   :  { %v802_v51 = vsub.f32 %v2306_v11, %v745_v26  ;;  %v747_v39 = vpop.xlane.xlu1 %746  ;;  %1769 = vpow2.f32 %v830_v9 }
 0x26e   :  { %v803_v43 = vsub.f32 %v2313_v15, %v747_v39 }
 0x26f   :  { %1120 = vadd.xlane.f32.xlu1 %v1087_v7  ;;  %v1092_v63 = vsel %vm1060_vm8, %v802_v51, 0.0  ;;  %v840_v61 = vmul.f32 1.442695, %v802_v51  ;;  %vm1070_vm8 = vcmp.eq.s32.totalorder %v2262_v59, %v2461_v0 }
 0x270   :  { %1130 = vadd.xlane.f32.xlu0 %v1092_v63  ;;  %v741_v62 = vpop.xlane.xlu0 %740  ;;  %v1093_v15 = vsel %vm1061_vm9, %v803_v43, 0.0  ;;  %v842_v10 = vmul.f32 1.442695, %v803_v43  ;;  %vm1071_vm9 = vcmp.eq.s32.totalorder %v2262_v59, %v2463_v48 }
 0x271   :  { %v800_v11 = vsub.f32 %v2309_v13, %v741_v62  ;;  %v743_v35 = vpop.xlane.xlu1 %742  ;;  %1771 = vpow2.f32 %v840_v61 }
 0x272   :  { %v801_v54 = vsub.f32 %v2317_v17, %v743_v35  ;;  %v1764_v13 = vpop.eup %1763 }
 0x273   :  { %v1090_v34 = vsel %vm1058_vm10, %v800_v11, 0.0  ;;  %v836_v28 = vmul.f32 1.442695, %v800_v11  ;;  %v1766_v53 = vpop.eup %1765  ;;  %vm1072_vm10 = vcmp.eq.s32.totalorder %v2262_v59, %v2465_v50 }
 0x274   :  { %1132 = vadd.xlane.f32.xlu0 %v1093_v15  ;;  %1126 = vadd.xlane.f32.xlu1 %v1090_v34  ;;  %v1091_v32 = vsel %vm1059_vm11, %v801_v54, 0.0  ;;  %v753_v37 = vpop.xlane.xlu0 %752  ;;  %v838_v17 = vmul.f32 1.442695, %v801_v54  ;;  %vm1074_vm11 = vcmp.eq.s32.totalorder %v2262_v59, %v2467_v4 }
 0x275   :  { %1773 = vpow2.f32 %v836_v28  ;;  %v806_v5 = vsub.f32 %v2325_v19, %v753_v37  ;;  %v755_v51 = vpop.xlane.xlu1 %754 }
 0x276   :  { %v1768_v3 = vpop.eup %1767  ;;  %1775 = vpow2.f32 %v842_v10  ;;  %v807_v19 = vsub.f32 %v2333_v23, %v755_v51 }
 0x277   :  { %v1770_v52 = vpop.eup %1769  ;;  %1777 = vpow2.f32 %v838_v17  ;;  %v848_v1 = vmul.f32 1.442695, %v806_v5  ;;  %v1096_v43 = vsel %vm1064_vm12, %v806_v5, 0.0  ;;  %vm1076_vm12 = vcmp.eq.s32.totalorder %v2262_v59, %v2471_v14 }
 0x278   :  { %1128 = vadd.xlane.f32.xlu0 %v1091_v32  ;;  %896 = vadd.xlane.f32.xlu1 %v1764_v13  ;;  %v749_v26 = vpop.xlane.xlu0 %748  ;;  %v1097_v54 = vsel %vm1065_vm14, %v807_v19, 0.0  ;;  %vm1078_vm14 = vcmp.eq.s32.totalorder %v2262_v59, %v2475_v24 }
 0x279   :  { %v804_v39 = vsub.f32 %v2329_v21, %v749_v26  ;;  %1779 = vpow2.f32 %v848_v1  ;;  %v751_v9 = vpop.xlane.xlu1 %750  ;;  %v850_v21 = vmul.f32 1.442695, %v807_v19 }
 0x27a   :  { %v805_v56 = vsub.f32 %v2338_v25, %v751_v9 }
 0x27b   :  { %v1772_v30 = vpop.eup %1771  ;;  %v844_v63 = vmul.f32 1.442695, %v804_v39  ;;  %v1094_v61 = vsel %vm1062_vm13, %v804_v39, 0.0  ;;  %vm1077_vm13 = vcmp.eq.s32.totalorder %v2262_v59, %v2473_v18 }
 0x27c   :  { %898 = vadd.xlane.f32.xlu0 %v1768_v3  ;;  %892 = vadd.xlane.f32.xlu1 %v1766_v53  ;;  %v761_v11 = vpop.xlane.xlu0 %760  ;;  %v846_v23 = vmul.f32 1.442695, %v805_v56  ;;  %v1095_v13 = vsel %vm1063_vm15, %v805_v56, 0.0 }
 0x27d   :  { %1781 = vpow2.f32 %v844_v63  ;;  %v810_v55 = vsub.f32 %v2345_v27, %v761_v11  ;;  %v763_v15 = vpop.xlane.xlu1 %762 }
 0x27e   :  { %1783 = vpow2.f32 %v850_v21  ;;  %v811_v27 = vsub.f32 %v2353_v31, %v763_v15 }
 0x27f   :  { %v1774_v7 = vpop.eup %1773  ;;  %1785 = vpow2.f32 %v846_v23  ;;  %v856_v25 = vmul.f32 1.442695, %v810_v55  ;;  %v1100_v37 = vsel %vm1068_vm4, %v810_v55, 0.0 }
 0x280   :  { %894 = vadd.xlane.f32.xlu0 %v1770_v52  ;;  %904 = vadd.xlane.f32.xlu1 %v1772_v30  ;;  %v1776_v62 = vpop.eup %1775  ;;  %v757_v34 = vpop.xlane.xlu0 %756  ;;  %v1101_v52 = vsel %vm1069_vm6, %v811_v27, 0.0 }
 0x281   :  { %v1778_v35 = vpop.eup %1777  ;;  %v808_v41 = vsub.f32 %v2349_v29, %v757_v34  ;;  %v759_v10 = vpop.xlane.xlu1 %758  ;;  %1787 = vpow2.f32 %v856_v25  ;;  %v858_v29 = vmul.f32 1.442695, %v811_v27 }
 0x282   :  { %v809_v58 = vsub.f32 %v2358_v33, %v759_v10 }
 0x283   :  { %v1780_v28 = vpop.eup %1779  ;;  %v852_v22 = vmul.f32 1.442695, %v808_v41  ;;  %v1098_v3 = vsel %vm1066_vm5, %v808_v41, 0.0 }
 0x284   :  { %900 = vadd.xlane.f32.xlu1 %v1774_v7  ;;  %1138 = vadd.xlane.f32.xlu0 %v1096_v43  ;;  %v765_v26 = vpop.xlane.xlu0 %764  ;;  %v854_v31 = vmul.f32 1.442695, %v809_v58  ;;  %v1099_v33 = vsel %vm1067_vm7, %v809_v58, 0.0 }
 0x285   :  { %1789 = vpow2.f32 %v852_v22  ;;  %v769_v17 = vpop.xlane.xlu1 %768  ;;  %v812_v51 = vsub.f32 %v2371_v38, %v765_v26 }
 0x286   :  { %1791 = vpow2.f32 %v858_v29  ;;  %v814_v57 = vsub.f32 %v2367_v36, %v769_v17 }
 0x287   :  { %v1782_v32 = vpop.eup %1781  ;;  %1793 = vpow2.f32 %v854_v31  ;;  %v1102_v36 = vsel %vm1070_vm8, %v812_v51, 0.0  ;;  %v860_v44 = vmul.f32 1.442695, %v812_v51  ;;  %v2838_v51 = vld [vmem:[#allocation11_spill] sm:$0xff] }
 0x288   :  { %906 = vadd.xlane.f32.xlu1 %v1776_v62  ;;  %1134 = vadd.xlane.f32.xlu0 %v1094_v61  ;;  %v1784_v53 = vpop.eup %1783  ;;  %v864_v46 = vmul.f32 1.442695, %v814_v57  ;;  %v771_v39 = vpop.xlane.xlu0 %770  ;;  %v1104_v61 = vsel %vm1072_vm10, %v814_v57, 0.0 }
 0x289   :  { %v1786_v5 = vpop.eup %1785  ;;  %v767_v1 = vpop.xlane.xlu1 %766  ;;  %v815_v38 = vsub.f32 %v2375_v40, %v771_v39 }
 0x28a   :  { %v813_v43 = vsub.f32 %v2380_v42, %v767_v1  ;;  %1795 = vpow2.f32 %v864_v46  ;;  %v2839_v1 = vld [vmem:[#allocation16_spill] sm:$0xff] }
 0x28b   :  { %v1788_v30 = vpop.eup %1787  ;;  %1797 = vpow2.f32 %v860_v44  ;;  %v866_v0 = vmul.f32 1.442695, %v815_v38 }
 0x28c   :  { %902 = vadd.xlane.f32.xlu1 %v1778_v35  ;;  %1140 = vadd.xlane.f32.xlu0 %v1097_v54  ;;  %v1103_v9 = vsel %vm1071_vm9, %v813_v43, 0.0  ;;  %v862_v40 = vmul.f32 1.442695, %v813_v43  ;;  %v1105_v35 = vsel %vm1073_vm0, %v815_v38, 0.0  ;;  %vm1075_vm0 = vcmp.eq.s32.totalorder %v2262_v59, %v2469_v8  ;;  %v2841_v38 = vld [vmem:[#allocation12_spill] sm:$0xff] }
 0x28d   :  { %v777_v19 = vpop.xlane.xlu1 %776  ;;  %v779_v62 = vpop.xlane.xlu0 %778  ;;  %1799 = vpow2.f32 %v866_v0  ;;  %vm1406_vm9 = vcmask 7168  }
 0x28e   :  { %v818_v21 = vsub.f32 %v2389_v45, %v777_v19  ;;  %1801 = vpow2.f32 %v862_v40  ;;  %v819_v45 = vsub.f32 %v2397_v49, %v779_v62 }
 0x28f   :  { %v1790_v7 = vpop.eup %1789 }
 0x290   :  { %912 = vadd.xlane.f32.xlu1 %v1780_v28  ;;  %1136 = vadd.xlane.f32.xlu0 %v1095_v13  ;;  %v1792_v63 = vpop.eup %1791  ;;  %v872_v50 = vmul.f32 1.442695, %v818_v21  ;;  %v874_v4 = vmul.f32 1.442695, %v819_v45  ;;  %v1108_v25 = vsel %vm1076_vm12, %v818_v21, 0.0  ;;  %v1109_v27 = vsel %vm1077_vm13, %v819_v45, 0.0 }
 0x291   :  { %v1794_v42 = vpop.eup %1793  ;;  %v773_v11 = vpop.xlane.xlu1 %772  ;;  %v2845_v45 = vld [vmem:[#allocation17_spill] sm:$0xff] }
 0x292   :  { %v816_v56 = vsub.f32 %v2393_v47, %v773_v11  ;;  %v775_v54 = vpop.xlane.xlu0 %774  ;;  %1803 = vpow2.f32 %v872_v50  ;;  %vm1084_vm4 = vcmp.eq.s32.totalorder %v2262_v59, %v2845_v45 }
 0x293   :  { %v817_v55 = vsub.f32 %v2403_v2, %v775_v54  ;;  %v2843_v54 = vld [vmem:[#allocation15_spill] sm:$0xff] }
 0x294   :  { %908 = vadd.xlane.f32.xlu1 %v1782_v32  ;;  %1146 = vadd.xlane.f32.xlu0 %v1100_v37  ;;  %v1796_v48 = vpop.eup %1795  ;;  %v1106_v15 = vsel %vm1074_vm11, %v816_v56, 0.0  ;;  %v868_v47 = vmul.f32 1.442695, %v816_v56  ;;  %vm1080_vm15 = vcmp.eq.s32.totalorder %v2262_v59, %v2843_v54 }
 0x295   :  { %v1798_v23 = vpop.eup %1797  ;;  %v785_v60 = vpop.xlane.xlu1 %784  ;;  %v1107_v13 = vsel %vm1075_vm0, %v817_v55, 0.0  ;;  %v870_v49 = vmul.f32 1.442695, %v817_v55 }
 0x296   :  { %v787_v34 = vpop.xlane.xlu0 %786  ;;  %1805 = vpow2.f32 %v868_v47  ;;  %v2557_v37 = vsub.f32 %v2410_v6, %v785_v60 }
 0x297   :  { %v1800_v28 = vpop.eup %1799  ;;  %1807 = vpow2.f32 %v874_v4  ;;  %v823_v18 = vsub.f32 %v2421_v16, %v787_v34 }
 0x298   :  { %914 = vadd.xlane.f32.xlu1 %v1784_v53  ;;  %1142 = vadd.xlane.f32.xlu0 %v1098_v3  ;;  %v1802_v2 = vpop.eup %1801  ;;  %1809 = vpow2.f32 %v870_v49  ;;  %v880_v14 = vmul.f32 1.442695, %v2557_v37  ;;  %v1112_v50 = vsel %vm1080_vm15, %v2557_v37, 0.0 }
 0x299   :  { %v781_v41 = vpop.xlane.xlu1 %780  ;;  %v882_v24 = vmul.f32 1.442695, %v823_v18 }
 0x29a   :  { %v783_v32 = vpop.xlane.xlu0 %782  ;;  %v820_v10 = vsub.f32 %v2417_v12, %v781_v41  ;;  %1811 = vpow2.f32 %v880_v14 }
 0x29b   :  { %v821_v6 = vsub.f32 %v2425_v20, %v783_v32  ;;  %v2836_v20 = vld [vmem:[#allocation14_spill] sm:$0xff] }
 0x29c   :  { %910 = vadd.xlane.f32.xlu1 %v1786_v5  ;;  %1148 = vadd.xlane.f32.xlu0 %v1101_v52  ;;  %v1804_v8 = vpop.eup %1803  ;;  %v1110_v3 = vsel %vm1078_vm14, %v820_v10, 0.0  ;;  %v876_v12 = vmul.f32 1.442695, %v820_v10 }
 0x29d   :  { %v1111_v17 = vsel %vm1079_vm1, %v821_v6, 0.0  ;;  %v793_v5 = vpop.xlane.xlu1 %792  ;;  %v878_v16 = vmul.f32 1.442695, %v821_v6  ;;  %vm1083_vm1 = vcmp.eq.s32.totalorder %v2262_v59, %v2839_v1 }
 0x29e   :  { %v795_v22 = vpop.xlane.xlu0 %794  ;;  %1813 = vpow2.f32 %v876_v12  ;;  %v1892_v12 = vld [vmem:[%s2810_s1 + $0x18] sm:$0xff] }
 0x29f   :  { %1815 = vpow2.f32 %v882_v24  ;;  %vm1281_vm5 = vcmp.ne.s32.totalorder %v1892_v12, 4294967295  ;;  %v1893_v24 = vld [vmem:[%s2810_s1] sm:$0xff] }
 0x2a0   :  { %920 = vadd.xlane.f32.xlu1 %v1788_v30  ;;  %1144 = vadd.xlane.f32.xlu0 %v1099_v33  ;;  %v1806_v53 = vpop.eup %1805  ;;  %v1113_v30 = vsel %vm1081_vm2, %v823_v18, 0.0  ;;  %v826_v33 = vsub.f32 %v2838_v51, %v793_v5  ;;  %1817 = vpow2.f32 %v878_v16  ;;  %vm1278_vm6 = vcmp.ne.s32.totalorder %v1893_v24, 4294967295 }
 0x2a1   :  { %v1808_v29 = vpop.eup %1807  ;;  %v789_v46 = vpop.xlane.xlu1 %788 }
 0x2a2   :  { %v791_v52 = vpop.xlane.xlu0 %790  ;;  %v1810_v26 = vpop.eup %1809  ;;  %v888_v44 = vmul.f32 1.442695, %v826_v33  ;;  %v824_v19 = vsub.f32 %v2841_v38, %v789_v46  ;;  %v1116_v47 = vsel %vm1084_vm4, %v826_v33, 0.0 }
 0x2a3   :  { %v825_v31 = vsub.f32 %v2836_v20, %v791_v52 }
 0x2a4   :  { %916 = vadd.xlane.f32.xlu1 %v1790_v7  ;;  %1150 = vadd.xlane.f32.xlu0 %v1102_v36  ;;  %v1812_v39 = vpop.eup %1811  ;;  %v2840_v7 = vld [vmem:[#allocation13_spill] sm:$0xff]  ;;  %1819 = vpow2.f32 %v888_v44  ;;  %v884_v62 = vmul.f32 1.442695, %v824_v19  ;;  %v1114_v55 = vsel %vm1082_vm3, %v824_v19, 0.0 }
 0x2a5   :  { %v827_v43 = vsub.f32 %v2840_v7, %v795_v22  ;;  %v1115_v36 = vsel %vm1083_vm1, %v825_v31, 0.0 }
 0x2a6   :  { %1821 = vpow2.f32 %v884_v62 }
 0x2a7   :  { %v890_v40 = vmul.f32 1.442695, %v827_v43 }
 0x2a8   :  { %922 = vadd.xlane.f32.xlu1 %v1792_v63  ;;  %1152 = vadd.xlane.f32.xlu0 %v1103_v9  ;;  %v2842_v63 = vld [vmem:[#allocation18_spill] sm:$0xff]  ;;  %v1814_v9 = vpop.eup %1813 }
 0x2a9   :  { %vm1085_vm2 = vcmp.eq.s32.totalorder %v2262_v59, %v2842_v63 }
 0x2aa   :  { %v1117_v0 = vsel %vm1085_vm2, %v827_v43, 0.0  ;;  %v1895_v43 = vld [vmem:[%s2810_s1 + $0x20] sm:$0xff] }
 0x2ab   :  { %vm1282_vm8 = vcmp.ne.s32.totalorder %v1895_v43, 4294967295 }
 0x2ac   :  { %918 = vadd.xlane.f32.xlu1 %v1794_v42  ;;  %1154 = vadd.xlane.f32.xlu0 %v1104_v61  ;;  %v1816_v42 = vpop.eup %1815  ;;  %v886_v61 = vmul.f32 1.442695, %v825_v31  ;;  %v1894_v31 = vld [vmem:[%s2810_s1 + $0x8] sm:$0xff] }
 0x2ad   :  { %v1818_v11 = vpop.eup %1817  ;;  %vm1279_vm7 = vcmp.ne.s32.totalorder %v1894_v31, 4294967295 }
 0x2ae   :  { %1823 = vpow2.f32 %v886_v61  ;;  %v1820_v21 = vpop.eup %1819 }
 0x2af   :  { %1825 = vpow2.f32 %v890_v40 }
 0x2b0   :  { %928 = vadd.xlane.f32.xlu1 %v1796_v48  ;;  %1156 = vadd.xlane.f32.xlu0 %v1105_v35  ;;  %v1822_v48 = vpop.eup %1821 }
 0x2b4   :  { %924 = vadd.xlane.f32.xlu1 %v1798_v23  ;;  %1158 = vadd.xlane.f32.xlu0 %v1106_v15  ;;  %v1896_v23 = vld [vmem:[%s2810_s1 + $0x28] sm:$0xff] }
 0x2b5   :  { %vm1283_vm10 = vcmp.ne.s32.totalorder %v1896_v23, 4294967295 }
 0x2b8   :  { %930 = vadd.xlane.f32.xlu1 %v1800_v28  ;;  %1160 = vadd.xlane.f32.xlu0 %v1107_v13  ;;  %v1824_v56 = vpop.eup %1823 }
 0x2b9   :  { %v1826_v35 = vpop.eup %1825 }
 0x2bc   :  { %926 = vadd.xlane.f32.xlu1 %v1802_v2  ;;  %1162 = vadd.xlane.f32.xlu0 %v1108_v25 }
 0x2c0   :  { %936 = vadd.xlane.f32.xlu1 %v1804_v8  ;;  %1164 = vadd.xlane.f32.xlu0 %v1109_v27  ;;  %v1891_v8 = vld [vmem:[%s2810_s1 + $0x10] sm:$0xff] }
 0x2c1   :  { %vm1280_vm3 = vcmp.ne.s32.totalorder %v1891_v8, 4294967295 }
 0x2c4   :  { %932 = vadd.xlane.f32.xlu1 %v1806_v53  ;;  %1166 = vadd.xlane.f32.xlu0 %v1110_v3  ;;  %v1972_v53 = vmov 0.0  }
 0x2c5   :  { %v1547_v6 = vsel %vm1280_vm3, 1.0, %v1972_v53  ;;  %v1548_v20 = vsel %vm1281_vm5, 1.0, %v1972_v53  ;;  %v1545_v51 = vsel %vm1278_vm6, 1.0, %v1972_v53  ;;  %v1546_v7 = vsel %vm1279_vm7, 1.0, %v1972_v53 }
 0x2c8   :  { %938 = vadd.xlane.f32.xlu1 %v1808_v29  ;;  %1168 = vadd.xlane.f32.xlu0 %v1111_v17 }
 0x2cc   :  { %934 = vadd.xlane.f32.xlu1 %v1810_v26  ;;  %1172 = vadd.xlane.f32.xlu0 %v1113_v30 }
 0x2d0   :  { %944 = vadd.xlane.f32.xlu1 %v1812_v39  ;;  %1176 = vadd.xlane.f32.xlu0 %v1115_v36 }
 0x2d4   :  { %940 = vadd.xlane.f32.xlu1 %v1814_v9  ;;  %1180 = vadd.xlane.f32.xlu0 %v1117_v0  ;;  %v1549_v0 = vsel %vm1282_vm8, 1.0, %v1972_v53 }
 0x2d8   :  { %946 = vadd.xlane.f32.xlu1 %v1816_v42 }
 0x2dc   :  { %942 = vadd.xlane.f32.xlu1 %v1818_v11 }
 0x2e0   :  { %952 = vadd.xlane.f32.xlu1 %v1820_v21 }
 0x2e4   :  { %948 = vadd.xlane.f32.xlu1 %v1822_v48 }
 0x2e8   :  { %950 = vadd.xlane.f32.xlu1 %v1824_v56 }
 0x2ec   :  { %954 = vadd.xlane.f32.xlu1 %v1826_v35 }
 0x2f0   :  { %1170 = vadd.xlane.f32.xlu1 %v1112_v50 }
 0x2f4   :  { %v1123_v15 = vpop.xlane.xlu1 %1122  ;;  %1174 = vadd.xlane.f32.xlu1 %v1114_v55  ;;  %v1897_v55 = vld [vmem:[%s2810_s1 + $0x30] sm:$0xff] }
 0x2f5   :  { %v1119_v34 = vpop.xlane.xlu0 %1118  ;;  %vm1284_vm11 = vcmp.ne.s32.totalorder %v1897_v55, 4294967295 }
 0x2f8   :  { %v1125_v60 = vpop.xlane.xlu1 %1124  ;;  %1178 = vadd.xlane.f32.xlu1 %v1116_v47 }
 0x2fc   :  { %v1121_v28 = vpop.xlane.xlu1 %1120 }
 0x2fd   :  { %v2589_v13 = vpop.xlane.xlu0 %1130 }
 0x301   :  { %v2591_v4 = vpop.xlane.xlu1 %1126  ;;  %v2593_v2 = vpop.xlane.xlu0 %1132 }
 0x305   :  { %v897_v25 = vpop.xlane.xlu1 %896  ;;  %v2595_v41 = vpop.xlane.xlu0 %1128 }
 0x306   :  { %1827 = vlog2.f32 %v897_v25 }
 0x309   :  { %v893_v32 = vpop.xlane.xlu1 %892  ;;  %v899_v49 = vpop.xlane.xlu0 %898 }
 0x30a   :  { %1829 = vlog2.f32 %v893_v32 }
 0x30b   :  { %1831 = vlog2.f32 %v899_v49 }
 0x30d   :  { %v905_v59 = vpop.xlane.xlu1 %904  ;;  %v895_v37 = vpop.xlane.xlu0 %894 }
 0x30e   :  { %1833 = vlog2.f32 %v895_v37  ;;  %v1551_v37 = vsel %vm1284_vm11, 1.0, %v1972_v53 }
 0x310   :  { %v1828_v10 = vpop.eup %1827 }
 0x311   :  { %v1187_v27 = vmul.f32 0.6931472, %v1828_v10  ;;  %v901_v14 = vpop.xlane.xlu1 %900  ;;  %v2600_v22 = vpop.xlane.xlu0 %1138 }
 0x312   :  { %1835 = vlog2.f32 %v901_v14 }
 0x313   :  { %v1248_v3 = vsub.f32 %v1187_v27, %v1123_v15  ;;  %1837 = vlog2.f32 %v905_v59  ;;  %v1550_v59 = vsel %vm1283_vm10, 1.0, %v1972_v53 }
 0x314   :  { %v1830_v18 = vpop.eup %1829 }
 0x315   :  { %v1832_v29 = vpop.eup %1831  ;;  %v1376_v58 = vmul.f32 %v1547_v6, %v1248_v3  ;;  %v1183_v17 = vmul.f32 0.6931472, %v1830_v18  ;;  %v907_v5 = vpop.xlane.xlu1 %906 }
 0x316   :  { %v2606_v52 = vpop.xlane.xlu0 %1134  ;;  %v1189_v26 = vmul.f32 0.6931472, %v1832_v29  ;;  %1839 = vlog2.f32 %v907_v5  ;;  %v1899_v29 = vld [vmem:[%s2810_s1 + $0x40] sm:$0xff] }
 0x317   :  { %v1246_v57 = vsub.f32 %v1183_v17, %v1119_v34  ;;  %v1410_v50 = vsel %vm1406_vm9, %v1376_v58, 0.0  ;;  %vm1286_vm12 = vcmp.ne.s32.totalorder %v1899_v29, 4294967295 }
 0x318   :  { %v1249_v30 = vsub.f32 %v1189_v26, %v1125_v60  ;;  %v1834_v16 = vpop.eup %1833  ;;  %v1553_v31 = vsel %vm1286_vm12, 1.0, %v1972_v53 }
 0x319   :  { %v903_v33 = vpop.xlane.xlu1 %902  ;;  %v1185_v39 = vmul.f32 0.6931472, %v1834_v16  ;;  %v1374_v44 = vmul.f32 %v1545_v51, %v1246_v57 }
 0x31a   :  { %v2616_v1 = vpop.xlane.xlu0 %1140  ;;  %v1377_v46 = vmul.f32 %v1548_v20, %v1249_v30  ;;  %1841 = vlog2.f32 %v903_v33 }
 0x31b   :  { %v1247_v38 = vsub.f32 %v1185_v39, %v1121_v28  ;;  %v1407_v40 = vsel %vm1406_vm9, %v1374_v44, 0.0  ;;  %v1898_v28 = vld [vmem:[%s2810_s1 + $0x38] sm:$0xff]  ;;  %v1901_v44 = vld [vmem:[%s2810_s1 + $0x50] sm:$0xff] }
 0x31c   :  { %v1836_v36 = vpop.eup %1835  ;;  %v1412_v60 = vsel %vm1406_vm9, %v1377_v46, 0.0  ;;  %vm1285_vm0 = vcmp.ne.s32.totalorder %v1898_v28, 4294967295  ;;  %vm1288_vm14 = vcmp.ne.s32.totalorder %v1901_v44, 4294967295 }
 0x31d   :  { %v1191_v19 = vmul.f32 0.6931472, %v1836_v36  ;;  %v913_v63 = vpop.xlane.xlu1 %912  ;;  %v1838_v9 = vpop.eup %1837  ;;  %v1375_v62 = vmul.f32 %v1546_v7, %v1247_v38  ;;  %v1552_v6 = vsel %vm1285_vm0, 1.0, %v1972_v53  ;;  %v1900_v36 = vld [vmem:[%s2810_s1 + $0x48] sm:$0xff] }
 0x31e   :  { %v2623_v42 = vpop.xlane.xlu0 %1136  ;;  %v1195_v48 = vmul.f32 0.6931472, %v1838_v9  ;;  %vm1287_vm13 = vcmp.ne.s32.totalorder %v1900_v36, 4294967295  ;;  %v1902_v9 = vld [vmem:[%s2810_s1 + $0x58] sm:$0xff] }
 0x31f   :  { %v1250_v61 = vsub.f32 %v1191_v19, %v2591_v4  ;;  %v1408_v21 = vsel %vm1406_vm9, %v1375_v62, 0.0  ;;  %vm1289_vm1 = vcmp.ne.s32.totalorder %v1902_v9, 4294967295 }
 0x320   :  { %v1840_v11 = vpop.eup %1839  ;;  %v1409_v56 = vadd.f32 %v1408_v21, %v1407_v40  ;;  %v1252_v4 = vsub.f32 %v1195_v48, %v2589_v13  ;;  %v1555_v40 = vsel %vm1288_vm14, 1.0, %v1972_v53 }
 0x321   :  { %v1378_v35 = vmul.f32 %v1549_v0, %v1250_v61  ;;  %v909_v54 = vpop.xlane.xlu1 %908  ;;  %v1197_v45 = vmul.f32 0.6931472, %v1840_v11  ;;  %v1554_v11 = vsel %vm1287_vm13, 1.0, %v1972_v53 }
 0x322   :  { %1843 = vlog2.f32 %v909_v54  ;;  %v1411_v15 = vadd.f32 %v1410_v50, %v1409_v56  ;;  %v2636_v34 = vpop.xlane.xlu0 %1146  ;;  %v1380_v3 = vmul.f32 %v1551_v37, %v1252_v4 }
 0x323   :  { %1845 = vlog2.f32 %v913_v63  ;;  %v1414_v8 = vsel %vm1406_vm9, %v1378_v35, 0.0  ;;  %v1253_v27 = vsub.f32 %v1197_v45, %v2593_v2  ;;  %v1556_v35 = vsel %vm1289_vm1, 1.0, %v1972_v53 }
 0x324   :  { %v1842_v47 = vpop.eup %1841  ;;  %v1413_v25 = vadd.f32 %v1412_v60, %v1411_v15 }
 0x325   :  { %v1193_v32 = vmul.f32 0.6931472, %v1842_v47  ;;  %v915_v49 = vpop.xlane.xlu1 %914  ;;  %v1381_v58 = vmul.f32 %v1552_v6, %v1253_v27 }
 0x326   :  { %1847 = vlog2.f32 %v915_v49  ;;  %v1415_v10 = vadd.f32 %v1414_v8, %v1413_v25  ;;  %v2648_v12 = vpop.xlane.xlu0 %1142 }
 0x327   :  { %v1251_v14 = vsub.f32 %v1193_v32, %v2595_v41  ;;  %v1418_v41 = vsel %vm1406_vm9, %v1380_v3, 0.0  ;;  %v1420_v30 = vsel %vm1406_vm9, %v1381_v58, 0.0  ;;  %v1904_v3 = vld [vmem:[%s2810_s1 + $0x68] sm:$0xff] }
 0x328   :  { %vm1291_vm15 = vcmp.ne.s32.totalorder %v1904_v3, 4294967295 }
 0x329   :  { %v1379_v18 = vmul.f32 %v1550_v59, %v1251_v14  ;;  %v911_v13 = vpop.xlane.xlu1 %910 }
 0x32a   :  { %1849 = vlog2.f32 %v911_v13  ;;  %v2658_v46 = vpop.xlane.xlu0 %1148 }
 0x32b   :  { %v1416_v17 = vsel %vm1406_vm9, %v1379_v18, 0.0  ;;  %v1905_v18 = vld [vmem:[%s2810_s1 + $0x70] sm:$0xff] }
 0x32c   :  { %v1844_v5 = vpop.eup %1843  ;;  %v1417_v2 = vadd.f32 %v1416_v17, %v1415_v10  ;;  %vm1292_vm4 = vcmp.ne.s32.totalorder %v1905_v18, 4294967295  ;;  %v1906_v17 = vld [vmem:[%s2810_s1 + $0x78] sm:$0xff] }
 0x32d   :  { %v1199_v24 = vmul.f32 0.6931472, %v1844_v5  ;;  %v921_v26 = vpop.xlane.xlu1 %920  ;;  %v1846_v20 = vpop.eup %1845  ;;  %vm1293_vm3 = vcmp.ne.s32.totalorder %v1906_v17, 4294967295 }
 0x32e   :  { %v1419_v57 = vadd.f32 %v1418_v41, %v1417_v2  ;;  %v1203_v39 = vmul.f32 0.6931472, %v1846_v20  ;;  %v1145_v21 = vpop.xlane.xlu0 %1144 }
 0x32f   :  { %v1254_v16 = vsub.f32 %v1199_v24, %v2606_v52  ;;  %v1558_v24 = vsel %vm1291_vm15, 1.0, %v1972_v53 }
 0x330   :  { %v1848_v51 = vpop.eup %1847  ;;  %v1421_v33 = vadd.f32 %v1420_v30, %v1419_v57  ;;  %v1256_v0 = vsub.f32 %v1203_v39, %v2600_v22  ;;  %v1903_v22 = vld [vmem:[%s2810_s1 + $0x60] sm:$0xff]  ;;  %v1560_v57 = vsel %vm1293_vm3, 1.0, %v1972_v53 }
 0x331   :  { %v1382_v7 = vmul.f32 %v1553_v31, %v1254_v16  ;;  %v917_v43 = vpop.xlane.xlu1 %916  ;;  %v1205_v38 = vmul.f32 0.6931472, %v1848_v51  ;;  %vm1290_vm2 = vcmp.ne.s32.totalorder %v1903_v22, 4294967295 }
 0x332   :  { %1851 = vlog2.f32 %v917_v43  ;;  %v1384_v54 = vmul.f32 %v1555_v40, %v1256_v0  ;;  %v1151_v60 = vpop.xlane.xlu0 %1150  ;;  %v1557_v25 = vsel %vm1290_vm2, 1.0, %v1972_v53 }
 0x333   :  { %v1422_v52 = vsel %vm1406_vm9, %v1382_v7, 0.0  ;;  %1853 = vlog2.f32 %v921_v26  ;;  %v1257_v48 = vsub.f32 %v1205_v38, %v2616_v1  ;;  %v1559_v26 = vsel %vm1292_vm4, 1.0, %v1972_v53 }
 0x334   :  { %v1850_v19 = vpop.eup %1849  ;;  %v1423_v63 = vadd.f32 %v1422_v52, %v1421_v33  ;;  %v1426_v1 = vsel %vm1406_vm9, %v1384_v54, 0.0 }
 0x335   :  { %v1201_v62 = vmul.f32 0.6931472, %v1850_v19  ;;  %v923_v61 = vpop.xlane.xlu1 %922  ;;  %v1385_v55 = vmul.f32 %v1556_v35, %v1257_v48  ;;  %v1909_v35 = vld [vmem:[%s2810_s1 + $0x90] sm:$0xff] }
 0x336   :  { %1855 = vlog2.f32 %v923_v61  ;;  %v2684_v6 = vpop.xlane.xlu0 %1152  ;;  %vm1296_vm7 = vcmp.ne.s32.totalorder %v1909_v35, 4294967295 }
 0x337   :  { %v1255_v56 = vsub.f32 %v1201_v62, %v2623_v42  ;;  %v1428_v49 = vsel %vm1406_vm9, %v1385_v55, 0.0 }
 0x339   :  { %v1383_v50 = vmul.f32 %v1554_v11, %v1255_v56  ;;  %v919_v23 = vpop.xlane.xlu1 %918  ;;  %v1908_v56 = vld [vmem:[%s2810_s1 + $0x88] sm:$0xff] }
 0x33a   :  { %1857 = vlog2.f32 %v919_v23  ;;  %v1155_v30 = vpop.xlane.xlu0 %1154  ;;  %vm1295_vm6 = vcmp.ne.s32.totalorder %v1908_v56, 4294967295 }
 0x33b   :  { %v1424_v15 = vsel %vm1406_vm9, %v1383_v50, 0.0 }
 0x33c   :  { %v1852_v45 = vpop.eup %1851  ;;  %v1425_v47 = vadd.f32 %v1424_v15, %v1423_v63  ;;  %v1910_v15 = vld [vmem:[%s2810_s1 + $0x98] sm:$0xff] }
 0x33d   :  { %v1207_v42 = vmul.f32 0.6931472, %v1852_v45  ;;  %v929_v28 = vpop.xlane.xlu1 %928  ;;  %v1854_v4 = vpop.eup %1853  ;;  %vm1297_vm8 = vcmp.ne.s32.totalorder %v1910_v15, 4294967295 }
 0x33e   :  { %v1427_v32 = vadd.f32 %v1426_v1, %v1425_v47  ;;  %v1211_v10 = vmul.f32 0.6931472, %v1854_v4  ;;  %v1157_v9 = vpop.xlane.xlu0 %1156  ;;  %v1562_v1 = vsel %vm1295_vm6, 1.0, %v1972_v53 }
 0x33f   :  { %v1258_v59 = vsub.f32 %v1207_v42, %v2648_v12  ;;  %v1563_v42 = vsel %vm1296_vm7, 1.0, %v1972_v53 }
 0x340   :  { %v1856_v37 = vpop.eup %1855  ;;  %v1429_v8 = vadd.f32 %v1428_v49, %v1427_v32  ;;  %v1260_v5 = vsub.f32 %v1211_v10, %v2636_v34  ;;  %v1907_v34 = vld [vmem:[%s2810_s1 + $0x80] sm:$0xff] }
 0x341   :  { %v1386_v27 = vmul.f32 %v1557_v25, %v1258_v59  ;;  %v925_v14 = vpop.xlane.xlu1 %924  ;;  %v1213_v12 = vmul.f32 0.6931472, %v1856_v37  ;;  %vm1294_vm5 = vcmp.ne.s32.totalorder %v1907_v34, 4294967295  ;;  %v1564_v25 = vsel %vm1297_vm8, 1.0, %v1972_v53 }
 0x342   :  { %1859 = vlog2.f32 %v925_v14  ;;  %v1388_v16 = vmul.f32 %v1559_v26, %v1260_v5  ;;  %v1561_v19 = vsel %vm1294_vm5, 1.0, %v1972_v53  ;;  %v1159_v55 = vpop.xlane.xlu0 %1158 }
 0x343   :  { %v1430_v13 = vsel %vm1406_vm9, %v1386_v27, 0.0  ;;  %1861 = vlog2.f32 %v929_v28  ;;  %v1261_v20 = vsub.f32 %v1213_v12, %v2658_v46 }
 0x344   :  { %v1858_v29 = vpop.eup %1857  ;;  %v1431_v58 = vadd.f32 %v1430_v13, %v1429_v8  ;;  %v1434_v46 = vsel %vm1406_vm9, %v1388_v16, 0.0  ;;  %v1911_v8 = vld [vmem:[%s2810_s1 + $0xa0] sm:$0xff] }
 0x345   :  { %v1209_v2 = vmul.f32 0.6931472, %v1858_v29  ;;  %v931_v41 = vpop.xlane.xlu1 %930  ;;  %v1389_v39 = vmul.f32 %v1560_v57, %v1261_v20  ;;  %vm1298_vm10 = vcmp.ne.s32.totalorder %v1911_v8, 4294967295  ;;  %v1912_v57 = vld [vmem:[%s2810_s1 + $0xa8] sm:$0xff] }
 0x346   :  { %1863 = vlog2.f32 %v931_v41  ;;  %v1161_v37 = vpop.xlane.xlu0 %1160  ;;  %v1565_v29 = vsel %vm1298_vm10, 1.0, %v1972_v53  ;;  %vm1299_vm11 = vcmp.ne.s32.totalorder %v1912_v57, 4294967295 }
 0x347   :  { %v1259_v31 = vsub.f32 %v1209_v2, %v1145_v21  ;;  %v1436_v0 = vsel %vm1406_vm9, %v1389_v39, 0.0  ;;  %v1914_v39 = vld [vmem:[%s2810_s1 + $0xb8] sm:$0xff] }
 0x348   :  { %vm1301_vm12 = vcmp.ne.s32.totalorder %v1914_v39, 4294967295 }
 0x349   :  { %v1387_v51 = vmul.f32 %v1558_v24, %v1259_v31  ;;  %v927_v33 = vpop.xlane.xlu1 %926 }
 0x34a   :  { %1865 = vlog2.f32 %v927_v33  ;;  %v1163_v41 = vpop.xlane.xlu0 %1162 }
 0x34b   :  { %v1432_v7 = vsel %vm1406_vm9, %v1387_v51, 0.0 }
 0x34c   :  { %v1860_v43 = vpop.eup %1859  ;;  %v1433_v36 = vadd.f32 %v1432_v7, %v1431_v58 }
 0x34d   :  { %v1215_v44 = vmul.f32 0.6931472, %v1860_v43  ;;  %v937_v52 = vpop.xlane.xlu1 %936  ;;  %v1862_v38 = vpop.eup %1861 }
 0x34e   :  { %v1435_v63 = vadd.f32 %v1434_v46, %v1433_v36  ;;  %v1219_v40 = vmul.f32 0.6931472, %v1862_v38  ;;  %v1566_v46 = vsel %vm1299_vm11, 1.0, %v1972_v53 }
 0x34f   :  { %v1262_v62 = vsub.f32 %v1215_v44, %v1151_v60 }
 0x350   :  { %v1864_v61 = vpop.eup %1863  ;;  %v1437_v11 = vadd.f32 %v1436_v0, %v1435_v63  ;;  %v1264_v45 = vsub.f32 %v1219_v40, %v1155_v30  ;;  %v1913_v30 = vld [vmem:[%s2810_s1 + $0xb0] sm:$0xff]  ;;  %v1568_v63 = vsel %vm1301_vm12, 1.0, %v1972_v53 }
 0x351   :  { %v1390_v21 = vmul.f32 %v1561_v19, %v1262_v62  ;;  %v933_v48 = vpop.xlane.xlu1 %932  ;;  %v1221_v50 = vmul.f32 0.6931472, %v1864_v61  ;;  %vm1300_vm0 = vcmp.ne.s32.totalorder %v1913_v30, 4294967295  ;;  %v1915_v61 = vld [vmem:[%s2810_s1 + $0xc0] sm:$0xff] }
 0x352   :  { %1867 = vlog2.f32 %v933_v48  ;;  %v1392_v32 = vmul.f32 %v1563_v42, %v1264_v45  ;;  %v1567_v44 = vsel %vm1300_vm0, 1.0, %v1972_v53  ;;  %vm1302_vm13 = vcmp.ne.s32.totalorder %v1915_v61, 4294967295 }
 0x353   :  { %v1438_v54 = vsel %vm1406_vm9, %v1390_v21, 0.0  ;;  %1869 = vlog2.f32 %v937_v52  ;;  %v1265_v28 = vsub.f32 %v1221_v50, %v1157_v9  ;;  %v1165_v52 = vpop.xlane.xlu0 %1164  ;;  %v1569_v50 = vsel %vm1302_vm13, 1.0, %v1972_v53 }
 0x354   :  { %v1866_v23 = vpop.eup %1865  ;;  %v1439_v22 = vadd.f32 %v1438_v54, %v1437_v11  ;;  %v1442_v18 = vsel %vm1406_vm9, %v1392_v32, 0.0 }
 0x355   :  { %v1217_v47 = vmul.f32 0.6931472, %v1866_v23  ;;  %v939_v60 = vpop.xlane.xlu1 %938  ;;  %v1393_v10 = vmul.f32 %v1564_v25, %v1265_v28 }
 0x356   :  { %1871 = vlog2.f32 %v939_v60 }
 0x357   :  { %v1263_v4 = vsub.f32 %v1217_v47, %v2684_v6  ;;  %v1444_v17 = vsel %vm1406_vm9, %v1393_v10, 0.0  ;;  %v1167_v23 = vpop.xlane.xlu0 %1166 }
 0x359   :  { %v1391_v49 = vmul.f32 %v1562_v1, %v1263_v4  ;;  %v935_v59 = vpop.xlane.xlu1 %934  ;;  %v1916_v1 = vld [vmem:[%s2810_s1 + $0xc8] sm:$0xff] }
 0x35a   :  { %1873 = vlog2.f32 %v935_v59  ;;  %vm1303_vm14 = vcmp.ne.s32.totalorder %v1916_v1, 4294967295 }
 0x35b   :  { %v1440_v27 = vsel %vm1406_vm9, %v1391_v49, 0.0  ;;  %v1169_v4 = vpop.xlane.xlu0 %1168 }
 0x35c   :  { %v1868_v14 = vpop.eup %1867  ;;  %v1441_v3 = vadd.f32 %v1440_v27, %v1439_v22 }
 0x35d   :  { %v1223_v6 = vmul.f32 0.6931472, %v1868_v14  ;;  %v945_v13 = vpop.xlane.xlu1 %944  ;;  %v1870_v12 = vpop.eup %1869 }
 0x35e   :  { %v1443_v58 = vadd.f32 %v1442_v18, %v1441_v3  ;;  %v1227_v26 = vmul.f32 0.6931472, %v1870_v12  ;;  %v1917_v18 = vld [vmem:[%s2810_s1 + $0xd0] sm:$0xff] }
 0x35f   :  { %v1266_v5 = vsub.f32 %v1223_v6, %v1159_v55  ;;  %vm1304_vm1 = vcmp.ne.s32.totalorder %v1917_v18, 4294967295  ;;  %v1918_v6 = vld [vmem:[%s2810_s1 + $0xd8] sm:$0xff] }
 0x360   :  { %v1872_v2 = vpop.eup %1871  ;;  %v1445_v24 = vadd.f32 %v1444_v17, %v1443_v58  ;;  %v1268_v7 = vsub.f32 %v1227_v26, %v1163_v41  ;;  %vm1305_vm2 = vcmp.ne.s32.totalorder %v1918_v6, 4294967295  ;;  %v1571_v41 = vsel %vm1304_vm1, 1.0, %v1972_v53  ;;  %v1919_v26 = vld [vmem:[%s2810_s1 + $0xe0] sm:$0xff] }
 0x361   :  { %v1394_v20 = vmul.f32 %v1565_v29, %v1266_v5  ;;  %v941_v31 = vpop.xlane.xlu1 %940  ;;  %v1229_v51 = vmul.f32 0.6931472, %v1872_v2  ;;  %v1572_v2 = vsel %vm1305_vm2, 1.0, %v1972_v53  ;;  %vm1306_vm15 = vcmp.ne.s32.totalorder %v1919_v26, 4294967295 }
 0x362   :  { %1875 = vlog2.f32 %v941_v31  ;;  %v1396_v9 = vmul.f32 %v1567_v44, %v1268_v7  ;;  %v1920_v31 = vld [vmem:[%s2810_s1 + $0xe8] sm:$0xff]  ;;  %v1573_v7 = vsel %vm1306_vm15, 1.0, %v1972_v53 }
 0x363   :  { %v1446_v16 = vsel %vm1406_vm9, %v1394_v20, 0.0  ;;  %v1269_v38 = vsub.f32 %v1229_v51, %v1165_v52  ;;  %vm1307_vm4 = vcmp.ne.s32.totalorder %v1920_v31, 4294967295 }
 0x364   :  { %v1874_v33 = vpop.eup %1873  ;;  %v1447_v34 = vadd.f32 %v1446_v16, %v1445_v24  ;;  %v1450_v56 = vsel %vm1406_vm9, %v1396_v9, 0.0 }
 0x365   :  { %v1225_v43 = vmul.f32 0.6931472, %v1874_v33  ;;  %v947_v36 = vpop.xlane.xlu1 %946  ;;  %v1397_v11 = vmul.f32 %v1568_v63, %v1269_v38  ;;  %v1922_v38 = vld [vmem:[%s2810_s1 + $0xf8] sm:$0xff] }
 0x366   :  { %vm1309_vm5 = vcmp.ne.s32.totalorder %v1922_v38, 4294967295 }
 0x367   :  { %v1267_v19 = vsub.f32 %v1225_v43, %v1161_v37  ;;  %v1452_v55 = vsel %vm1406_vm9, %v1397_v11, 0.0  ;;  %v1570_v37 = vsel %vm1303_vm14, 1.0, %v1972_v53 }
 0x369   :  { %v1395_v0 = vmul.f32 %v1566_v46, %v1267_v19  ;;  %v943_v62 = vpop.xlane.xlu1 %942  ;;  %v1921_v46 = vld [vmem:[%s2810_s1 + $0xf0] sm:$0xff]  ;;  %s1973_s1 = smov [#allocation2]  }
 0x36a   :  { %1877 = vlog2.f32 %v943_v62  ;;  %vm1308_vm3 = vcmp.ne.s32.totalorder %v1921_v46, 4294967295  ;;  %s1486_s13 = sshll.u32 %s1973_s1, 4  ;;  %s1487_s13 = int_to_ptr.vmem [resolvable:$true] %s1486_s13 }
 0x36b   :  { %v1448_v40 = vsel %vm1406_vm9, %v1395_v0, 0.0  ;;  %1879 = vlog2.f32 %v947_v36  ;;  %v1574_v36 = vsel %vm1307_vm4, 1.0, %v1972_v53  ;;  %s1923_s14 = scalar_lea.vmem %s1487_s13, 4096  ;;  %p1928_p1 = scmp.lt.s32.totalorder %s1487_s13, %s1487_s13 }
 0x36c   :  { %v1876_v21 = vpop.eup %1875  ;;  %v1449_v48 = vadd.f32 %v1448_v40, %v1447_v34  ;;  %1881 = vlog2.f32 %v945_v13  ;;  %v1173_v13 = vpop.xlane.xlu0 %1172  ;;  %p1924_p0 = scmp.ne.s32.totalorder %s1487_s13, %s1923_s14  ;;  %p1929_p2 = scmp.lt.s32.totalorder %s1923_s14, %s1923_s14 }
 0x36d   :  { %v1231_v35 = vmul.f32 0.6931472, %v1876_v21  ;;  %v953_v54 = vpop.xlane.xlu1 %952 }
 0x36e   :  { %v1451_v22 = vadd.f32 %v1450_v56, %v1449_v48  ;;  %v1575_v48 = vsel %vm1308_vm3, 1.0, %v1972_v53  ;;  %p1930_p3 = por %p1929_p2, %p1928_p1 }
 0x36f   :  { %v1270_v15 = vsub.f32 %v1231_v35, %v1167_v23  ;;  %v1576_v35 = vsel %vm1309_vm5, 1.0, %v1972_v53 }
 0x370   :  { %v1453_v45 = vadd.f32 %v1452_v55, %v1451_v22  ;;  %v1177_v30 = vpop.xlane.xlu0 %1176  ;;  %p1931_p4 = pnand %p1930_p3, %p1924_p0 }
 0x371   :  { %v1398_v47 = vmul.f32 %v1569_v50, %v1270_v15  ;;  %v949_v60 = vpop.xlane.xlu1 %948 }
 0x372   :  { %1883 = vlog2.f32 %v949_v60 }
 0x373   :  { %v1454_v42 = vsel %vm1406_vm9, %v1398_v47, 0.0 }
 0x374   :  { %v1878_v28 = vpop.eup %1877  ;;  %v1455_v25 = vadd.f32 %v1454_v42, %v1453_v45 }
 0x375   :  { %v1880_v32 = vpop.eup %1879  ;;  %v1233_v49 = vmul.f32 0.6931472, %v1878_v28  ;;  %v951_v59 = vpop.xlane.xlu1 %950 }
 0x376   :  { %1885 = vlog2.f32 %v951_v59  ;;  %v1237_v10 = vmul.f32 0.6931472, %v1880_v32  ;;  %v1882_v27 = vpop.eup %1881 }
 0x377   :  { %v1271_v8 = vsub.f32 %v1233_v49, %v1169_v4  ;;  %1887 = vlog2.f32 %v953_v54  ;;  %v1235_v58 = vmul.f32 0.6931472, %v1882_v27  ;;  %v1181_v54 = vpop.xlane.xlu0 %1180 }
 0x378   :  { %v1273_v29 = vsub.f32 %v1237_v10, %v1173_v13 }
 0x379   :  { %v1399_v14 = vmul.f32 %v1570_v37, %v1271_v8  ;;  %v955_v3 = vpop.xlane.xlu1 %954 }
 0x37a   :  { %1889 = vlog2.f32 %v955_v3  ;;  %v1401_v16 = vmul.f32 %v1572_v2, %v1273_v29 }
 0x37b   :  { %v1456_v12 = vsel %vm1406_vm9, %v1399_v14, 0.0 }
 0x37c   :  { %v1457_v17 = vadd.f32 %v1456_v12, %v1455_v25  ;;  %v1884_v5 = vpop.eup %1883  ;;  %v1460_v62 = vsel %vm1406_vm9, %v1401_v16, 0.0 }
 0x37d   :  { %v1171_v24 = vpop.xlane.xlu1 %1170  ;;  %v1239_v33 = vmul.f32 0.6931472, %v1884_v5 }
 0x37e   :  { %v1272_v20 = vsub.f32 %v1235_v58, %v1171_v24 }
 0x380   :  { %v1886_v57 = vpop.eup %1885  ;;  %v1400_v51 = vmul.f32 %v1571_v41, %v1272_v20 }
 0x381   :  { %v1888_v34 = vpop.eup %1887  ;;  %v1241_v39 = vmul.f32 0.6931472, %v1886_v57  ;;  %v1175_v43 = vpop.xlane.xlu1 %1174 }
 0x382   :  { %v1458_v44 = vsel %vm1406_vm9, %v1400_v51, 0.0  ;;  %v1274_v52 = vsub.f32 %v1239_v33, %v1175_v43  ;;  %v1243_v61 = vmul.f32 0.6931472, %v1888_v34 }
 0x383   :  { %v1275_v19 = vsub.f32 %v1241_v39, %v1177_v30  ;;  %v1459_v63 = vadd.f32 %v1458_v44, %v1457_v17 }
 0x384   :  { %v1890_v9 = vpop.eup %1889  ;;  %v1402_v0 = vmul.f32 %v1573_v7, %v1274_v52 }
 0x385   :  { %v1403_v11 = vmul.f32 %v1574_v36, %v1275_v19  ;;  %v1245_v40 = vmul.f32 0.6931472, %v1890_v9  ;;  %v1461_v21 = vadd.f32 %v1460_v62, %v1459_v63  ;;  %v1179_v56 = vpop.xlane.xlu1 %1178 }
 0x386   :  { %v1462_v50 = vsel %vm1406_vm9, %v1402_v0, 0.0  ;;  %v1276_v23 = vsub.f32 %v1243_v61, %v1179_v56 }
 0x387   :  { %v1277_v22 = vsub.f32 %v1245_v40, %v1181_v54  ;;  %v1463_v55 = vadd.f32 %v1462_v50, %v1461_v21  ;;  %v1464_v15 = vsel %vm1406_vm9, %v1403_v11, 0.0 }
 0x388   :  { %v1404_v45 = vmul.f32 %v1575_v48, %v1276_v23 }
 0x389   :  { %v1465_v47 = vadd.f32 %v1464_v15, %v1463_v55  ;;  %v1405_v60 = vmul.f32 %v1576_v35, %v1277_v22 }
 0x38a   :  { %v1466_v1 = vsel %vm1406_vm9, %v1404_v45, 0.0 }
 0x38b   :  { %v1467_v42 = vadd.f32 %v1466_v1, %v1465_v47  ;;  %v1468_v28 = vsel %vm1406_vm9, %v1405_v60, 0.0 }
 0x38d   :  { %v1469_v4 = vadd.f32 %v1468_v28, %v1467_v42 }
 0x38f   :  { %1470 = vadd.xlane.f32.xlu1 %v1469_v4 }
 0x390   :  { %1934 = shalt.err (!%p1931_p4)
}
 0x391   :  { %s1935_s17 = scalar_lea.hbm %s2815_s6, 4096 }
 0x392   :  { %p1936_p5 = scmp.ne.s32.totalorder %s2815_s6, %s1935_s17  ;;  %p1939_p6 = scmp.lt.u32.totalorder %s1935_s17, %s2815_s6 }
 0x394   :  { %p1941_p7 = pnand %p1939_p6, %p1936_p5 }
 0x396   :  { %1944 = shalt.err (!%p1941_p7)
}
 0x397   :  { %s1974_s21 = smov 128   ;;  %s1975_s4 = smov 8  }
 0x398   :  { %1492 = dma.vmem_to_hbm [thread:$0]  %s1487_s13, 4096, %s2815_s6, [#allocation3], %s1974_s21, %s1974_s21, %s1975_s4  }
 0x399   :  { %s1976_s24 = smov [#allocation4]  }
 0x39a   :  { %s1499_s25 = sshll.u32 %s1976_s24, 4  ;;  %s1500_s25 = int_to_ptr.vmem [resolvable:$true] %s1499_s25 }
 0x39b   :  { %s1945_s26 = scalar_lea.vmem %s1500_s25, 128  ;;  %p1950_p9 = scmp.lt.s32.totalorder %s1500_s25, %s1500_s25 }
 0x39c   :  { %p1946_p8 = scmp.ne.s32.totalorder %s1500_s25, %s1945_s26  ;;  %p1951_p10 = scmp.lt.s32.totalorder %s1945_s26, %s1945_s26 }
 0x39e   :  { %p1952_p11 = por %p1951_p10, %p1950_p9 }
 0x3a0   :  { %p1953_p12 = pnand %p1952_p11, %p1946_p8 }
 0x41c   :  { %v1471_v53 = vpop.xlane.xlu1 %1470 }
 0x41d   :  { %v1472_v25 = vrot.slane %v1471_v53, 4 }
 0x41f   :  { %v1473_v32 = vadd.f32 %v1472_v25, %v1471_v53 }
 0x421   :  { %v1474_v49 = vrot.slane %v1473_v32, 2 }
 0x423   :  { %v1475_v59 = vadd.f32 %v1474_v49, %v1473_v32 }
 0x425   :  { %v1476_v37 = vrot.slane %v1475_v59, 1 }
 0x427   :  { %v1477_v8 = vadd.f32 %v1476_v37, %v1475_v59 }
 0x429   :  { %1721 = vpush %v1477_v8 }
 0x45a   :  { %s1722_s2 = spop %1721 }
 0x45b   :  { %v1479_v10 = vstv %s1722_s2 }
 0x45c   :  { %1480 = vst [vmem:[#allocation4] sm:$0xff] %v1479_v10 }
 0x45d   :  { %1956 = shalt.err (!%p1953_p12)
}
 0x45e   :  { %s1957_s3 = scalar_lea.hbm %s2816_s7, 128 }
 0x45f   :  { %p1958_p13 = scmp.ne.s32.totalorder %s2816_s7, %s1957_s3  ;;  %p1961_p0 = scmp.lt.u32.totalorder %s1957_s3, %s2816_s7 }
 0x461   :  { %p1963_p1 = pnand %p1961_p0, %p1958_p13 }
 0x463   :  { %1966 = shalt.err (!%p1963_p1)
}
 0x464   :  { %1502 = dma.vmem_to_hbm [thread:$0]  %s1500_s25, 128, %s2816_s7, [#allocation5]  }
 0x465   :  { %1967 = dma.done.wait [#allocation3], 4096  }
 0x466   :  { %1968 = vsyncadd [#allocation3], 4294963200 }
 0x467   :  { %1969 = dma.done.wait [#allocation5], 128  }
 0x468   :  { %1970 = vsyncadd [#allocation5], 4294967168 }
 0x469   :  { %1509 = vsyncpa [#allocation3], 1 }
 0x46a   :  { %1510 = vsyncpa [#allocation5], 1 }

// kernel: tpu_custom_call.1
= control target key start
LH: loop header
LB: loop body
LE: loop exit
PB: predicated region body
PF: predicated region fallthrough
CT: control target
= control target key end

     0   :  { %13 = vsyncpa [#allocation3], 0  ;;  %s2809_s0 = inlined_call_operand.vmem [shape: bf16[256,128], index: 0, kind: input, shape index: {}]   ;;  %s2810_s1 = inlined_call_operand.vmem [shape: s32[256,1], index: 1, kind: input, shape index: {}]   ;;  %s2811_s2 = inlined_call_operand.vmem [shape: bf16[128,128], index: 2, kind: input, shape index: {}]   ;;  %s2812_s3 = inlined_call_operand.vmem [shape: f32[1,128], index: 3, kind: input, shape index: {}]   ;;  %s2813_s4 = inlined_call_operand.vmem [shape: bf16[128,128], index: 4, kind: input, shape index: {}]   ;;  %s2814_s5 = inlined_call_operand.vmem [shape: f32[1,128], index: 5, kind: input, shape index: {}]   ;;  %s2815_s6 = inlined_call_operand.hbm [shape: f32[256,128], index: 6, kind: output, shape index: {0}]   ;;  %s2816_s7 = inlined_call_operand.hbm [shape: f32[8,128], index: 7, kind: output, shape index: {1}]  }
   0x1   :  { %v1731_v0 = vld [vmem:[%s2811_s2] sm:$0xff]   ;;  %v1732_v1 = vld [vmem:[%s2811_s2 + $0x8] sm:$0xff]   ;;  %v1733_v2 = vld [vmem:[%s2811_s2 + $0x10] sm:$0xff]  }
   0x2   :  { %1625 = vmatprep.subr.bf16.mxu0 %v1731_v0  ;;  %v1734_v3 = vld [vmem:[%s2811_s2 + $0x18] sm:$0xff]   ;;  %v1739_v4 = vld [vmem:[%s2809_s0] sm:$0xff]   ;;  %v1736_v6 = vld [vmem:[%s2811_s2 + $0x28] sm:$0xff]  }
   0x3   :  { %1626 = vmatpush3.bf16.msra.mxu0 %v1731_v0  ;;  %1641 = vmatprep.mubr.bf16.mxu0 %v1739_v4  ;;  %v1735_v5 = vld [vmem:[%s2811_s2 + $0x20] sm:$0xff]   ;;  %v1737_v7 = vld [vmem:[%s2811_s2 + $0x30] sm:$0xff]   ;;  %v1738_v8 = vld [vmem:[%s2811_s2 + $0x38] sm:$0xff]  }
   0x4   :  { %1627 = vmatprep.subr.bf16.mxu0 %v1732_v1  ;;  %v1755_v9 = vld [vmem:[%s2813_s4] sm:$0xff]   ;;  %v1756_v10 = vld [vmem:[%s2813_s4 + $0x8] sm:$0xff]   ;;  %v1757_v11 = vld [vmem:[%s2813_s4 + $0x10] sm:$0xff]  }
   0x5   :  { %1673 = vmatprep.subr.bf16.mxu1 %v1755_v9  ;;  %v1740_v12 = vld [vmem:[%s2809_s0 + $0x8] sm:$0xff]   ;;  %v1741_v13 = vld [vmem:[%s2809_s0 + $0x10] sm:$0xff]  }
   0x6   :  { %1674 = vmatpush3.bf16.msra.mxu1 %v1755_v9 }
   0x7   :  { %1628 = vmatpush3.bf16.msra.mxu0 %v1732_v1  ;;  %1675 = vmatprep.subr.bf16.mxu1 %v1756_v10 }
   0x8   :  { %1629 = vmatprep.subr.bf16.mxu0 %v1733_v2 }
   0xa   :  { %1676 = vmatpush3.bf16.msra.mxu1 %v1756_v10 }
   0xb   :  { %1630 = vmatpush3.bf16.msra.mxu0 %v1733_v2 }
   0xc   :  { %1631 = vmatprep.subr.bf16.mxu0 %v1734_v3 }
   0xf   :  { %1632 = vmatpush3.bf16.msra.mxu0 %v1734_v3 }
  0x10   :  { %1633 = vmatprep.subr.bf16.mxu0 %v1735_v5 }
  0x13   :  { %1634 = vmatpush3.bf16.msra.mxu0 %v1735_v5 }
  0x14   :  { %1635 = vmatprep.subr.bf16.mxu0 %v1736_v6 }
  0x17   :  { %1636 = vmatpush3.bf16.msra.mxu0 %v1736_v6 }
  0x18   :  { %1637 = vmatprep.subr.bf16.mxu0 %v1737_v7 }
  0x1b   :  { %1638 = vmatpush3.bf16.msra.mxu0 %v1737_v7 }
  0x1c   :  { %1639 = vmatprep.subr.bf16.mxu0 %v1738_v8 }
  0x1f   :  { %1640 = vmatpush3.bf16.msra.mxu0 %v1738_v8 }
  0x20   :  { %14 = vsyncpa [#allocation5], 0  ;;  %1677 = vmatprep.subr.bf16.mxu1 %v1757_v11  ;;  %v1758_v14 = vld [vmem:[%s2813_s4 + $0x18] sm:$0xff]   ;;  %v1759_v15 = vld [vmem:[%s2813_s4 + $0x20] sm:$0xff]   ;;  %v1971_v32 = vmov 0  }
  0x21   :  { %1678 = vmatpush3.bf16.msra.mxu1 %v1757_v11  ;;  %v1742_v16 = vld [vmem:[%s2809_s0 + $0x18] sm:$0xff]   ;;  %v1743_v17 = vld [vmem:[%s2809_s0 + $0x20] sm:$0xff]   ;;  %v1760_v18 = vld [vmem:[%s2813_s4 + $0x28] sm:$0xff]   ;;  %1730 = vset.pattern.permute.xlu1 %v1971_v32 }
  0x22   :  { %1642 = vmatmul.mubr.bf16.vlgmr.msra.gmra.mrb[0].mxu0 %v1740_v12  ;;  %1679 = vmatprep.subr.bf16.mxu1 %v1758_v14  ;;  %v1744_v19 = vld [vmem:[%s2809_s0 + $0x28] sm:$0xff]   ;;  %v1745_v20 = vld [vmem:[%s2809_s0 + $0x30] sm:$0xff]   ;;  %v1746_v21 = vld [vmem:[%s2809_s0 + $0x38] sm:$0xff]  }
  0x23   :  { %1645 = vmatprep.mubr.bf16.mxu0 %v1741_v13  ;;  %v1747_v22 = vld [vmem:[%s2809_s0 + $0x40] sm:$0xff]   ;;  %v1748_v23 = vld [vmem:[%s2809_s0 + $0x48] sm:$0xff]   ;;  %v1749_v24 = vld [vmem:[%s2809_s0 + $0x50] sm:$0xff]   ;;  %1729 = vset.pattern.permute.xlu0 %v1971_v32 }
  0x24   :  { %v1750_v25 = vld [vmem:[%s2809_s0 + $0x58] sm:$0xff]   ;;  %v1751_v26 = vld [vmem:[%s2809_s0 + $0x60] sm:$0xff]   ;;  %v1752_v27 = vld [vmem:[%s2809_s0 + $0x68] sm:$0xff]  }
  0x25   :  { %1680 = vmatpush3.bf16.msra.mxu1 %v1758_v14  ;;  %v1753_v28 = vld [vmem:[%s2809_s0 + $0x70] sm:$0xff]   ;;  %v1754_v29 = vld [vmem:[%s2809_s0 + $0x78] sm:$0xff]   ;;  %v701_v33 = vld [vmem:[%s2810_s1 + $0x8] sm:$0xff] }
  0x26   :  { %1681 = vmatprep.subr.bf16.mxu1 %v1759_v15  ;;  %v1761_v30 = vld [vmem:[%s2813_s4 + $0x30] sm:$0xff]   ;;  %v1762_v31 = vld [vmem:[%s2813_s4 + $0x38] sm:$0xff]   ;;  %962 = vperm.xlu1 %1730, %v701_v33   ;;  %v705_v35 = vld [vmem:[%s2810_s1 + $0x28] sm:$0xff] }
  0x27   :  { %v703_v34 = vld [vmem:[%s2810_s1 + $0x18] sm:$0xff]  ;;  %v709_v37 = vld [vmem:[%s2810_s1 + $0x48] sm:$0xff]  ;;  %v700_v40 = vld [vmem:[%s2810_s1] sm:$0xff] }
  0x28   :  { %v707_v36 = vld [vmem:[%s2810_s1 + $0x38] sm:$0xff]  ;;  %v713_v39 = vld [vmem:[%s2810_s1 + $0x68] sm:$0xff]  ;;  %959 = vperm.xlu0 %1729, %v700_v40   ;;  %v702_v42 = vld [vmem:[%s2810_s1 + $0x10] sm:$0xff] }
  0x29   :  { %1682 = vmatpush3.bf16.msra.mxu1 %v1759_v15  ;;  %v711_v38 = vld [vmem:[%s2810_s1 + $0x58] sm:$0xff]  ;;  %v716_v43 = vld [vmem:[%s2810_s1 + $0x80] sm:$0xff]  ;;  %v717_v45 = vld [vmem:[%s2810_s1 + $0x88] sm:$0xff] }
  0x2a   :  { %1646 = vmatmul.mubr.bf16.gmra.mrb[4].mxu0 %v1742_v16  ;;  %1683 = vmatprep.subr.bf16.mxu1 %v1760_v18  ;;  %v715_v41 = vld [vmem:[%s2810_s1 + $0x78] sm:$0xff]  ;;  %v704_v44 = vld [vmem:[%s2810_s1 + $0x20] sm:$0xff]  ;;  %v706_v46 = vld [vmem:[%s2810_s1 + $0x30] sm:$0xff] }
  0x2b   :  { %1649 = vmatprep.mubr.bf16.mxu0 %v1743_v17  ;;  %968 = vperm.xlu1 %1730, %v703_v34   ;;  %v718_v47 = vld [vmem:[%s2810_s1 + $0x90] sm:$0xff]  ;;  %v708_v48 = vld [vmem:[%s2810_s1 + $0x40] sm:$0xff]  ;;  %v721_v51 = vld [vmem:[%s2810_s1 + $0xa8] sm:$0xff] }
  0x2c   :  { %965 = vperm.xlu0 %1729, %v702_v42   ;;  %v720_v49 = vld [vmem:[%s2810_s1 + $0xa0] sm:$0xff]  ;;  %v710_v50 = vld [vmem:[%s2810_s1 + $0x50] sm:$0xff]  ;;  %v723_v55 = vld [vmem:[%s2810_s1 + $0xb8] sm:$0xff] }
  0x2d   :  { %1684 = vmatpush3.bf16.msra.mxu1 %v1760_v18  ;;  %v712_v52 = vld [vmem:[%s2810_s1 + $0x60] sm:$0xff]  ;;  %v722_v53 = vld [vmem:[%s2810_s1 + $0xb0] sm:$0xff]  ;;  %v719_v56 = vld [vmem:[%s2810_s1 + $0x98] sm:$0xff] }
  0x2e   :  { %1685 = vmatprep.subr.bf16.mxu1 %v1761_v30  ;;  %v714_v54 = vld [vmem:[%s2810_s1 + $0x70] sm:$0xff]  ;;  %v724_v57 = vld [vmem:[%s2810_s1 + $0xc0] sm:$0xff]  ;;  %v725_v58 = vld [vmem:[%s2810_s1 + $0xc8] sm:$0xff] }
  0x2f   :  { %974 = vperm.xlu1 %1730, %v705_v35   ;;  %v726_v59 = vld [vmem:[%s2810_s1 + $0xd0] sm:$0xff]  ;;  %v727_v60 = vld [vmem:[%s2810_s1 + $0xd8] sm:$0xff]  ;;  %v729_v61 = vld [vmem:[%s2810_s1 + $0xe8] sm:$0xff] }
  0x30   :  { %971 = vperm.xlu0 %1729, %v704_v44   ;;  %v728_v62 = vld [vmem:[%s2810_s1 + $0xe0] sm:$0xff]  ;;  %v730_v63 = vld [vmem:[%s2810_s1 + $0xf0] sm:$0xff]  ;;  %v731_v0 = vld [vmem:[%s2810_s1 + $0xf8] sm:$0xff] }
  0x31   :  { %1686 = vmatpush3.bf16.msra.mxu1 %v1761_v30  ;;  %v2212_v1 = vld [vmem:[%s2812_s3] ss:$0 sm:$0xff] }
  0x32   :  { %1650 = vmatmul.mubr.bf16.gmra.mrb[8].mxu0 %v1744_v19  ;;  %1687 = vmatprep.subr.bf16.mxu1 %v1762_v31 }
  0x33   :  { %1653 = vmatprep.mubr.bf16.mxu0 %v1745_v20  ;;  %980 = vperm.xlu1 %1730, %v707_v36  }
  0x34   :  { %977 = vperm.xlu0 %1729, %v706_v46  }
  0x35   :  { %1688 = vmatpush3.bf16.msra.mxu1 %v1762_v31 }
  0x37   :  { %986 = vperm.xlu1 %1730, %v709_v37  }
  0x38   :  { %983 = vperm.xlu0 %1729, %v708_v48  }
  0x3a   :  { %1654 = vmatmul.mubr.bf16.gmra.mrb[12].mxu0 %v1746_v21 }
  0x3b   :  { %1657 = vmatprep.mubr.bf16.mxu0 %v1747_v22  ;;  %992 = vperm.xlu1 %1730, %v711_v38  }
  0x3c   :  { %989 = vperm.xlu0 %1729, %v710_v50  }
  0x3f   :  { %998 = vperm.xlu1 %1730, %v713_v39  }
  0x40   :  { %995 = vperm.xlu0 %1729, %v712_v52  }
  0x42   :  { %1658 = vmatmul.mubr.bf16.gmra.mrb[16].mxu0 %v1748_v23 }
  0x43   :  { %1661 = vmatprep.mubr.bf16.mxu0 %v1749_v24  ;;  %1004 = vperm.xlu1 %1730, %v715_v41  }
  0x44   :  { %1001 = vperm.xlu0 %1729, %v714_v54  }
  0x47   :  { %1007 = vperm.xlu1 %1730, %v716_v43  }
  0x48   :  { %1016 = vperm.xlu0 %1729, %v719_v56  }
  0x4a   :  { %1662 = vmatmul.mubr.bf16.gmra.mrb[20].mxu0 %v1750_v25 }
  0x4b   :  { %1665 = vmatprep.mubr.bf16.mxu0 %v1751_v26  ;;  %1010 = vperm.xlu1 %1730, %v717_v45  }
  0x4c   :  { %1034 = vperm.xlu0 %1729, %v725_v58  }
  0x4f   :  { %1013 = vperm.xlu1 %1730, %v718_v47  }
  0x50   :  { %1040 = vperm.xlu0 %1729, %v727_v60  }
  0x52   :  { %1666 = vmatmul.mubr.bf16.gmra.mrb[24].mxu0 %v1752_v27 }
  0x53   :  { %1669 = vmatprep.mubr.bf16.mxu0 %v1753_v28  ;;  %1019 = vperm.xlu1 %1730, %v720_v49  }
  0x54   :  { %1043 = vperm.xlu0 %1729, %v728_v62  }
  0x57   :  { %1022 = vperm.xlu1 %1730, %v721_v51  }
  0x58   :  { %1052 = vperm.xlu0 %1729, %v731_v0  }
  0x5a   :  { %1670 = vmatmul.mubr.bf16.gmra.mrb[28].mxu0 %v1754_v29 }
  0x5b   :  { %1025 = vperm.xlu1 %1730, %v722_v53  }
  0x5f   :  { %1028 = vperm.xlu1 %1730, %v723_v55  }
  0x63   :  { %1031 = vperm.xlu1 %1730, %v724_v57  }
  0x67   :  { %1037 = vperm.xlu1 %1730, %v726_v59  }
  0x6b   :  { %1046 = vperm.xlu1 %1730, %v729_v61  }
  0x6f   :  { %1049 = vperm.xlu1 %1730, %v730_v63  }
  0xf5   :  { %v1643_v2 = vpop.f32.mrb[0].mxu0 }
  0xf6   :  { %v270_v3 = vadd.f32 %v1643_v2, %v2212_v1  ;;  %v261_v4 = vpop.f32.mrb[1].mxu0 }
  0xf7   :  { %v262_v5 = vadd.f32 %v2212_v1, %v261_v4  ;;  %v1644_v6 = vpop.f32.mrb[2].mxu0 }
  0xf8   :  { %v273_v7 = vadd.f32 %v1644_v6, %v2212_v1  ;;  %v264_v8 = vpop.f32.mrb[3].mxu0  ;;  %v390_v10 = vmax.f32 %v270_v3, 0.0 }
  0xf9   :  { %v265_v9 = vadd.f32 %v2212_v1, %v264_v8  ;;  %v388_v12 = vmax.f32 %v262_v5, 0.0 }
  0xfa   :  { %v391_v11 = vmax.f32 %v273_v7, 0.0 }
  0xfb   :  { %v389_v13 = vmax.f32 %v265_v9, 0.0 }
  0xfc   :  { %v421_v14 = vpack.c.bf16 %v391_v11, %v390_v10 }
  0xfd   :  { %v1647_v15 = vpop.f32.mrb[4].mxu0  ;;  %v420_v16 = vpack.c.bf16 %v389_v13, %v388_v12 }
  0xfe   :  { %v286_v17 = vadd.f32 %v1647_v15, %v2212_v1  ;;  %v277_v18 = vpop.f32.mrb[5].mxu0 }
  0xff   :  { %v278_v19 = vadd.f32 %v2212_v1, %v277_v18  ;;  %v1648_v20 = vpop.f32.mrb[6].mxu0  ;;  %1689 = vmatprep.mubr.bf16.mxu1 %v420_v16 }
 0x100   :  { %v394_v21 = vmax.f32 %v286_v17, 0.0  ;;  %v289_v22 = vadd.f32 %v1648_v20, %v2212_v1  ;;  %v280_v23 = vpop.f32.mrb[7].mxu0  ;;  %1690 = vmatmul.mubr.bf16.vlgmr.msra.gmra.mrb[0].mxu1 %v421_v14 }
 0x101   :  { %v281_v24 = vadd.f32 %v2212_v1, %v280_v23  ;;  %v392_v26 = vmax.f32 %v278_v19, 0.0 }
 0x102   :  { %v395_v25 = vmax.f32 %v289_v22, 0.0 }
 0x103   :  { %v393_v27 = vmax.f32 %v281_v24, 0.0 }
 0x104   :  { %v423_v28 = vpack.c.bf16 %v395_v25, %v394_v21 }
 0x105   :  { %v422_v29 = vpack.c.bf16 %v393_v27, %v392_v26  ;;  %v1651_v30 = vpop.f32.mrb[8].mxu0 }
 0x106   :  { %v302_v31 = vadd.f32 %v1651_v30, %v2212_v1  ;;  %v293_v32 = vpop.f32.mrb[9].mxu0 }
 0x107   :  { %v294_v33 = vadd.f32 %v2212_v1, %v293_v32  ;;  %v1652_v34 = vpop.f32.mrb[10].mxu0  ;;  %1693 = vmatprep.mubr.bf16.mxu1 %v422_v29 }
 0x108   :  { %v398_v35 = vmax.f32 %v302_v31, 0.0  ;;  %v305_v36 = vadd.f32 %v1652_v34, %v2212_v1  ;;  %v296_v37 = vpop.f32.mrb[11].mxu0  ;;  %1694 = vmatmul.mubr.bf16.gmra.mrb[4].mxu1 %v423_v28 }
 0x109   :  { %v396_v38 = vmax.f32 %v294_v33, 0.0  ;;  %v297_v39 = vadd.f32 %v2212_v1, %v296_v37 }
 0x10a   :  { %v399_v40 = vmax.f32 %v305_v36, 0.0 }
 0x10b   :  { %v397_v41 = vmax.f32 %v297_v39, 0.0 }
 0x10c   :  { %v425_v42 = vpack.c.bf16 %v399_v40, %v398_v35 }
 0x10d   :  { %v424_v43 = vpack.c.bf16 %v397_v41, %v396_v38  ;;  %v1655_v44 = vpop.f32.mrb[12].mxu0 }
 0x10e   :  { %v318_v45 = vadd.f32 %v1655_v44, %v2212_v1  ;;  %v309_v46 = vpop.f32.mrb[13].mxu0 }
 0x10f   :  { %v310_v47 = vadd.f32 %v2212_v1, %v309_v46  ;;  %v1656_v48 = vpop.f32.mrb[14].mxu0  ;;  %1697 = vmatprep.mubr.bf16.mxu1 %v424_v43 }
 0x110   :  { %v402_v49 = vmax.f32 %v318_v45, 0.0  ;;  %v321_v50 = vadd.f32 %v1656_v48, %v2212_v1  ;;  %v312_v51 = vpop.f32.mrb[15].mxu0  ;;  %1698 = vmatmul.mubr.bf16.gmra.mrb[8].mxu1 %v425_v42 }
 0x111   :  { %v400_v52 = vmax.f32 %v310_v47, 0.0  ;;  %v313_v53 = vadd.f32 %v2212_v1, %v312_v51  ;;  %v2246_v51 = vpop.permute.xlu0 %959 }
 0x112   :  { %v403_v54 = vmax.f32 %v321_v50, 0.0 }
 0x113   :  { %v401_v55 = vmax.f32 %v313_v53, 0.0 }
 0x114   :  { %v427_v56 = vpack.c.bf16 %v403_v54, %v402_v49 }
 0x115   :  { %v426_v57 = vpack.c.bf16 %v401_v55, %v400_v52  ;;  %v1659_v58 = vpop.f32.mrb[16].mxu0  ;;  %v2248_v52 = vpop.permute.xlu0 %965 }
 0x116   :  { %v334_v59 = vadd.f32 %v1659_v58, %v2212_v1  ;;  %v325_v60 = vpop.f32.mrb[17].mxu0 }
 0x117   :  { %v326_v61 = vadd.f32 %v2212_v1, %v325_v60  ;;  %v1660_v62 = vpop.f32.mrb[18].mxu0  ;;  %1701 = vmatprep.mubr.bf16.mxu1 %v426_v57 }
 0x118   :  { %v406_v63 = vmax.f32 %v334_v59, 0.0  ;;  %v337_v0 = vadd.f32 %v1660_v62, %v2212_v1  ;;  %v328_v2 = vpop.f32.mrb[19].mxu0  ;;  %1702 = vmatmul.mubr.bf16.gmra.mrb[12].mxu1 %v427_v56 }
 0x119   :  { %v404_v3 = vmax.f32 %v326_v61, 0.0  ;;  %v329_v4 = vadd.f32 %v2212_v1, %v328_v2  ;;  %v2250_v53 = vpop.permute.xlu0 %971 }
 0x11a   :  { %v407_v5 = vmax.f32 %v337_v0, 0.0  ;;  %v2283_v0 = vld [vmem:[%s2814_s5] ss:$0 sm:$0xff] }
 0x11b   :  { %v405_v6 = vmax.f32 %v329_v4, 0.0 }
 0x11c   :  { %v429_v7 = vpack.c.bf16 %v407_v5, %v406_v63 }
 0x11d   :  { %v428_v8 = vpack.c.bf16 %v405_v6, %v404_v3  ;;  %v1663_v9 = vpop.f32.mrb[20].mxu0  ;;  %v2252_v54 = vpop.permute.xlu0 %977 }
 0x11e   :  { %v350_v10 = vadd.f32 %v1663_v9, %v2212_v1  ;;  %v341_v11 = vpop.f32.mrb[21].mxu0 }
 0x11f   :  { %v342_v12 = vadd.f32 %v2212_v1, %v341_v11  ;;  %v1664_v13 = vpop.f32.mrb[22].mxu0  ;;  %1705 = vmatprep.mubr.bf16.mxu1 %v428_v8 }
 0x120   :  { %v410_v14 = vmax.f32 %v350_v10, 0.0  ;;  %v353_v15 = vadd.f32 %v1664_v13, %v2212_v1  ;;  %v344_v16 = vpop.f32.mrb[23].mxu0  ;;  %1706 = vmatmul.mubr.bf16.gmra.mrb[16].mxu1 %v429_v7 }
 0x121   :  { %v408_v17 = vmax.f32 %v342_v12, 0.0  ;;  %v345_v18 = vadd.f32 %v2212_v1, %v344_v16  ;;  %v2254_v55 = vpop.permute.xlu0 %983 }
 0x122   :  { %v411_v19 = vmax.f32 %v353_v15, 0.0 }
 0x123   :  { %v409_v20 = vmax.f32 %v345_v18, 0.0 }
 0x124   :  { %v431_v21 = vpack.c.bf16 %v411_v19, %v410_v14 }
 0x125   :  { %v430_v22 = vpack.c.bf16 %v409_v20, %v408_v17  ;;  %v1667_v23 = vpop.f32.mrb[24].mxu0  ;;  %v2256_v56 = vpop.permute.xlu0 %989 }
 0x126   :  { %v366_v24 = vadd.f32 %v1667_v23, %v2212_v1  ;;  %v357_v25 = vpop.f32.mrb[25].mxu0 }
 0x127   :  { %v358_v26 = vadd.f32 %v2212_v1, %v357_v25  ;;  %v1668_v27 = vpop.f32.mrb[26].mxu0  ;;  %1709 = vmatprep.mubr.bf16.mxu1 %v430_v22 }
 0x128   :  { %v414_v28 = vmax.f32 %v366_v24, 0.0  ;;  %v369_v29 = vadd.f32 %v1668_v27, %v2212_v1  ;;  %v360_v30 = vpop.f32.mrb[27].mxu0  ;;  %1710 = vmatmul.mubr.bf16.gmra.mrb[20].mxu1 %v431_v21 }
 0x129   :  { %v412_v31 = vmax.f32 %v358_v26, 0.0  ;;  %v361_v32 = vadd.f32 %v2212_v1, %v360_v30  ;;  %v2258_v57 = vpop.permute.xlu0 %995 }
 0x12a   :  { %v415_v33 = vmax.f32 %v369_v29, 0.0 }
 0x12b   :  { %v413_v34 = vmax.f32 %v361_v32, 0.0 }
 0x12c   :  { %v433_v35 = vpack.c.bf16 %v415_v33, %v414_v28 }
 0x12d   :  { %v432_v36 = vpack.c.bf16 %v413_v34, %v412_v31  ;;  %v1671_v37 = vpop.f32.mrb[28].mxu0  ;;  %v2260_v58 = vpop.permute.xlu0 %1001 }
 0x12e   :  { %v382_v38 = vadd.f32 %v1671_v37, %v2212_v1  ;;  %v373_v39 = vpop.f32.mrb[29].mxu0  ;;  %v2363_v34 = vpop.permute.xlu1 %962 }
 0x12f   :  { %v374_v40 = vadd.f32 %v2212_v1, %v373_v39  ;;  %v1672_v41 = vpop.f32.mrb[30].mxu0  ;;  %1713 = vmatprep.mubr.bf16.mxu1 %v432_v36 }
 0x130   :  { %v418_v42 = vmax.f32 %v382_v38, 0.0  ;;  %v385_v43 = vadd.f32 %v1672_v41, %v2212_v1  ;;  %v376_v44 = vpop.f32.mrb[31].mxu0  ;;  %1714 = vmatmul.mubr.bf16.gmra.mrb[24].mxu1 %v433_v35 }
 0x131   :  { %v416_v45 = vmax.f32 %v374_v40, 0.0  ;;  %v377_v46 = vadd.f32 %v2212_v1, %v376_v44  ;;  %v956_v1 = vlaneseq  ;;  %v2264_v60 = vpop.permute.xlu0 %1016 }
 0x132   :  { %v419_v47 = vmax.f32 %v385_v43, 0.0  ;;  %v2384_v43 = vpop.permute.xlu1 %968 }
 0x133   :  { %v417_v48 = vmax.f32 %v377_v46, 0.0  ;;  %v2262_v59 = vand.u32 127, %v956_v1 }
 0x134   :  { %v435_v49 = vpack.c.bf16 %v419_v47, %v418_v42 }
 0x135   :  { %v434_v50 = vpack.c.bf16 %v417_v48, %v416_v45  ;;  %vm1073_vm0 = vcmp.eq.s32.totalorder %v2262_v59, %v2264_v60  ;;  %v2268_v61 = vpop.permute.xlu0 %1034  ;;  %vm1056_vm4 = vcmp.eq.s32.totalorder %v2262_v59, %v2248_v52  ;;  %vm1054_vm5 = vcmp.eq.s32.totalorder %v2262_v59, %v2246_v51 }
 0x136   :  { %2824 = vst [vmem:[#allocation8_spill] sm:$0xff] %v2268_v61  ;;  %vm1079_vm1 = vcmp.eq.s32.totalorder %v2262_v59, %v2268_v61  ;;  %v2399_v1 = vpop.permute.xlu1 %974  ;;  %vm1057_vm6 = vcmp.eq.s32.totalorder %v2262_v59, %v2384_v43  ;;  %vm1055_vm7 = vcmp.eq.s32.totalorder %v2262_v59, %v2363_v34  ;;  %vm1060_vm8 = vcmp.eq.s32.totalorder %v2262_v59, %v2252_v54 }
 0x137   :  { %1717 = vmatprep.mubr.bf16.mxu1 %v434_v50  ;;  %vm1058_vm10 = vcmp.eq.s32.totalorder %v2262_v59, %v2250_v53  ;;  %vm1059_vm11 = vcmp.eq.s32.totalorder %v2262_v59, %v2399_v1  ;;  %vm1064_vm12 = vcmp.eq.s32.totalorder %v2262_v59, %v2256_v56  ;;  %vm1062_vm13 = vcmp.eq.s32.totalorder %v2262_v59, %v2254_v55 }
 0x138   :  { %1718 = vmatmul.mubr.bf16.gmra.mrb[28].mxu1 %v435_v49 }
 0x139   :  { %v2272_v62 = vpop.permute.xlu0 %1040 }
 0x13a   :  { %2825 = vst [vmem:[#allocation9_spill] sm:$0xff] %v2272_v62  ;;  %vm1081_vm2 = vcmp.eq.s32.totalorder %v2262_v59, %v2272_v62 }
 0x13d   :  { %v2276_v63 = vpop.permute.xlu0 %1043 }
 0x13e   :  { %2826 = vst [vmem:[#allocation10_spill] sm:$0xff] %v2276_v63  ;;  %vm1082_vm3 = vcmp.eq.s32.totalorder %v2262_v59, %v2276_v63 }
 0x141   :  { %v2483_v63 = vpop.permute.xlu0 %1052 }
 0x142   :  { %2834 = vst [vmem:[#allocation18_spill] sm:$0xff] %v2483_v63 }
 0x1d3   :  { %v1691_v2 = vpop.f32.mrb[0].mxu1 }
 0x1d4   :  { %v2286_v3 = vadd.f32 %v1691_v2, %v2283_v0  ;;  %v541_v4 = vpop.f32.mrb[1].mxu1 }
 0x1d5   :  { %v2289_v5 = vadd.f32 %v2283_v0, %v541_v4  ;;  %v1692_v6 = vpop.f32.mrb[2].mxu1 }
 0x1d6   :  { %670 = vst [vmem:[#allocation2 + $0x10] sm:$0xff] %v2286_v3  ;;  %v2293_v7 = vadd.f32 %v1692_v6, %v2283_v0  ;;  %736 = vmax.xlane.f32.xlu1 %v2286_v3  ;;  %v544_v8 = vpop.f32.mrb[3].mxu1 }
 0x1d7   :  { %668 = vst [vmem:[#allocation2] sm:$0xff] %v2289_v5  ;;  %v2298_v9 = vadd.f32 %v2283_v0, %v544_v8  ;;  %732 = vmax.xlane.f32.xlu0 %v2289_v5 }
 0x1d8   :  { %671 = vst [vmem:[#allocation2 + $0x18] sm:$0xff] %v2293_v7 }
 0x1d9   :  { %669 = vst [vmem:[#allocation2 + $0x8] sm:$0xff] %v2298_v9 }
 0x1da   :  { %738 = vmax.xlane.f32.xlu1 %v2293_v7 }
 0x1db   :  { %v1695_v10 = vpop.f32.mrb[4].mxu1  ;;  %734 = vmax.xlane.f32.xlu0 %v2298_v9 }
 0x1dc   :  { %v2306_v11 = vadd.f32 %v1695_v10, %v2283_v0  ;;  %v557_v12 = vpop.f32.mrb[5].mxu1  ;;  %v2414_v10 = vpop.permute.xlu1 %980 }
 0x1dd   :  { %v2309_v13 = vadd.f32 %v2283_v0, %v557_v12  ;;  %v1696_v14 = vpop.f32.mrb[6].mxu1  ;;  %vm1061_vm9 = vcmp.eq.s32.totalorder %v2262_v59, %v2414_v10 }
 0x1de   :  { %674 = vst [vmem:[#allocation2 + $0x30] sm:$0xff] %v2306_v11  ;;  %v2313_v15 = vadd.f32 %v1696_v14, %v2283_v0  ;;  %v560_v16 = vpop.f32.mrb[7].mxu1 }
 0x1df   :  { %672 = vst [vmem:[#allocation2 + $0x20] sm:$0xff] %v2309_v13  ;;  %v2317_v17 = vadd.f32 %v2283_v0, %v560_v16  ;;  %744 = vmax.xlane.f32.xlu0 %v2306_v11 }
 0x1e0   :  { %675 = vst [vmem:[#allocation2 + $0x38] sm:$0xff] %v2313_v15  ;;  %746 = vmax.xlane.f32.xlu1 %v2313_v15 }
 0x1e1   :  { %673 = vst [vmem:[#allocation2 + $0x28] sm:$0xff] %v2317_v17 }
 0x1e3   :  { %v1699_v18 = vpop.f32.mrb[8].mxu1  ;;  %740 = vmax.xlane.f32.xlu0 %v2309_v13 }
 0x1e4   :  { %v2325_v19 = vadd.f32 %v1699_v18, %v2283_v0  ;;  %v573_v20 = vpop.f32.mrb[9].mxu1  ;;  %742 = vmax.xlane.f32.xlu1 %v2317_v17 }
 0x1e5   :  { %v2329_v21 = vadd.f32 %v2283_v0, %v573_v20  ;;  %v1700_v22 = vpop.f32.mrb[10].mxu1 }
 0x1e6   :  { %678 = vst [vmem:[#allocation2 + $0x50] sm:$0xff] %v2325_v19  ;;  %v2333_v23 = vadd.f32 %v1700_v22, %v2283_v0  ;;  %v576_v24 = vpop.f32.mrb[11].mxu1  ;;  %v2431_v22 = vpop.permute.xlu1 %986 }
 0x1e7   :  { %676 = vst [vmem:[#allocation2 + $0x40] sm:$0xff] %v2329_v21  ;;  %752 = vmax.xlane.f32.xlu0 %v2325_v19  ;;  %v2338_v25 = vadd.f32 %v2283_v0, %v576_v24  ;;  %vm1063_vm15 = vcmp.eq.s32.totalorder %v2262_v59, %v2431_v22 }
 0x1e8   :  { %679 = vst [vmem:[#allocation2 + $0x58] sm:$0xff] %v2333_v23  ;;  %754 = vmax.xlane.f32.xlu1 %v2333_v23 }
 0x1e9   :  { %677 = vst [vmem:[#allocation2 + $0x48] sm:$0xff] %v2338_v25 }
 0x1eb   :  { %v1703_v26 = vpop.f32.mrb[12].mxu1  ;;  %748 = vmax.xlane.f32.xlu0 %v2329_v21 }
 0x1ec   :  { %v2345_v27 = vadd.f32 %v1703_v26, %v2283_v0  ;;  %v589_v28 = vpop.f32.mrb[13].mxu1  ;;  %750 = vmax.xlane.f32.xlu1 %v2338_v25 }
 0x1ed   :  { %v2349_v29 = vadd.f32 %v2283_v0, %v589_v28  ;;  %v1704_v30 = vpop.f32.mrb[14].mxu1 }
 0x1ee   :  { %682 = vst [vmem:[#allocation2 + $0x70] sm:$0xff] %v2345_v27  ;;  %v2353_v31 = vadd.f32 %v1704_v30, %v2283_v0  ;;  %v592_v32 = vpop.f32.mrb[15].mxu1 }
 0x1ef   :  { %680 = vst [vmem:[#allocation2 + $0x60] sm:$0xff] %v2349_v29  ;;  %760 = vmax.xlane.f32.xlu0 %v2345_v27  ;;  %v2358_v33 = vadd.f32 %v2283_v0, %v592_v32 }
 0x1f0   :  { %683 = vst [vmem:[#allocation2 + $0x78] sm:$0xff] %v2353_v31  ;;  %762 = vmax.xlane.f32.xlu1 %v2353_v31 }
 0x1f1   :  { %681 = vst [vmem:[#allocation2 + $0x68] sm:$0xff] %v2358_v33 }
 0x1f3   :  { %v1707_v35 = vpop.f32.mrb[16].mxu1  ;;  %756 = vmax.xlane.f32.xlu0 %v2349_v29 }
 0x1f4   :  { %v2367_v36 = vadd.f32 %v1707_v35, %v2283_v0  ;;  %v605_v37 = vpop.f32.mrb[17].mxu1  ;;  %758 = vmax.xlane.f32.xlu1 %v2358_v33 }
 0x1f5   :  { %v2371_v38 = vadd.f32 %v2283_v0, %v605_v37  ;;  %v1708_v39 = vpop.f32.mrb[18].mxu1 }
 0x1f6   :  { %686 = vst [vmem:[#allocation2 + $0x90] sm:$0xff] %v2367_v36  ;;  %v2375_v40 = vadd.f32 %v1708_v39, %v2283_v0  ;;  %v608_v41 = vpop.f32.mrb[19].mxu1 }
 0x1f7   :  { %684 = vst [vmem:[#allocation2 + $0x80] sm:$0xff] %v2371_v38  ;;  %764 = vmax.xlane.f32.xlu0 %v2371_v38  ;;  %v2380_v42 = vadd.f32 %v2283_v0, %v608_v41  ;;  %v2452_v41 = vpop.permute.xlu1 %992 }
 0x1f8   :  { %687 = vst [vmem:[#allocation2 + $0x98] sm:$0xff] %v2375_v40  ;;  %768 = vmax.xlane.f32.xlu1 %v2367_v36  ;;  %vm1065_vm14 = vcmp.eq.s32.totalorder %v2262_v59, %v2452_v41 }
 0x1f9   :  { %685 = vst [vmem:[#allocation2 + $0x88] sm:$0xff] %v2380_v42 }
 0x1fb   :  { %v1711_v44 = vpop.f32.mrb[20].mxu1  ;;  %770 = vmax.xlane.f32.xlu0 %v2375_v40 }
 0x1fc   :  { %v2389_v45 = vadd.f32 %v1711_v44, %v2283_v0  ;;  %v621_v46 = vpop.f32.mrb[21].mxu1  ;;  %766 = vmax.xlane.f32.xlu1 %v2380_v42  ;;  %v2457_v44 = vpop.permute.xlu1 %998 }
 0x1fd   :  { %v2393_v47 = vadd.f32 %v2283_v0, %v621_v46  ;;  %v1712_v48 = vpop.f32.mrb[22].mxu1 }
 0x1fe   :  { %690 = vst [vmem:[#allocation2 + $0xb0] sm:$0xff] %v2389_v45  ;;  %v2397_v49 = vadd.f32 %v1712_v48, %v2283_v0  ;;  %v624_v50 = vpop.f32.mrb[23].mxu1 }
 0x1ff   :  { %688 = vst [vmem:[#allocation2 + $0xa0] sm:$0xff] %v2393_v47  ;;  %v2403_v2 = vadd.f32 %v2283_v0, %v624_v50 }
 0x200   :  { %691 = vst [vmem:[#allocation2 + $0xb8] sm:$0xff] %v2397_v49  ;;  %776 = vmax.xlane.f32.xlu1 %v2389_v45  ;;  %778 = vmax.xlane.f32.xlu0 %v2397_v49  ;;  %v2459_v46 = vpop.permute.xlu1 %1004 }
 0x201   :  { %689 = vst [vmem:[#allocation2 + $0xa8] sm:$0xff] %v2403_v2 }
 0x203   :  { %v1715_v4 = vpop.f32.mrb[24].mxu1 }
 0x204   :  { %v2410_v6 = vadd.f32 %v1715_v4, %v2283_v0  ;;  %v637_v8 = vpop.f32.mrb[25].mxu1  ;;  %772 = vmax.xlane.f32.xlu1 %v2393_v47  ;;  %774 = vmax.xlane.f32.xlu0 %v2403_v2 }
 0x205   :  { %v2417_v12 = vadd.f32 %v2283_v0, %v637_v8  ;;  %v1716_v14 = vpop.f32.mrb[26].mxu1 }
 0x206   :  { %694 = vst [vmem:[#allocation2 + $0xd0] sm:$0xff] %v2410_v6  ;;  %v2421_v16 = vadd.f32 %v1716_v14, %v2283_v0  ;;  %v640_v18 = vpop.f32.mrb[27].mxu1 }
 0x207   :  { %692 = vst [vmem:[#allocation2 + $0xc0] sm:$0xff] %v2417_v12  ;;  %v2425_v20 = vadd.f32 %v2283_v0, %v640_v18 }
 0x208   :  { %695 = vst [vmem:[#allocation2 + $0xd8] sm:$0xff] %v2421_v16  ;;  %784 = vmax.xlane.f32.xlu1 %v2410_v6  ;;  %786 = vmax.xlane.f32.xlu0 %v2421_v16 }
 0x209   :  { %693 = vst [vmem:[#allocation2 + $0xc8] sm:$0xff] %v2425_v20 }
 0x20b   :  { %v1719_v24 = vpop.f32.mrb[28].mxu1 }
 0x20c   :  { %v2434_v26 = vadd.f32 %v1719_v24, %v2283_v0  ;;  %v653_v28 = vpop.f32.mrb[29].mxu1  ;;  %780 = vmax.xlane.f32.xlu1 %v2417_v12  ;;  %782 = vmax.xlane.f32.xlu0 %v2425_v20 }
 0x20d   :  { %v2439_v30 = vadd.f32 %v2283_v0, %v653_v28  ;;  %v1720_v32 = vpop.f32.mrb[30].mxu1 }
 0x20e   :  { %2827 = vst [vmem:[#allocation11_spill] sm:$0xff] %v2434_v26  ;;  %698 = vst [vmem:[#allocation2 + $0xf0] sm:$0xff] %v2434_v26  ;;  %v2443_v35 = vadd.f32 %v1720_v32, %v2283_v0  ;;  %v656_v37 = vpop.f32.mrb[31].mxu1 }
 0x20f   :  { %2828 = vst [vmem:[#allocation12_spill] sm:$0xff] %v2439_v30  ;;  %696 = vst [vmem:[#allocation2 + $0xe0] sm:$0xff] %v2439_v30  ;;  %v2447_v39 = vadd.f32 %v2283_v0, %v656_v37  ;;  %v2461_v0 = vpop.permute.xlu1 %1007 }
 0x210   :  { %2829 = vst [vmem:[#allocation13_spill] sm:$0xff] %v2443_v35  ;;  %699 = vst [vmem:[#allocation2 + $0xf8] sm:$0xff] %v2443_v35  ;;  %792 = vmax.xlane.f32.xlu1 %v2434_v26  ;;  %794 = vmax.xlane.f32.xlu0 %v2443_v35 }
 0x211   :  { %2830 = vst [vmem:[#allocation14_spill] sm:$0xff] %v2447_v39  ;;  %697 = vst [vmem:[#allocation2 + $0xe8] sm:$0xff] %v2447_v39 }
 0x213   :  { %v2463_v48 = vpop.permute.xlu1 %1010 }
 0x214   :  { %788 = vmax.xlane.f32.xlu1 %v2439_v30  ;;  %790 = vmax.xlane.f32.xlu0 %v2447_v39 }
 0x217   :  { %v2465_v50 = vpop.permute.xlu1 %1013 }
 0x21b   :  { %v2467_v4 = vpop.permute.xlu1 %1019 }
 0x21f   :  { %v2469_v8 = vpop.permute.xlu1 %1022 }
 0x223   :  { %v2471_v14 = vpop.permute.xlu1 %1025 }
 0x227   :  { %v2473_v18 = vpop.permute.xlu1 %1028 }
 0x22b   :  { %v2475_v24 = vpop.permute.xlu1 %1031 }
 0x22f   :  { %v2477_v28 = vpop.permute.xlu1 %1037 }
 0x230   :  { %2831 = vst [vmem:[#allocation15_spill] sm:$0xff] %v2477_v28 }
 0x233   :  { %v2479_v32 = vpop.permute.xlu1 %1046 }
 0x234   :  { %2832 = vst [vmem:[#allocation16_spill] sm:$0xff] %v2479_v32 }
 0x237   :  { %v2481_v37 = vpop.permute.xlu1 %1049 }
 0x238   :  { %2833 = vst [vmem:[#allocation17_spill] sm:$0xff] %v2481_v37 }
 0x263   :  { %v737_v30 = vpop.xlane.xlu1 %736 }
 0x264   :  { %v798_v35 = vsub.f32 %v2286_v3, %v737_v30  ;;  %v733_v26 = vpop.xlane.xlu0 %732 }
 0x265   :  { %v796_v62 = vsub.f32 %v2289_v5, %v733_v26 }
 0x266   :  { %v1088_v39 = vsel %vm1056_vm4, %v798_v35, 0.0  ;;  %v832_v61 = vmul.f32 1.442695, %v798_v35  ;;  %vm1068_vm4 = vcmp.eq.s32.totalorder %v2262_v59, %v2260_v58 }
 0x267   :  { %v739_v28 = vpop.xlane.xlu1 %738  ;;  %1122 = vadd.xlane.f32.xlu1 %v1088_v39  ;;  %v1086_v32 = vsel %vm1054_vm5, %v796_v62, 0.0  ;;  %v828_v52 = vmul.f32 1.442695, %v796_v62  ;;  %vm1066_vm5 = vcmp.eq.s32.totalorder %v2262_v59, %v2258_v57 }
 0x268   :  { %v799_v37 = vsub.f32 %v2293_v7, %v739_v28  ;;  %1118 = vadd.xlane.f32.xlu0 %v1086_v32  ;;  %v735_v63 = vpop.xlane.xlu0 %734  ;;  %1763 = vpow2.f32 %v832_v61 }
 0x269   :  { %v797_v3 = vsub.f32 %v2298_v9, %v735_v63  ;;  %1765 = vpow2.f32 %v828_v52 }
 0x26a   :  { %v1089_v5 = vsel %vm1057_vm6, %v799_v37, 0.0  ;;  %v834_v30 = vmul.f32 1.442695, %v799_v37  ;;  %vm1069_vm6 = vcmp.eq.s32.totalorder %v2262_v59, %v2459_v46 }
 0x26b   :  { %1124 = vadd.xlane.f32.xlu1 %v1089_v5  ;;  %v1087_v7 = vsel %vm1055_vm7, %v797_v3, 0.0  ;;  %v830_v9 = vmul.f32 1.442695, %v797_v3  ;;  %vm1067_vm7 = vcmp.eq.s32.totalorder %v2262_v59, %v2457_v44 }
 0x26c   :  { %v745_v26 = vpop.xlane.xlu0 %744  ;;  %1767 = vpow2.f32 %v834_v30 }
 0x26d   :  { %v802_v51 = vsub.f32 %v2306_v11, %v745_v26  ;;  %v747_v39 = vpop.xlane.xlu1 %746  ;;  %1769 = vpow2.f32 %v830_v9 }
 0x26e   :  { %v803_v43 = vsub.f32 %v2313_v15, %v747_v39 }
 0x26f   :  { %1120 = vadd.xlane.f32.xlu1 %v1087_v7  ;;  %v1092_v63 = vsel %vm1060_vm8, %v802_v51, 0.0  ;;  %v840_v61 = vmul.f32 1.442695, %v802_v51  ;;  %vm1070_vm8 = vcmp.eq.s32.totalorder %v2262_v59, %v2461_v0 }
 0x270   :  { %1130 = vadd.xlane.f32.xlu0 %v1092_v63  ;;  %v741_v62 = vpop.xlane.xlu0 %740  ;;  %v1093_v15 = vsel %vm1061_vm9, %v803_v43, 0.0  ;;  %v842_v10 = vmul.f32 1.442695, %v803_v43  ;;  %vm1071_vm9 = vcmp.eq.s32.totalorder %v2262_v59, %v2463_v48 }
 0x271   :  { %v800_v11 = vsub.f32 %v2309_v13, %v741_v62  ;;  %v743_v35 = vpop.xlane.xlu1 %742  ;;  %1771 = vpow2.f32 %v840_v61 }
 0x272   :  { %v801_v54 = vsub.f32 %v2317_v17, %v743_v35  ;;  %v1764_v13 = vpop.eup %1763 }
 0x273   :  { %v1090_v34 = vsel %vm1058_vm10, %v800_v11, 0.0  ;;  %v836_v28 = vmul.f32 1.442695, %v800_v11  ;;  %v1766_v53 = vpop.eup %1765  ;;  %vm1072_vm10 = vcmp.eq.s32.totalorder %v2262_v59, %v2465_v50 }
 0x274   :  { %1132 = vadd.xlane.f32.xlu0 %v1093_v15  ;;  %1126 = vadd.xlane.f32.xlu1 %v1090_v34  ;;  %v1091_v32 = vsel %vm1059_vm11, %v801_v54, 0.0  ;;  %v753_v37 = vpop.xlane.xlu0 %752  ;;  %v838_v17 = vmul.f32 1.442695, %v801_v54  ;;  %vm1074_vm11 = vcmp.eq.s32.totalorder %v2262_v59, %v2467_v4 }
 0x275   :  { %1773 = vpow2.f32 %v836_v28  ;;  %v806_v5 = vsub.f32 %v2325_v19, %v753_v37  ;;  %v755_v51 = vpop.xlane.xlu1 %754 }
 0x276   :  { %v1768_v3 = vpop.eup %1767  ;;  %1775 = vpow2.f32 %v842_v10  ;;  %v807_v19 = vsub.f32 %v2333_v23, %v755_v51 }
 0x277   :  { %v1770_v52 = vpop.eup %1769  ;;  %1777 = vpow2.f32 %v838_v17  ;;  %v848_v1 = vmul.f32 1.442695, %v806_v5  ;;  %v1096_v43 = vsel %vm1064_vm12, %v806_v5, 0.0  ;;  %vm1076_vm12 = vcmp.eq.s32.totalorder %v2262_v59, %v2471_v14 }
 0x278   :  { %1128 = vadd.xlane.f32.xlu0 %v1091_v32  ;;  %896 = vadd.xlane.f32.xlu1 %v1764_v13  ;;  %v749_v26 = vpop.xlane.xlu0 %748  ;;  %v1097_v54 = vsel %vm1065_vm14, %v807_v19, 0.0  ;;  %vm1078_vm14 = vcmp.eq.s32.totalorder %v2262_v59, %v2475_v24 }
 0x279   :  { %v804_v39 = vsub.f32 %v2329_v21, %v749_v26  ;;  %1779 = vpow2.f32 %v848_v1  ;;  %v751_v9 = vpop.xlane.xlu1 %750  ;;  %v850_v21 = vmul.f32 1.442695, %v807_v19 }
 0x27a   :  { %v805_v56 = vsub.f32 %v2338_v25, %v751_v9 }
 0x27b   :  { %v1772_v30 = vpop.eup %1771  ;;  %v844_v63 = vmul.f32 1.442695, %v804_v39  ;;  %v1094_v61 = vsel %vm1062_vm13, %v804_v39, 0.0  ;;  %vm1077_vm13 = vcmp.eq.s32.totalorder %v2262_v59, %v2473_v18 }
 0x27c   :  { %898 = vadd.xlane.f32.xlu0 %v1768_v3  ;;  %892 = vadd.xlane.f32.xlu1 %v1766_v53  ;;  %v761_v11 = vpop.xlane.xlu0 %760  ;;  %v846_v23 = vmul.f32 1.442695, %v805_v56  ;;  %v1095_v13 = vsel %vm1063_vm15, %v805_v56, 0.0 }
 0x27d   :  { %1781 = vpow2.f32 %v844_v63  ;;  %v810_v55 = vsub.f32 %v2345_v27, %v761_v11  ;;  %v763_v15 = vpop.xlane.xlu1 %762 }
 0x27e   :  { %1783 = vpow2.f32 %v850_v21  ;;  %v811_v27 = vsub.f32 %v2353_v31, %v763_v15 }
 0x27f   :  { %v1774_v7 = vpop.eup %1773  ;;  %1785 = vpow2.f32 %v846_v23  ;;  %v856_v25 = vmul.f32 1.442695, %v810_v55  ;;  %v1100_v37 = vsel %vm1068_vm4, %v810_v55, 0.0 }
 0x280   :  { %894 = vadd.xlane.f32.xlu0 %v1770_v52  ;;  %904 = vadd.xlane.f32.xlu1 %v1772_v30  ;;  %v1776_v62 = vpop.eup %1775  ;;  %v757_v34 = vpop.xlane.xlu0 %756  ;;  %v1101_v52 = vsel %vm1069_vm6, %v811_v27, 0.0 }
 0x281   :  { %v1778_v35 = vpop.eup %1777  ;;  %v808_v41 = vsub.f32 %v2349_v29, %v757_v34  ;;  %v759_v10 = vpop.xlane.xlu1 %758  ;;  %1787 = vpow2.f32 %v856_v25  ;;  %v858_v29 = vmul.f32 1.442695, %v811_v27 }
 0x282   :  { %v809_v58 = vsub.f32 %v2358_v33, %v759_v10 }
 0x283   :  { %v1780_v28 = vpop.eup %1779  ;;  %v852_v22 = vmul.f32 1.442695, %v808_v41  ;;  %v1098_v3 = vsel %vm1066_vm5, %v808_v41, 0.0 }
 0x284   :  { %900 = vadd.xlane.f32.xlu1 %v1774_v7  ;;  %1138 = vadd.xlane.f32.xlu0 %v1096_v43  ;;  %v765_v26 = vpop.xlane.xlu0 %764  ;;  %v854_v31 = vmul.f32 1.442695, %v809_v58  ;;  %v1099_v33 = vsel %vm1067_vm7, %v809_v58, 0.0 }
 0x285   :  { %1789 = vpow2.f32 %v852_v22  ;;  %v769_v17 = vpop.xlane.xlu1 %768  ;;  %v812_v51 = vsub.f32 %v2371_v38, %v765_v26 }
 0x286   :  { %1791 = vpow2.f32 %v858_v29  ;;  %v814_v57 = vsub.f32 %v2367_v36, %v769_v17 }
 0x287   :  { %v1782_v32 = vpop.eup %1781  ;;  %1793 = vpow2.f32 %v854_v31  ;;  %v1102_v36 = vsel %vm1070_vm8, %v812_v51, 0.0  ;;  %v860_v44 = vmul.f32 1.442695, %v812_v51  ;;  %v2838_v51 = vld [vmem:[#allocation11_spill] sm:$0xff] }
 0x288   :  { %906 = vadd.xlane.f32.xlu1 %v1776_v62  ;;  %1134 = vadd.xlane.f32.xlu0 %v1094_v61  ;;  %v1784_v53 = vpop.eup %1783  ;;  %v864_v46 = vmul.f32 1.442695, %v814_v57  ;;  %v771_v39 = vpop.xlane.xlu0 %770  ;;  %v1104_v61 = vsel %vm1072_vm10, %v814_v57, 0.0 }
 0x289   :  { %v1786_v5 = vpop.eup %1785  ;;  %v767_v1 = vpop.xlane.xlu1 %766  ;;  %v815_v38 = vsub.f32 %v2375_v40, %v771_v39 }
 0x28a   :  { %v813_v43 = vsub.f32 %v2380_v42, %v767_v1  ;;  %1795 = vpow2.f32 %v864_v46  ;;  %v2839_v1 = vld [vmem:[#allocation16_spill] sm:$0xff] }
 0x28b   :  { %v1788_v30 = vpop.eup %1787  ;;  %1797 = vpow2.f32 %v860_v44  ;;  %v866_v0 = vmul.f32 1.442695, %v815_v38 }
 0x28c   :  { %902 = vadd.xlane.f32.xlu1 %v1778_v35  ;;  %1140 = vadd.xlane.f32.xlu0 %v1097_v54  ;;  %v1103_v9 = vsel %vm1071_vm9, %v813_v43, 0.0  ;;  %v862_v40 = vmul.f32 1.442695, %v813_v43  ;;  %v1105_v35 = vsel %vm1073_vm0, %v815_v38, 0.0  ;;  %vm1075_vm0 = vcmp.eq.s32.totalorder %v2262_v59, %v2469_v8  ;;  %v2841_v38 = vld [vmem:[#allocation12_spill] sm:$0xff] }
 0x28d   :  { %v777_v19 = vpop.xlane.xlu1 %776  ;;  %v779_v62 = vpop.xlane.xlu0 %778  ;;  %1799 = vpow2.f32 %v866_v0  ;;  %vm1406_vm9 = vcmask 7168  }
 0x28e   :  { %v818_v21 = vsub.f32 %v2389_v45, %v777_v19  ;;  %1801 = vpow2.f32 %v862_v40  ;;  %v819_v45 = vsub.f32 %v2397_v49, %v779_v62 }
 0x28f   :  { %v1790_v7 = vpop.eup %1789 }
 0x290   :  { %912 = vadd.xlane.f32.xlu1 %v1780_v28  ;;  %1136 = vadd.xlane.f32.xlu0 %v1095_v13  ;;  %v1792_v63 = vpop.eup %1791  ;;  %v872_v50 = vmul.f32 1.442695, %v818_v21  ;;  %v874_v4 = vmul.f32 1.442695, %v819_v45  ;;  %v1108_v25 = vsel %vm1076_vm12, %v818_v21, 0.0  ;;  %v1109_v27 = vsel %vm1077_vm13, %v819_v45, 0.0 }
 0x291   :  { %v1794_v42 = vpop.eup %1793  ;;  %v773_v11 = vpop.xlane.xlu1 %772  ;;  %v2845_v45 = vld [vmem:[#allocation17_spill] sm:$0xff] }
 0x292   :  { %v816_v56 = vsub.f32 %v2393_v47, %v773_v11  ;;  %v775_v54 = vpop.xlane.xlu0 %774  ;;  %1803 = vpow2.f32 %v872_v50  ;;  %vm1084_vm4 = vcmp.eq.s32.totalorder %v2262_v59, %v2845_v45 }
 0x293   :  { %v817_v55 = vsub.f32 %v2403_v2, %v775_v54  ;;  %v2843_v54 = vld [vmem:[#allocation15_spill] sm:$0xff] }
 0x294   :  { %908 = vadd.xlane.f32.xlu1 %v1782_v32  ;;  %1146 = vadd.xlane.f32.xlu0 %v1100_v37  ;;  %v1796_v48 = vpop.eup %1795  ;;  %v1106_v15 = vsel %vm1074_vm11, %v816_v56, 0.0  ;;  %v868_v47 = vmul.f32 1.442695, %v816_v56  ;;  %vm1080_vm15 = vcmp.eq.s32.totalorder %v2262_v59, %v2843_v54 }
 0x295   :  { %v1798_v23 = vpop.eup %1797  ;;  %v785_v60 = vpop.xlane.xlu1 %784  ;;  %v1107_v13 = vsel %vm1075_vm0, %v817_v55, 0.0  ;;  %v870_v49 = vmul.f32 1.442695, %v817_v55 }
 0x296   :  { %v787_v34 = vpop.xlane.xlu0 %786  ;;  %1805 = vpow2.f32 %v868_v47  ;;  %v2557_v37 = vsub.f32 %v2410_v6, %v785_v60 }
 0x297   :  { %v1800_v28 = vpop.eup %1799  ;;  %1807 = vpow2.f32 %v874_v4  ;;  %v823_v18 = vsub.f32 %v2421_v16, %v787_v34 }
 0x298   :  { %914 = vadd.xlane.f32.xlu1 %v1784_v53  ;;  %1142 = vadd.xlane.f32.xlu0 %v1098_v3  ;;  %v1802_v2 = vpop.eup %1801  ;;  %1809 = vpow2.f32 %v870_v49  ;;  %v880_v14 = vmul.f32 1.442695, %v2557_v37  ;;  %v1112_v50 = vsel %vm1080_vm15, %v2557_v37, 0.0 }
 0x299   :  { %v781_v41 = vpop.xlane.xlu1 %780  ;;  %v882_v24 = vmul.f32 1.442695, %v823_v18 }
 0x29a   :  { %v783_v32 = vpop.xlane.xlu0 %782  ;;  %v820_v10 = vsub.f32 %v2417_v12, %v781_v41  ;;  %1811 = vpow2.f32 %v880_v14 }
 0x29b   :  { %v821_v6 = vsub.f32 %v2425_v20, %v783_v32  ;;  %v2836_v20 = vld [vmem:[#allocation14_spill] sm:$0xff] }
 0x29c   :  { %910 = vadd.xlane.f32.xlu1 %v1786_v5  ;;  %1148 = vadd.xlane.f32.xlu0 %v1101_v52  ;;  %v1804_v8 = vpop.eup %1803  ;;  %v1110_v3 = vsel %vm1078_vm14, %v820_v10, 0.0  ;;  %v876_v12 = vmul.f32 1.442695, %v820_v10 }
 0x29d   :  { %v1111_v17 = vsel %vm1079_vm1, %v821_v6, 0.0  ;;  %v793_v5 = vpop.xlane.xlu1 %792  ;;  %v878_v16 = vmul.f32 1.442695, %v821_v6  ;;  %vm1083_vm1 = vcmp.eq.s32.totalorder %v2262_v59, %v2839_v1 }
 0x29e   :  { %v795_v22 = vpop.xlane.xlu0 %794  ;;  %1813 = vpow2.f32 %v876_v12  ;;  %v1892_v12 = vld [vmem:[%s2810_s1 + $0x18] sm:$0xff] }
 0x29f   :  { %1815 = vpow2.f32 %v882_v24  ;;  %vm1281_vm5 = vcmp.ne.s32.totalorder %v1892_v12, 4294967295  ;;  %v1893_v24 = vld [vmem:[%s2810_s1] sm:$0xff] }
 0x2a0   :  { %920 = vadd.xlane.f32.xlu1 %v1788_v30  ;;  %1144 = vadd.xlane.f32.xlu0 %v1099_v33  ;;  %v1806_v53 = vpop.eup %1805  ;;  %v1113_v30 = vsel %vm1081_vm2, %v823_v18, 0.0  ;;  %v826_v33 = vsub.f32 %v2838_v51, %v793_v5  ;;  %1817 = vpow2.f32 %v878_v16  ;;  %vm1278_vm6 = vcmp.ne.s32.totalorder %v1893_v24, 4294967295 }
 0x2a1   :  { %v1808_v29 = vpop.eup %1807  ;;  %v789_v46 = vpop.xlane.xlu1 %788 }
 0x2a2   :  { %v791_v52 = vpop.xlane.xlu0 %790  ;;  %v1810_v26 = vpop.eup %1809  ;;  %v888_v44 = vmul.f32 1.442695, %v826_v33  ;;  %v824_v19 = vsub.f32 %v2841_v38, %v789_v46  ;;  %v1116_v47 = vsel %vm1084_vm4, %v826_v33, 0.0 }
 0x2a3   :  { %v825_v31 = vsub.f32 %v2836_v20, %v791_v52 }
 0x2a4   :  { %916 = vadd.xlane.f32.xlu1 %v1790_v7  ;;  %1150 = vadd.xlane.f32.xlu0 %v1102_v36  ;;  %v1812_v39 = vpop.eup %1811  ;;  %v2840_v7 = vld [vmem:[#allocation13_spill] sm:$0xff]  ;;  %1819 = vpow2.f32 %v888_v44  ;;  %v884_v62 = vmul.f32 1.442695, %v824_v19  ;;  %v1114_v55 = vsel %vm1082_vm3, %v824_v19, 0.0 }
 0x2a5   :  { %v827_v43 = vsub.f32 %v2840_v7, %v795_v22  ;;  %v1115_v36 = vsel %vm1083_vm1, %v825_v31, 0.0 }
 0x2a6   :  { %1821 = vpow2.f32 %v884_v62 }
 0x2a7   :  { %v890_v40 = vmul.f32 1.442695, %v827_v43 }
 0x2a8   :  { %922 = vadd.xlane.f32.xlu1 %v1792_v63  ;;  %1152 = vadd.xlane.f32.xlu0 %v1103_v9  ;;  %v2842_v63 = vld [vmem:[#allocation18_spill] sm:$0xff]  ;;  %v1814_v9 = vpop.eup %1813 }
 0x2a9   :  { %vm1085_vm2 = vcmp.eq.s32.totalorder %v2262_v59, %v2842_v63 }
 0x2aa   :  { %v1117_v0 = vsel %vm1085_vm2, %v827_v43, 0.0  ;;  %v1895_v43 = vld [vmem:[%s2810_s1 + $0x20] sm:$0xff] }
 0x2ab   :  { %vm1282_vm8 = vcmp.ne.s32.totalorder %v1895_v43, 4294967295 }
 0x2ac   :  { %918 = vadd.xlane.f32.xlu1 %v1794_v42  ;;  %1154 = vadd.xlane.f32.xlu0 %v1104_v61  ;;  %v1816_v42 = vpop.eup %1815  ;;  %v886_v61 = vmul.f32 1.442695, %v825_v31  ;;  %v1894_v31 = vld [vmem:[%s2810_s1 + $0x8] sm:$0xff] }
 0x2ad   :  { %v1818_v11 = vpop.eup %1817  ;;  %vm1279_vm7 = vcmp.ne.s32.totalorder %v1894_v31, 4294967295 }
 0x2ae   :  { %1823 = vpow2.f32 %v886_v61  ;;  %v1820_v21 = vpop.eup %1819 }
 0x2af   :  { %1825 = vpow2.f32 %v890_v40 }
 0x2b0   :  { %928 = vadd.xlane.f32.xlu1 %v1796_v48  ;;  %1156 = vadd.xlane.f32.xlu0 %v1105_v35  ;;  %v1822_v48 = vpop.eup %1821 }
 0x2b4   :  { %924 = vadd.xlane.f32.xlu1 %v1798_v23  ;;  %1158 = vadd.xlane.f32.xlu0 %v1106_v15  ;;  %v1896_v23 = vld [vmem:[%s2810_s1 + $0x28] sm:$0xff] }
 0x2b5   :  { %vm1283_vm10 = vcmp.ne.s32.totalorder %v1896_v23, 4294967295 }
 0x2b8   :  { %930 = vadd.xlane.f32.xlu1 %v1800_v28  ;;  %1160 = vadd.xlane.f32.xlu0 %v1107_v13  ;;  %v1824_v56 = vpop.eup %1823 }
 0x2b9   :  { %v1826_v35 = vpop.eup %1825 }
 0x2bc   :  { %926 = vadd.xlane.f32.xlu1 %v1802_v2  ;;  %1162 = vadd.xlane.f32.xlu0 %v1108_v25 }
 0x2c0   :  { %936 = vadd.xlane.f32.xlu1 %v1804_v8  ;;  %1164 = vadd.xlane.f32.xlu0 %v1109_v27  ;;  %v1891_v8 = vld [vmem:[%s2810_s1 + $0x10] sm:$0xff] }
 0x2c1   :  { %vm1280_vm3 = vcmp.ne.s32.totalorder %v1891_v8, 4294967295 }
 0x2c4   :  { %932 = vadd.xlane.f32.xlu1 %v1806_v53  ;;  %1166 = vadd.xlane.f32.xlu0 %v1110_v3  ;;  %v1972_v53 = vmov 0.0  }
 0x2c5   :  { %v1547_v6 = vsel %vm1280_vm3, 1.0, %v1972_v53  ;;  %v1548_v20 = vsel %vm1281_vm5, 1.0, %v1972_v53  ;;  %v1545_v51 = vsel %vm1278_vm6, 1.0, %v1972_v53  ;;  %v1546_v7 = vsel %vm1279_vm7, 1.0, %v1972_v53 }
 0x2c8   :  { %938 = vadd.xlane.f32.xlu1 %v1808_v29  ;;  %1168 = vadd.xlane.f32.xlu0 %v1111_v17 }
 0x2cc   :  { %934 = vadd.xlane.f32.xlu1 %v1810_v26  ;;  %1172 = vadd.xlane.f32.xlu0 %v1113_v30 }
 0x2d0   :  { %944 = vadd.xlane.f32.xlu1 %v1812_v39  ;;  %1176 = vadd.xlane.f32.xlu0 %v1115_v36 }
 0x2d4   :  { %940 = vadd.xlane.f32.xlu1 %v1814_v9  ;;  %1180 = vadd.xlane.f32.xlu0 %v1117_v0  ;;  %v1549_v0 = vsel %vm1282_vm8, 1.0, %v1972_v53 }
 0x2d8   :  { %946 = vadd.xlane.f32.xlu1 %v1816_v42 }
 0x2dc   :  { %942 = vadd.xlane.f32.xlu1 %v1818_v11 }
 0x2e0   :  { %952 = vadd.xlane.f32.xlu1 %v1820_v21 }
 0x2e4   :  { %948 = vadd.xlane.f32.xlu1 %v1822_v48 }
 0x2e8   :  { %950 = vadd.xlane.f32.xlu1 %v1824_v56 }
 0x2ec   :  { %954 = vadd.xlane.f32.xlu1 %v1826_v35 }
 0x2f0   :  { %1170 = vadd.xlane.f32.xlu1 %v1112_v50 }
 0x2f4   :  { %v1123_v15 = vpop.xlane.xlu1 %1122  ;;  %1174 = vadd.xlane.f32.xlu1 %v1114_v55  ;;  %v1897_v55 = vld [vmem:[%s2810_s1 + $0x30] sm:$0xff] }
 0x2f5   :  { %v1119_v34 = vpop.xlane.xlu0 %1118  ;;  %vm1284_vm11 = vcmp.ne.s32.totalorder %v1897_v55, 4294967295 }
 0x2f8   :  { %v1125_v60 = vpop.xlane.xlu1 %1124  ;;  %1178 = vadd.xlane.f32.xlu1 %v1116_v47 }
 0x2fc   :  { %v1121_v28 = vpop.xlane.xlu1 %1120 }
 0x2fd   :  { %v2589_v13 = vpop.xlane.xlu0 %1130 }
 0x301   :  { %v2591_v4 = vpop.xlane.xlu1 %1126  ;;  %v2593_v2 = vpop.xlane.xlu0 %1132 }
 0x305   :  { %v897_v25 = vpop.xlane.xlu1 %896  ;;  %v2595_v41 = vpop.xlane.xlu0 %1128 }
 0x306   :  { %1827 = vlog2.f32 %v897_v25 }
 0x309   :  { %v893_v32 = vpop.xlane.xlu1 %892  ;;  %v899_v49 = vpop.xlane.xlu0 %898 }
 0x30a   :  { %1829 = vlog2.f32 %v893_v32 }
 0x30b   :  { %1831 = vlog2.f32 %v899_v49 }
 0x30d   :  { %v905_v59 = vpop.xlane.xlu1 %904  ;;  %v895_v37 = vpop.xlane.xlu0 %894 }
 0x30e   :  { %1833 = vlog2.f32 %v895_v37  ;;  %v1551_v37 = vsel %vm1284_vm11, 1.0, %v1972_v53 }
 0x310   :  { %v1828_v10 = vpop.eup %1827 }
 0x311   :  { %v1187_v27 = vmul.f32 0.6931472, %v1828_v10  ;;  %v901_v14 = vpop.xlane.xlu1 %900  ;;  %v2600_v22 = vpop.xlane.xlu0 %1138 }
 0x312   :  { %1835 = vlog2.f32 %v901_v14 }
 0x313   :  { %v1248_v3 = vsub.f32 %v1187_v27, %v1123_v15  ;;  %1837 = vlog2.f32 %v905_v59  ;;  %v1550_v59 = vsel %vm1283_vm10, 1.0, %v1972_v53 }
 0x314   :  { %v1830_v18 = vpop.eup %1829 }
 0x315   :  { %v1832_v29 = vpop.eup %1831  ;;  %v1376_v58 = vmul.f32 %v1547_v6, %v1248_v3  ;;  %v1183_v17 = vmul.f32 0.6931472, %v1830_v18  ;;  %v907_v5 = vpop.xlane.xlu1 %906 }
 0x316   :  { %v2606_v52 = vpop.xlane.xlu0 %1134  ;;  %v1189_v26 = vmul.f32 0.6931472, %v1832_v29  ;;  %1839 = vlog2.f32 %v907_v5  ;;  %v1899_v29 = vld [vmem:[%s2810_s1 + $0x40] sm:$0xff] }
 0x317   :  { %v1246_v57 = vsub.f32 %v1183_v17, %v1119_v34  ;;  %v1410_v50 = vsel %vm1406_vm9, %v1376_v58, 0.0  ;;  %vm1286_vm12 = vcmp.ne.s32.totalorder %v1899_v29, 4294967295 }
 0x318   :  { %v1249_v30 = vsub.f32 %v1189_v26, %v1125_v60  ;;  %v1834_v16 = vpop.eup %1833  ;;  %v1553_v31 = vsel %vm1286_vm12, 1.0, %v1972_v53 }
 0x319   :  { %v903_v33 = vpop.xlane.xlu1 %902  ;;  %v1185_v39 = vmul.f32 0.6931472, %v1834_v16  ;;  %v1374_v44 = vmul.f32 %v1545_v51, %v1246_v57 }
 0x31a   :  { %v2616_v1 = vpop.xlane.xlu0 %1140  ;;  %v1377_v46 = vmul.f32 %v1548_v20, %v1249_v30  ;;  %1841 = vlog2.f32 %v903_v33 }
 0x31b   :  { %v1247_v38 = vsub.f32 %v1185_v39, %v1121_v28  ;;  %v1407_v40 = vsel %vm1406_vm9, %v1374_v44, 0.0  ;;  %v1898_v28 = vld [vmem:[%s2810_s1 + $0x38] sm:$0xff]  ;;  %v1901_v44 = vld [vmem:[%s2810_s1 + $0x50] sm:$0xff] }
 0x31c   :  { %v1836_v36 = vpop.eup %1835  ;;  %v1412_v60 = vsel %vm1406_vm9, %v1377_v46, 0.0  ;;  %vm1285_vm0 = vcmp.ne.s32.totalorder %v1898_v28, 4294967295  ;;  %vm1288_vm14 = vcmp.ne.s32.totalorder %v1901_v44, 4294967295 }
 0x31d   :  { %v1191_v19 = vmul.f32 0.6931472, %v1836_v36  ;;  %v913_v63 = vpop.xlane.xlu1 %912  ;;  %v1838_v9 = vpop.eup %1837  ;;  %v1375_v62 = vmul.f32 %v1546_v7, %v1247_v38  ;;  %v1552_v6 = vsel %vm1285_vm0, 1.0, %v1972_v53  ;;  %v1900_v36 = vld [vmem:[%s2810_s1 + $0x48] sm:$0xff] }
 0x31e   :  { %v2623_v42 = vpop.xlane.xlu0 %1136  ;;  %v1195_v48 = vmul.f32 0.6931472, %v1838_v9  ;;  %vm1287_vm13 = vcmp.ne.s32.totalorder %v1900_v36, 4294967295  ;;  %v1902_v9 = vld [vmem:[%s2810_s1 + $0x58] sm:$0xff] }
 0x31f   :  { %v1250_v61 = vsub.f32 %v1191_v19, %v2591_v4  ;;  %v1408_v21 = vsel %vm1406_vm9, %v1375_v62, 0.0  ;;  %vm1289_vm1 = vcmp.ne.s32.totalorder %v1902_v9, 4294967295 }
 0x320   :  { %v1840_v11 = vpop.eup %1839  ;;  %v1409_v56 = vadd.f32 %v1408_v21, %v1407_v40  ;;  %v1252_v4 = vsub.f32 %v1195_v48, %v2589_v13  ;;  %v1555_v40 = vsel %vm1288_vm14, 1.0, %v1972_v53 }
 0x321   :  { %v1378_v35 = vmul.f32 %v1549_v0, %v1250_v61  ;;  %v909_v54 = vpop.xlane.xlu1 %908  ;;  %v1197_v45 = vmul.f32 0.6931472, %v1840_v11  ;;  %v1554_v11 = vsel %vm1287_vm13, 1.0, %v1972_v53 }
 0x322   :  { %1843 = vlog2.f32 %v909_v54  ;;  %v1411_v15 = vadd.f32 %v1410_v50, %v1409_v56  ;;  %v2636_v34 = vpop.xlane.xlu0 %1146  ;;  %v1380_v3 = vmul.f32 %v1551_v37, %v1252_v4 }
 0x323   :  { %1845 = vlog2.f32 %v913_v63  ;;  %v1414_v8 = vsel %vm1406_vm9, %v1378_v35, 0.0  ;;  %v1253_v27 = vsub.f32 %v1197_v45, %v2593_v2  ;;  %v1556_v35 = vsel %vm1289_vm1, 1.0, %v1972_v53 }
 0x324   :  { %v1842_v47 = vpop.eup %1841  ;;  %v1413_v25 = vadd.f32 %v1412_v60, %v1411_v15 }
 0x325   :  { %v1193_v32 = vmul.f32 0.6931472, %v1842_v47  ;;  %v915_v49 = vpop.xlane.xlu1 %914  ;;  %v1381_v58 = vmul.f32 %v1552_v6, %v1253_v27 }
 0x326   :  { %1847 = vlog2.f32 %v915_v49  ;;  %v1415_v10 = vadd.f32 %v1414_v8, %v1413_v25  ;;  %v2648_v12 = vpop.xlane.xlu0 %1142 }
 0x327   :  { %v1251_v14 = vsub.f32 %v1193_v32, %v2595_v41  ;;  %v1418_v41 = vsel %vm1406_vm9, %v1380_v3, 0.0  ;;  %v1420_v30 = vsel %vm1406_vm9, %v1381_v58, 0.0  ;;  %v1904_v3 = vld [vmem:[%s2810_s1 + $0x68] sm:$0xff] }
 0x328   :  { %vm1291_vm15 = vcmp.ne.s32.totalorder %v1904_v3, 4294967295 }
 0x329   :  { %v1379_v18 = vmul.f32 %v1550_v59, %v1251_v14  ;;  %v911_v13 = vpop.xlane.xlu1 %910 }
 0x32a   :  { %1849 = vlog2.f32 %v911_v13  ;;  %v2658_v46 = vpop.xlane.xlu0 %1148 }
 0x32b   :  { %v1416_v17 = vsel %vm1406_vm9, %v1379_v18, 0.0  ;;  %v1905_v18 = vld [vmem:[%s2810_s1 + $0x70] sm:$0xff] }
 0x32c   :  { %v1844_v5 = vpop.eup %1843  ;;  %v1417_v2 = vadd.f32 %v1416_v17, %v1415_v10  ;;  %vm1292_vm4 = vcmp.ne.s32.totalorder %v1905_v18, 4294967295  ;;  %v1906_v17 = vld [vmem:[%s2810_s1 + $0x78] sm:$0xff] }
 0x32d   :  { %v1199_v24 = vmul.f32 0.6931472, %v1844_v5  ;;  %v921_v26 = vpop.xlane.xlu1 %920  ;;  %v1846_v20 = vpop.eup %1845  ;;  %vm1293_vm3 = vcmp.ne.s32.totalorder %v1906_v17, 4294967295 }
 0x32e   :  { %v1419_v57 = vadd.f32 %v1418_v41, %v1417_v2  ;;  %v1203_v39 = vmul.f32 0.6931472, %v1846_v20  ;;  %v1145_v21 = vpop.xlane.xlu0 %1144 }
 0x32f   :  { %v1254_v16 = vsub.f32 %v1199_v24, %v2606_v52  ;;  %v1558_v24 = vsel %vm1291_vm15, 1.0, %v1972_v53 }
 0x330   :  { %v1848_v51 = vpop.eup %1847  ;;  %v1421_v33 = vadd.f32 %v1420_v30, %v1419_v57  ;;  %v1256_v0 = vsub.f32 %v1203_v39, %v2600_v22  ;;  %v1903_v22 = vld [vmem:[%s2810_s1 + $0x60] sm:$0xff]  ;;  %v1560_v57 = vsel %vm1293_vm3, 1.0, %v1972_v53 }
 0x331   :  { %v1382_v7 = vmul.f32 %v1553_v31, %v1254_v16  ;;  %v917_v43 = vpop.xlane.xlu1 %916  ;;  %v1205_v38 = vmul.f32 0.6931472, %v1848_v51  ;;  %vm1290_vm2 = vcmp.ne.s32.totalorder %v1903_v22, 4294967295 }
 0x332   :  { %1851 = vlog2.f32 %v917_v43  ;;  %v1384_v54 = vmul.f32 %v1555_v40, %v1256_v0  ;;  %v1151_v60 = vpop.xlane.xlu0 %1150  ;;  %v1557_v25 = vsel %vm1290_vm2, 1.0, %v1972_v53 }
 0x333   :  { %v1422_v52 = vsel %vm1406_vm9, %v1382_v7, 0.0  ;;  %1853 = vlog2.f32 %v921_v26  ;;  %v1257_v48 = vsub.f32 %v1205_v38, %v2616_v1  ;;  %v1559_v26 = vsel %vm1292_vm4, 1.0, %v1972_v53 }
 0x334   :  { %v1850_v19 = vpop.eup %1849  ;;  %v1423_v63 = vadd.f32 %v1422_v52, %v1421_v33  ;;  %v1426_v1 = vsel %vm1406_vm9, %v1384_v54, 0.0 }
 0x335   :  { %v1201_v62 = vmul.f32 0.6931472, %v1850_v19  ;;  %v923_v61 = vpop.xlane.xlu1 %922  ;;  %v1385_v55 = vmul.f32 %v1556_v35, %v1257_v48  ;;  %v1909_v35 = vld [vmem:[%s2810_s1 + $0x90] sm:$0xff] }
 0x336   :  { %1855 = vlog2.f32 %v923_v61  ;;  %v2684_v6 = vpop.xlane.xlu0 %1152  ;;  %vm1296_vm7 = vcmp.ne.s32.totalorder %v1909_v35, 4294967295 }
 0x337   :  { %v1255_v56 = vsub.f32 %v1201_v62, %v2623_v42  ;;  %v1428_v49 = vsel %vm1406_vm9, %v1385_v55, 0.0 }
 0x339   :  { %v1383_v50 = vmul.f32 %v1554_v11, %v1255_v56  ;;  %v919_v23 = vpop.xlane.xlu1 %918  ;;  %v1908_v56 = vld [vmem:[%s2810_s1 + $0x88] sm:$0xff] }
 0x33a   :  { %1857 = vlog2.f32 %v919_v23  ;;  %v1155_v30 = vpop.xlane.xlu0 %1154  ;;  %vm1295_vm6 = vcmp.ne.s32.totalorder %v1908_v56, 4294967295 }
 0x33b   :  { %v1424_v15 = vsel %vm1406_vm9, %v1383_v50, 0.0 }
 0x33c   :  { %v1852_v45 = vpop.eup %1851  ;;  %v1425_v47 = vadd.f32 %v1424_v15, %v1423_v63  ;;  %v1910_v15 = vld [vmem:[%s2810_s1 + $0x98] sm:$0xff] }
 0x33d   :  { %v1207_v42 = vmul.f32 0.6931472, %v1852_v45  ;;  %v929_v28 = vpop.xlane.xlu1 %928  ;;  %v1854_v4 = vpop.eup %1853  ;;  %vm1297_vm8 = vcmp.ne.s32.totalorder %v1910_v15, 4294967295 }
 0x33e   :  { %v1427_v32 = vadd.f32 %v1426_v1, %v1425_v47  ;;  %v1211_v10 = vmul.f32 0.6931472, %v1854_v4  ;;  %v1157_v9 = vpop.xlane.xlu0 %1156  ;;  %v1562_v1 = vsel %vm1295_vm6, 1.0, %v1972_v53 }
 0x33f   :  { %v1258_v59 = vsub.f32 %v1207_v42, %v2648_v12  ;;  %v1563_v42 = vsel %vm1296_vm7, 1.0, %v1972_v53 }
 0x340   :  { %v1856_v37 = vpop.eup %1855  ;;  %v1429_v8 = vadd.f32 %v1428_v49, %v1427_v32  ;;  %v1260_v5 = vsub.f32 %v1211_v10, %v2636_v34  ;;  %v1907_v34 = vld [vmem:[%s2810_s1 + $0x80] sm:$0xff] }
 0x341   :  { %v1386_v27 = vmul.f32 %v1557_v25, %v1258_v59  ;;  %v925_v14 = vpop.xlane.xlu1 %924  ;;  %v1213_v12 = vmul.f32 0.6931472, %v1856_v37  ;;  %vm1294_vm5 = vcmp.ne.s32.totalorder %v1907_v34, 4294967295  ;;  %v1564_v25 = vsel %vm1297_vm8, 1.0, %v1972_v53 }
 0x342   :  { %1859 = vlog2.f32 %v925_v14  ;;  %v1388_v16 = vmul.f32 %v1559_v26, %v1260_v5  ;;  %v1561_v19 = vsel %vm1294_vm5, 1.0, %v1972_v53  ;;  %v1159_v55 = vpop.xlane.xlu0 %1158 }
 0x343   :  { %v1430_v13 = vsel %vm1406_vm9, %v1386_v27, 0.0  ;;  %1861 = vlog2.f32 %v929_v28  ;;  %v1261_v20 = vsub.f32 %v1213_v12, %v2658_v46 }
 0x344   :  { %v1858_v29 = vpop.eup %1857  ;;  %v1431_v58 = vadd.f32 %v1430_v13, %v1429_v8  ;;  %v1434_v46 = vsel %vm1406_vm9, %v1388_v16, 0.0  ;;  %v1911_v8 = vld [vmem:[%s2810_s1 + $0xa0] sm:$0xff] }
 0x345   :  { %v1209_v2 = vmul.f32 0.6931472, %v1858_v29  ;;  %v931_v41 = vpop.xlane.xlu1 %930  ;;  %v1389_v39 = vmul.f32 %v1560_v57, %v1261_v20  ;;  %vm1298_vm10 = vcmp.ne.s32.totalorder %v1911_v8, 4294967295  ;;  %v1912_v57 = vld [vmem:[%s2810_s1 + $0xa8] sm:$0xff] }
 0x346   :  { %1863 = vlog2.f32 %v931_v41  ;;  %v1161_v37 = vpop.xlane.xlu0 %1160  ;;  %v1565_v29 = vsel %vm1298_vm10, 1.0, %v1972_v53  ;;  %vm1299_vm11 = vcmp.ne.s32.totalorder %v1912_v57, 4294967295 }
 0x347   :  { %v1259_v31 = vsub.f32 %v1209_v2, %v1145_v21  ;;  %v1436_v0 = vsel %vm1406_vm9, %v1389_v39, 0.0  ;;  %v1914_v39 = vld [vmem:[%s2810_s1 + $0xb8] sm:$0xff] }
 0x348   :  { %vm1301_vm12 = vcmp.ne.s32.totalorder %v1914_v39, 4294967295 }
 0x349   :  { %v1387_v51 = vmul.f32 %v1558_v24, %v1259_v31  ;;  %v927_v33 = vpop.xlane.xlu1 %926 }
 0x34a   :  { %1865 = vlog2.f32 %v927_v33  ;;  %v1163_v41 = vpop.xlane.xlu0 %1162 }
 0x34b   :  { %v1432_v7 = vsel %vm1406_vm9, %v1387_v51, 0.0 }
 0x34c   :  { %v1860_v43 = vpop.eup %1859  ;;  %v1433_v36 = vadd.f32 %v1432_v7, %v1431_v58 }
 0x34d   :  { %v1215_v44 = vmul.f32 0.6931472, %v1860_v43  ;;  %v937_v52 = vpop.xlane.xlu1 %936  ;;  %v1862_v38 = vpop.eup %1861 }
 0x34e   :  { %v1435_v63 = vadd.f32 %v1434_v46, %v1433_v36  ;;  %v1219_v40 = vmul.f32 0.6931472, %v1862_v38  ;;  %v1566_v46 = vsel %vm1299_vm11, 1.0, %v1972_v53 }
 0x34f   :  { %v1262_v62 = vsub.f32 %v1215_v44, %v1151_v60 }
 0x350   :  { %v1864_v61 = vpop.eup %1863  ;;  %v1437_v11 = vadd.f32 %v1436_v0, %v1435_v63  ;;  %v1264_v45 = vsub.f32 %v1219_v40, %v1155_v30  ;;  %v1913_v30 = vld [vmem:[%s2810_s1 + $0xb0] sm:$0xff]  ;;  %v1568_v63 = vsel %vm1301_vm12, 1.0, %v1972_v53 }
 0x351   :  { %v1390_v21 = vmul.f32 %v1561_v19, %v1262_v62  ;;  %v933_v48 = vpop.xlane.xlu1 %932  ;;  %v1221_v50 = vmul.f32 0.6931472, %v1864_v61  ;;  %vm1300_vm0 = vcmp.ne.s32.totalorder %v1913_v30, 4294967295  ;;  %v1915_v61 = vld [vmem:[%s2810_s1 + $0xc0] sm:$0xff] }
 0x352   :  { %1867 = vlog2.f32 %v933_v48  ;;  %v1392_v32 = vmul.f32 %v1563_v42, %v1264_v45  ;;  %v1567_v44 = vsel %vm1300_vm0, 1.0, %v1972_v53  ;;  %vm1302_vm13 = vcmp.ne.s32.totalorder %v1915_v61, 4294967295 }
 0x353   :  { %v1438_v54 = vsel %vm1406_vm9, %v1390_v21, 0.0  ;;  %1869 = vlog2.f32 %v937_v52  ;;  %v1265_v28 = vsub.f32 %v1221_v50, %v1157_v9  ;;  %v1165_v52 = vpop.xlane.xlu0 %1164  ;;  %v1569_v50 = vsel %vm1302_vm13, 1.0, %v1972_v53 }
 0x354   :  { %v1866_v23 = vpop.eup %1865  ;;  %v1439_v22 = vadd.f32 %v1438_v54, %v1437_v11  ;;  %v1442_v18 = vsel %vm1406_vm9, %v1392_v32, 0.0 }
 0x355   :  { %v1217_v47 = vmul.f32 0.6931472, %v1866_v23  ;;  %v939_v60 = vpop.xlane.xlu1 %938  ;;  %v1393_v10 = vmul.f32 %v1564_v25, %v1265_v28 }
 0x356   :  { %1871 = vlog2.f32 %v939_v60 }
 0x357   :  { %v1263_v4 = vsub.f32 %v1217_v47, %v2684_v6  ;;  %v1444_v17 = vsel %vm1406_vm9, %v1393_v10, 0.0  ;;  %v1167_v23 = vpop.xlane.xlu0 %1166 }
 0x359   :  { %v1391_v49 = vmul.f32 %v1562_v1, %v1263_v4  ;;  %v935_v59 = vpop.xlane.xlu1 %934  ;;  %v1916_v1 = vld [vmem:[%s2810_s1 + $0xc8] sm:$0xff] }
 0x35a   :  { %1873 = vlog2.f32 %v935_v59  ;;  %vm1303_vm14 = vcmp.ne.s32.totalorder %v1916_v1, 4294967295 }
 0x35b   :  { %v1440_v27 = vsel %vm1406_vm9, %v1391_v49, 0.0  ;;  %v1169_v4 = vpop.xlane.xlu0 %1168 }
 0x35c   :  { %v1868_v14 = vpop.eup %1867  ;;  %v1441_v3 = vadd.f32 %v1440_v27, %v1439_v22 }
 0x35d   :  { %v1223_v6 = vmul.f32 0.6931472, %v1868_v14  ;;  %v945_v13 = vpop.xlane.xlu1 %944  ;;  %v1870_v12 = vpop.eup %1869 }
 0x35e   :  { %v1443_v58 = vadd.f32 %v1442_v18, %v1441_v3  ;;  %v1227_v26 = vmul.f32 0.6931472, %v1870_v12  ;;  %v1917_v18 = vld [vmem:[%s2810_s1 + $0xd0] sm:$0xff] }
 0x35f   :  { %v1266_v5 = vsub.f32 %v1223_v6, %v1159_v55  ;;  %vm1304_vm1 = vcmp.ne.s32.totalorder %v1917_v18, 4294967295  ;;  %v1918_v6 = vld [vmem:[%s2810_s1 + $0xd8] sm:$0xff] }
 0x360   :  { %v1872_v2 = vpop.eup %1871  ;;  %v1445_v24 = vadd.f32 %v1444_v17, %v1443_v58  ;;  %v1268_v7 = vsub.f32 %v1227_v26, %v1163_v41  ;;  %vm1305_vm2 = vcmp.ne.s32.totalorder %v1918_v6, 4294967295  ;;  %v1571_v41 = vsel %vm1304_vm1, 1.0, %v1972_v53  ;;  %v1919_v26 = vld [vmem:[%s2810_s1 + $0xe0] sm:$0xff] }
 0x361   :  { %v1394_v20 = vmul.f32 %v1565_v29, %v1266_v5  ;;  %v941_v31 = vpop.xlane.xlu1 %940  ;;  %v1229_v51 = vmul.f32 0.6931472, %v1872_v2  ;;  %v1572_v2 = vsel %vm1305_vm2, 1.0, %v1972_v53  ;;  %vm1306_vm15 = vcmp.ne.s32.totalorder %v1919_v26, 4294967295 }
 0x362   :  { %1875 = vlog2.f32 %v941_v31  ;;  %v1396_v9 = vmul.f32 %v1567_v44, %v1268_v7  ;;  %v1920_v31 = vld [vmem:[%s2810_s1 + $0xe8] sm:$0xff]  ;;  %v1573_v7 = vsel %vm1306_vm15, 1.0, %v1972_v53 }
 0x363   :  { %v1446_v16 = vsel %vm1406_vm9, %v1394_v20, 0.0  ;;  %v1269_v38 = vsub.f32 %v1229_v51, %v1165_v52  ;;  %vm1307_vm4 = vcmp.ne.s32.totalorder %v1920_v31, 4294967295 }
 0x364   :  { %v1874_v33 = vpop.eup %1873  ;;  %v1447_v34 = vadd.f32 %v1446_v16, %v1445_v24  ;;  %v1450_v56 = vsel %vm1406_vm9, %v1396_v9, 0.0 }
 0x365   :  { %v1225_v43 = vmul.f32 0.6931472, %v1874_v33  ;;  %v947_v36 = vpop.xlane.xlu1 %946  ;;  %v1397_v11 = vmul.f32 %v1568_v63, %v1269_v38  ;;  %v1922_v38 = vld [vmem:[%s2810_s1 + $0xf8] sm:$0xff] }
 0x366   :  { %vm1309_vm5 = vcmp.ne.s32.totalorder %v1922_v38, 4294967295 }
 0x367   :  { %v1267_v19 = vsub.f32 %v1225_v43, %v1161_v37  ;;  %v1452_v55 = vsel %vm1406_vm9, %v1397_v11, 0.0  ;;  %v1570_v37 = vsel %vm1303_vm14, 1.0, %v1972_v53 }
 0x369   :  { %v1395_v0 = vmul.f32 %v1566_v46, %v1267_v19  ;;  %v943_v62 = vpop.xlane.xlu1 %942  ;;  %v1921_v46 = vld [vmem:[%s2810_s1 + $0xf0] sm:$0xff]  ;;  %s1973_s1 = smov [#allocation2]  }
 0x36a   :  { %1877 = vlog2.f32 %v943_v62  ;;  %vm1308_vm3 = vcmp.ne.s32.totalorder %v1921_v46, 4294967295  ;;  %s1486_s13 = sshll.u32 %s1973_s1, 4  ;;  %s1487_s13 = int_to_ptr.vmem [resolvable:$true] %s1486_s13 }
 0x36b   :  { %v1448_v40 = vsel %vm1406_vm9, %v1395_v0, 0.0  ;;  %1879 = vlog2.f32 %v947_v36  ;;  %v1574_v36 = vsel %vm1307_vm4, 1.0, %v1972_v53  ;;  %s1923_s14 = scalar_lea.vmem %s1487_s13, 4096  ;;  %p1928_p1 = scmp.lt.s32.totalorder %s1487_s13, %s1487_s13 }
 0x36c   :  { %v1876_v21 = vpop.eup %1875  ;;  %v1449_v48 = vadd.f32 %v1448_v40, %v1447_v34  ;;  %1881 = vlog2.f32 %v945_v13  ;;  %v1173_v13 = vpop.xlane.xlu0 %1172  ;;  %p1924_p0 = scmp.ne.s32.totalorder %s1487_s13, %s1923_s14  ;;  %p1929_p2 = scmp.lt.s32.totalorder %s1923_s14, %s1923_s14 }
 0x36d   :  { %v1231_v35 = vmul.f32 0.6931472, %v1876_v21  ;;  %v953_v54 = vpop.xlane.xlu1 %952 }
 0x36e   :  { %v1451_v22 = vadd.f32 %v1450_v56, %v1449_v48  ;;  %v1575_v48 = vsel %vm1308_vm3, 1.0, %v1972_v53  ;;  %p1930_p3 = por %p1929_p2, %p1928_p1 }
 0x36f   :  { %v1270_v15 = vsub.f32 %v1231_v35, %v1167_v23  ;;  %v1576_v35 = vsel %vm1309_vm5, 1.0, %v1972_v53 }
 0x370   :  { %v1453_v45 = vadd.f32 %v1452_v55, %v1451_v22  ;;  %v1177_v30 = vpop.xlane.xlu0 %1176  ;;  %p1931_p4 = pnand %p1930_p3, %p1924_p0 }
 0x371   :  { %v1398_v47 = vmul.f32 %v1569_v50, %v1270_v15  ;;  %v949_v60 = vpop.xlane.xlu1 %948 }
 0x372   :  { %1883 = vlog2.f32 %v949_v60 }
 0x373   :  { %v1454_v42 = vsel %vm1406_vm9, %v1398_v47, 0.0 }
 0x374   :  { %v1878_v28 = vpop.eup %1877  ;;  %v1455_v25 = vadd.f32 %v1454_v42, %v1453_v45 }
 0x375   :  { %v1880_v32 = vpop.eup %1879  ;;  %v1233_v49 = vmul.f32 0.6931472, %v1878_v28  ;;  %v951_v59 = vpop.xlane.xlu1 %950 }
 0x376   :  { %1885 = vlog2.f32 %v951_v59  ;;  %v1237_v10 = vmul.f32 0.6931472, %v1880_v32  ;;  %v1882_v27 = vpop.eup %1881 }
 0x377   :  { %v1271_v8 = vsub.f32 %v1233_v49, %v1169_v4  ;;  %1887 = vlog2.f32 %v953_v54  ;;  %v1235_v58 = vmul.f32 0.6931472, %v1882_v27  ;;  %v1181_v54 = vpop.xlane.xlu0 %1180 }
 0x378   :  { %v1273_v29 = vsub.f32 %v1237_v10, %v1173_v13 }
 0x379   :  { %v1399_v14 = vmul.f32 %v1570_v37, %v1271_v8  ;;  %v955_v3 = vpop.xlane.xlu1 %954 }
 0x37a   :  { %1889 = vlog2.f32 %v955_v3  ;;  %v1401_v16 = vmul.f32 %v1572_v2, %v1273_v29 }
 0x37b   :  { %v1456_v12 = vsel %vm1406_vm9, %v1399_v14, 0.0 }
 0x37c   :  { %v1457_v17 = vadd.f32 %v1456_v12, %v1455_v25  ;;  %v1884_v5 = vpop.eup %1883  ;;  %v1460_v62 = vsel %vm1406_vm9, %v1401_v16, 0.0 }
 0x37d   :  { %v1171_v24 = vpop.xlane.xlu1 %1170  ;;  %v1239_v33 = vmul.f32 0.6931472, %v1884_v5 }
 0x37e   :  { %v1272_v20 = vsub.f32 %v1235_v58, %v1171_v24 }
 0x380   :  { %v1886_v57 = vpop.eup %1885  ;;  %v1400_v51 = vmul.f32 %v1571_v41, %v1272_v20 }
 0x381   :  { %v1888_v34 = vpop.eup %1887  ;;  %v1241_v39 = vmul.f32 0.6931472, %v1886_v57  ;;  %v1175_v43 = vpop.xlane.xlu1 %1174 }
 0x382   :  { %v1458_v44 = vsel %vm1406_vm9, %v1400_v51, 0.0  ;;  %v1274_v52 = vsub.f32 %v1239_v33, %v1175_v43  ;;  %v1243_v61 = vmul.f32 0.6931472, %v1888_v34 }
 0x383   :  { %v1275_v19 = vsub.f32 %v1241_v39, %v1177_v30  ;;  %v1459_v63 = vadd.f32 %v1458_v44, %v1457_v17 }
 0x384   :  { %v1890_v9 = vpop.eup %1889  ;;  %v1402_v0 = vmul.f32 %v1573_v7, %v1274_v52 }
 0x385   :  { %v1403_v11 = vmul.f32 %v1574_v36, %v1275_v19  ;;  %v1245_v40 = vmul.f32 0.6931472, %v1890_v9  ;;  %v1461_v21 = vadd.f32 %v1460_v62, %v1459_v63  ;;  %v1179_v56 = vpop.xlane.xlu1 %1178 }
 0x386   :  { %v1462_v50 = vsel %vm1406_vm9, %v1402_v0, 0.0  ;;  %v1276_v23 = vsub.f32 %v1243_v61, %v1179_v56 }
 0x387   :  { %v1277_v22 = vsub.f32 %v1245_v40, %v1181_v54  ;;  %v1463_v55 = vadd.f32 %v1462_v50, %v1461_v21  ;;  %v1464_v15 = vsel %vm1406_vm9, %v1403_v11, 0.0 }
 0x388   :  { %v1404_v45 = vmul.f32 %v1575_v48, %v1276_v23 }
 0x389   :  { %v1465_v47 = vadd.f32 %v1464_v15, %v1463_v55  ;;  %v1405_v60 = vmul.f32 %v1576_v35, %v1277_v22 }
 0x38a   :  { %v1466_v1 = vsel %vm1406_vm9, %v1404_v45, 0.0 }
 0x38b   :  { %v1467_v42 = vadd.f32 %v1466_v1, %v1465_v47  ;;  %v1468_v28 = vsel %vm1406_vm9, %v1405_v60, 0.0 }
 0x38d   :  { %v1469_v4 = vadd.f32 %v1468_v28, %v1467_v42 }
 0x38f   :  { %1470 = vadd.xlane.f32.xlu1 %v1469_v4 }
 0x390   :  { %1934 = shalt.err (!%p1931_p4)
}
 0x391   :  { %s1935_s17 = scalar_lea.hbm %s2815_s6, 4096 }
 0x392   :  { %p1936_p5 = scmp.ne.s32.totalorder %s2815_s6, %s1935_s17  ;;  %p1939_p6 = scmp.lt.u32.totalorder %s1935_s17, %s2815_s6 }
 0x394   :  { %p1941_p7 = pnand %p1939_p6, %p1936_p5 }
 0x396   :  { %1944 = shalt.err (!%p1941_p7)
}
 0x397   :  { %s1974_s21 = smov 128   ;;  %s1975_s4 = smov 8  }
 0x398   :  { %1492 = dma.vmem_to_hbm [thread:$0]  %s1487_s13, 4096, %s2815_s6, [#allocation3], %s1974_s21, %s1974_s21, %s1975_s4  }
 0x399   :  { %s1976_s24 = smov [#allocation4]  }
 0x39a   :  { %s1499_s25 = sshll.u32 %s1976_s24, 4  ;;  %s1500_s25 = int_to_ptr.vmem [resolvable:$true] %s1499_s25 }
 0x39b   :  { %s1945_s26 = scalar_lea.vmem %s1500_s25, 128  ;;  %p1950_p9 = scmp.lt.s32.totalorder %s1500_s25, %s1500_s25 }
 0x39c   :  { %p1946_p8 = scmp.ne.s32.totalorder %s1500_s25, %s1945_s26  ;;  %p1951_p10 = scmp.lt.s32.totalorder %s1945_s26, %s1945_s26 }
 0x39e   :  { %p1952_p11 = por %p1951_p10, %p1950_p9 }
 0x3a0   :  { %p1953_p12 = pnand %p1952_p11, %p1946_p8 }
 0x41c   :  { %v1471_v53 = vpop.xlane.xlu1 %1470 }
 0x41d   :  { %v1472_v25 = vrot.slane %v1471_v53, 4 }
 0x41f   :  { %v1473_v32 = vadd.f32 %v1472_v25, %v1471_v53 }
 0x421   :  { %v1474_v49 = vrot.slane %v1473_v32, 2 }
 0x423   :  { %v1475_v59 = vadd.f32 %v1474_v49, %v1473_v32 }
 0x425   :  { %v1476_v37 = vrot.slane %v1475_v59, 1 }
 0x427   :  { %v1477_v8 = vadd.f32 %v1476_v37, %v1475_v59 }
 0x429   :  { %1721 = vpush %v1477_v8 }
 0x45a   :  { %s1722_s2 = spop %1721 }
 0x45b   :  { %v1479_v10 = vstv %s1722_s2 }
 0x45c   :  { %1480 = vst [vmem:[#allocation4] sm:$0xff] %v1479_v10 }
 0x45d   :  { %1956 = shalt.err (!%p1953_p12)
}
 0x45e   :  { %s1957_s3 = scalar_lea.hbm %s2816_s7, 128 }
 0x45f   :  { %p1958_p13 = scmp.ne.s32.totalorder %s2816_s7, %s1957_s3  ;;  %p1961_p0 = scmp.lt.u32.totalorder %s1957_s3, %s2816_s7 }
 0x461   :  { %p1963_p1 = pnand %p1961_p0, %p1958_p13 }
 0x463   :  { %1966 = shalt.err (!%p1963_p1)
}
 0x464   :  { %1502 = dma.vmem_to_hbm [thread:$0]  %s1500_s25, 128, %s2816_s7, [#allocation5]  }
 0x465   :  { %1967 = dma.done.wait [#allocation3], 4096  }
 0x466   :  { %1968 = vsyncadd [#allocation3], 4294963200 }
 0x467   :  { %1969 = dma.done.wait [#allocation5], 128  }
 0x468   :  { %1970 = vsyncadd [#allocation5], 4294967168 }
 0x469   :  { %1509 = vsyncpa [#allocation3], 1 }
 0x46a   :  { %1510 = vsyncpa [#allocation5], 1 }

</bundles_post_ra>
